<compile_context>
chip_gen: v7x
topology: tpu7x:2x2x1
jax: 0.10.0
libtpu: 0.0.40
codegen_flags: <defaults>
</compile_context>

<pallas_src>
import functools
import math

import jax
import jax.numpy as jnp
from jax.experimental import pallas as pl
from jax.experimental.pallas import tpu as pltpu


_EPS = 1e-6
_NEG_INF = -1e9
_ACT_DTYPE = jnp.bfloat16                 # inter-kernel residual-stream dtype
_VMEM_LIMIT = 64 * 1024 * 1024            # safe on v7x (64 MiB); raiseable on v5e/v6e


# ----------------------------------------------------------------------------
# Single-buffering probe for constant blocks (weights never change across grid)
# ----------------------------------------------------------------------------
_BUFFERED_ONE = None


def _single_buffer_ok():
    """Probe once whether pipeline_mode=pl.Buffered(1) is supported."""
    global _BUFFERED_ONE
    if _BUFFERED_ONE is None:
        try:
            def _probe(x_ref, o_ref):
                o_ref[...] = x_ref[...] * 2.0

            f = pl.pallas_call(
                _probe,
                out_shape=jax.ShapeDtypeStruct((16, 128), jnp.float32),
                grid=(2,),
                in_specs=[pl.BlockSpec((8, 128), lambda i: (0, 0),
                                       pipeline_mode=pl.Buffered(1))],
                out_specs=pl.BlockSpec((8, 128), lambda i: (i, 0)),
            )
            jax.block_until_ready(f(jnp.ones((8, 128), jnp.float32)))
            _BUFFERED_ONE = True
        except Exception:  # older jax without pipeline_mode / Buffered(1)
            _BUFFERED_ONE = False
    return _BUFFERED_ONE


def _const_spec(shape, grid_rank):
    """BlockSpec for operands whose block never changes across the grid.

    Single-buffered when supported: a constant block never needs the second
    pipeline buffer, halving its resident VMEM (matters for [D, d_ff] weights
    on v7x's 64 MiB VMEM)."""
    ndim = len(shape)
    if grid_rank == 1:
        index_map = lambda i: (0,) * ndim
    else:
        index_map = lambda i, j: (0,) * ndim
    if _single_buffer_ok():
        return pl.BlockSpec(shape, index_map, pipeline_mode=pl.Buffered(1))
    return pl.BlockSpec(shape, index_map)


# ----------------------------------------------------------------------------
# Tile helpers
# ----------------------------------------------------------------------------
def _largest_tile(n, target):
    """Largest divisor of n that is a multiple of 8 and <= target (else n / target)."""
    if n <= target:
        return n
    for cand in range(target, 7, -1):
        if cand % 8 == 0 and n % cand == 0:
            return cand
    return target  # non-dividing: padded tail block (padded rows are discarded)


def _pick_row_tile(m, target=512):
    """Row tile for FFN / final LN: big tiles, >=2 grid steps when possible."""
    if m <= target:
        half = m // 2
        if half >= 8 and half % 8 == 0 and m % half == 0:
            return half
        return m
    return _largest_tile(m, target)


def _pick_q_tile(t, b, target=256):
    """Query-row tile for attention; split T when B==1 so both TCs get work."""
    if b >= 2 or t < 16:
        return _largest_tile(t, target)
    return _largest_tile(t, max(8, min(target, t // 2)))


# ----------------------------------------------------------------------------
# In-kernel helpers
# ----------------------------------------------------------------------------
def _layer_norm(x, g, b):
    """Annotated-Transformer LayerNorm: unbiased std, eps added to the std."""
    d = x.shape[-1]
    mean = jnp.mean(x, axis=-1, keepdims=True)
    var = jnp.sum((x - mean) ** 2, axis=-1, keepdims=True) * (1.0 / (d - 1))
    inv = pl.reciprocal(jnp.sqrt(var) + _EPS, approx=False)
    return g * (x - mean) * inv + b


# ----------------------------------------------------------------------------
# Pallas kernels
# ----------------------------------------------------------------------------
def _attn_block_kernel(xq_ref, kv_ref, g_ref, b_ref, wq_ref, bq_ref,
                       wkv_ref, bkv_ref, wo_ref, bo_ref, bias_ref,
                       o_ref, merge_ref, *, h, norm_kv):
    """One (batch, q-tile) step of a pre-norm residual attention sublayer."""
    d = xq_ref.shape[-1]
    dk = d // h
    scale = 1.0 / math.sqrt(dk)

    xq = xq_ref[0].astype(jnp.float32)                       # [tq, D] residual
    yq = _layer_norm(xq, g_ref[...], b_ref[...])             # pre-norm queries

    if norm_kv:   # self-attention: K/V source is the layer-normed x
        ykv = _layer_norm(kv_ref[0].astype(jnp.float32),
                          g_ref[...], b_ref[...]).astype(jnp.bfloat16)
    else:         # source-attention: encoder memory is NOT normed
        ykv = kv_ref[0].astype(jnp.bfloat16)

    # Full-width, lane-dense MXU projections; 1/sqrt(dk) folded into Q.
    q = (jnp.dot(yq.astype(jnp.bfloat16), wq_ref[...],
                 preferred_element_type=jnp.float32) + bq_ref[...]) * scale
    kv = jnp.dot(ykv, wkv_ref[...],
                 preferred_element_type=jnp.float32) + bkv_ref[...]
    k = kv[:, :d]
    v = kv[:, d:]

    bias = bias_ref[0].astype(jnp.float32)                   # additive mask bias

    # Per-head attention; each head's output lands in the VMEM merge scratch at
    # its static lane offset (bounds live ranges; enables one dense Wo matmul).
    for i in range(h):
        lo = i * dk
        qh = q[:, lo:lo + dk].astype(jnp.bfloat16)
        kh = k[:, lo:lo + dk].astype(jnp.bfloat16)
        s = jax.lax.dot_general(qh, kh, (((1,), (1,)), ((), ())),
                                preferred_element_type=jnp.float32) + bias
        s = s - jnp.max(s, axis=-1, keepdims=True)
        p = jnp.exp(s)
        p = p * pl.reciprocal(jnp.sum(p, axis=-1, keepdims=True), approx=True)
        vh = v[:, lo:lo + dk].astype(jnp.bfloat16)
        merge_ref[:, lo:lo + dk] = jnp.dot(
            p.astype(jnp.bfloat16), vh,
            preferred_element_type=jnp.float32).astype(jnp.bfloat16)

    # concat(heads) @ Wo as a single dense bf16 matmul.
    out = jnp.dot(merge_ref[...], wo_ref[...],
                  preferred_element_type=jnp.float32) + bo_ref[...]
    o_ref[0] = (xq + out).astype(o_ref.dtype)                # fused residual add


def _ffn_block_kernel(x_ref, g_ref, b_ref, w1_ref, b1_ref, w2_ref, b2_ref, o_ref):
    x = x_ref[...].astype(jnp.float32)                       # [tm, D]
    y = _layer_norm(x, g_ref[...], b_ref[...])
    hdn = jnp.dot(y.astype(jnp.bfloat16), w1_ref[...],
                  preferred_element_type=jnp.float32) + b1_ref[...]
    hdn = jnp.maximum(hdn, 0.0)                              # ReLU, stays in VMEM
    out = jnp.dot(hdn.astype(jnp.bfloat16), w2_ref[...],
                  preferred_element_type=jnp.float32) + b2_ref[...]
    o_ref[...] = (x + out).astype(o_ref.dtype)               # fused residual add


def _layernorm_kernel(x_ref, g_ref, b_ref, o_ref):
    x = x_ref[...].astype(jnp.float32)
    o_ref[...] = _layer_norm(x, g_ref[...], b_ref[...]).astype(o_ref.dtype)


# ----------------------------------------------------------------------------
# Wrappers around pallas_call
# ----------------------------------------------------------------------------
def attn_block(xq, kv_src, bias, p, h, *, norm_kv):
    b, t, d = xq.shape
    s = kv_src.shape[1]
    mb = bias.shape[0]
    assert d % h == 0, "d_model must be divisible by num heads"
    tq = _pick_q_tile(t, b)
    grid = (b, pl.cdiv(t, tq))

    if mb > 1:
        bias_spec = pl.BlockSpec((1, tq, s), lambda i, j: (i, j, 0))
    else:  # broadcast mask (e.g. causal): one [1,T,S] copy in HBM for all batches
        bias_spec = pl.BlockSpec((1, tq, s), lambda i, j: (0, j, 0))

    in_specs = [
        pl.BlockSpec((1, tq, d), lambda i, j: (i, j, 0)),    # x (query/residual tile)
        pl.BlockSpec((1, s, d), lambda i, j: (i, 0, 0)),     # K/V source, full length
        _const_spec((1, d), 2), _const_spec((1, d), 2),      # LN gamma / beta
        _const_spec((d, d), 2), _const_spec((1, d), 2),      # Wq, bq
        _const_spec((d, 2 * d), 2), _const_spec((1, 2 * d), 2),  # Wkv, bkv
        _const_spec((d, d), 2), _const_spec((1, d), 2),      # Wo, bo
        bias_spec,                                           # additive mask bias (bf16)
    ]
    return pl.pallas_call(
        functools.partial(_attn_block_kernel, h=h, norm_kv=norm_kv),
        out_shape=jax.ShapeDtypeStruct((b, t, d), _ACT_DTYPE),
        grid=grid,
        in_specs=in_specs,
        out_specs=pl.BlockSpec((1, tq, d), lambda i, j: (i, j, 0)),
        scratch_shapes=[pltpu.VMEM((tq, d), jnp.bfloat16)],  # head-merge scratch
        compiler_params=pltpu.CompilerParams(
            dimension_semantics=("parallel", "parallel"),
            vmem_limit_bytes=_VMEM_LIMIT),
    )(xq, kv_src, p["ln_g"], p["ln_b"], p["wq"], p["bq"],
      p["wkv"], p["bkv"], p["wo"], p["bo"], bias)


def ffn_block(x, p):
    b, t, d = x.shape
    m = b * t
    d_ff = p["w1"].shape[1]
    tm = _pick_row_tile(m)
    out = pl.pallas_call(
        _ffn_block_kernel,
        out_shape=jax.ShapeDtypeStruct((m, d), _ACT_DTYPE),
        grid=(pl.cdiv(m, tm),),
        in_specs=[
            pl.BlockSpec((tm, d), lambda i: (i, 0)),
            _const_spec((1, d), 1), _const_spec((1, d), 1),
            _const_spec((d, d_ff), 1), _const_spec((1, d_ff), 1),
            _const_spec((d_ff, d), 1), _const_spec((1, d), 1),
        ],
        out_specs=pl.BlockSpec((tm, d), lambda i: (i, 0)),
        compiler_params=pltpu.CompilerParams(
            dimension_semantics=("parallel",), vmem_limit_bytes=_VMEM_LIMIT),
    )(x.reshape(m, d), p["ln_g"], p["ln_b"], p["w1"], p["b1"], p["w2"], p["b2"])
    return out.reshape(b, t, d)


def final_layernorm(x, gamma, beta, out_dtype):
    b, t, d = x.shape
    m = b * t
    tm = _pick_row_tile(m)
    out = pl.pallas_call(
        _layernorm_kernel,
        out_shape=jax.ShapeDtypeStruct((m, d), out_dtype),
        grid=(pl.cdiv(m, tm),),
        in_specs=[pl.BlockSpec((tm, d), lambda i: (i, 0)),
                  _const_spec((1, d), 1), _const_spec((1, d), 1)],
        out_specs=pl.BlockSpec((tm, d), lambda i: (i, 0)),
        compiler_params=pltpu.CompilerParams(
            dimension_semantics=("parallel",), vmem_limit_bytes=_VMEM_LIMIT),
    )(x.reshape(m, d), gamma, beta)
    return out.reshape(b, t, d)


# ----------------------------------------------------------------------------
# Mask -> additive bias (computed once per forward, stored compact as bf16)
# ----------------------------------------------------------------------------
def _mask_to_bias(mask, t, s):
    m = jnp.asarray(mask)
    if m.ndim == 2:
        m = m[None]
    mb = m.shape[0]                       # keep batch dim 1 for broadcast masks
    m = jnp.broadcast_to(m, (mb, t, s))
    return jnp.where(m == 0, jnp.float32(_NEG_INF), jnp.float32(0.0)).astype(jnp.bfloat16)


# ----------------------------------------------------------------------------
# Decoder forward (dropout = identity / eval mode)
# ----------------------------------------------------------------------------
def decoder_forward(x, memory, src_mask, tgt_mask, params, h):
    b, t, d = x.shape
    s = memory.shape[1]
    out_dtype = x.dtype
    tgt_bias = _mask_to_bias(tgt_mask, t, t)
    src_bias = _mask_to_bias(src_mask, t, s)
    mem = memory.astype(jnp.bfloat16)     # K/V source, read every layer
    for lp in params["layers"]:
        x = attn_block(x, x, tgt_bias, lp["self_attn"], h, norm_kv=True)
        x = attn_block(x, mem, src_bias, lp["src_attn"], h, norm_kv=False)
        x = ffn_block(x, lp["ff"])
    return final_layernorm(x, params["norm_g"], params["norm_b"], out_dtype)


# ----------------------------------------------------------------------------
# Deterministic parameter construction (weights bf16, biases / LN affine f32)
# ----------------------------------------------------------------------------
def _init_attn_params(key, d):
    kq, kk, kv, ko = jax.random.split(key, 4)

    def w(k, n):
        return (0.02 * jax.random.normal(k, (d, n), jnp.float32)).astype(jnp.bfloat16)

    return dict(
        ln_g=jnp.ones((1, d), jnp.float32), ln_b=jnp.zeros((1, d), jnp.float32),
        wq=w(kq, d), bq=jnp.zeros((1, d), jnp.float32),
        wkv=jnp.concatenate([w(kk, d), w(kv, d)], axis=1),      # [D, 2D] bf16
        bkv=jnp.zeros((1, 2 * d), jnp.float32),
        wo=w(ko, d), bo=jnp.zeros((1, d), jnp.float32),
    )


def _init_ffn_params(key, d, d_ff):
    k1, k2 = jax.random.split(key)
    return dict(
        ln_g=jnp.ones((1, d), jnp.float32), ln_b=jnp.zeros((1, d), jnp.float32),
        w1=(0.02 * jax.random.normal(k1, (d, d_ff), jnp.float32)).astype(jnp.bfloat16),
        b1=jnp.zeros((1, d_ff), jnp.float32),
        w2=(0.02 * jax.random.normal(k2, (d_ff, d), jnp.float32)).astype(jnp.bfloat16),
        b2=jnp.zeros((1, d), jnp.float32),
    )


def init_params(key, n_layers, d_model, d_ff):
    layers = []
    for _ in range(n_layers):
        key, k_sa, k_ca, k_ff = jax.random.split(key, 4)
        layers.append(dict(self_attn=_init_attn_params(k_sa, d_model),
                           src_attn=_init_attn_params(k_ca, d_model),
                           ff=_init_ffn_params(k_ff, d_model, d_ff)))
    return dict(layers=layers,
                norm_g=jnp.ones((1, d_model), jnp.float32),
                norm_b=jnp.zeros((1, d_model), jnp.float32))


# ----------------------------------------------------------------------------
if __name__ == "__main__":
    B, T, S = 2, 8, 8          # batch, target seq, source (memory) seq
    D, H, D_FF = 32, 4, 64     # model dim, heads, feed-forward dim
    N_LAYERS = 2
    assert D % H == 0

    root = jax.random.PRNGKey(0)
    k_x, k_m, k_p = jax.random.split(root, 3)

    x = jax.random.normal(k_x, (B, T, D), dtype=jnp.float32)
    memory = jax.random.normal(k_m, (B, S, D), dtype=jnp.float32)

    # src_mask: attend to all memory positions (per-batch padding-mask layout);
    # tgt_mask: causal (subsequent) mask shared across the batch -> kept [1,T,T].
    src_mask = jnp.ones((B, 1, S), dtype=jnp.int32)
    tgt_mask = jnp.tril(jnp.ones((T, T), dtype=jnp.int32))[None]

    params = init_params(k_p, N_LAYERS, D, D_FF)

    fwd = jax.jit(functools.partial(decoder_forward, h=H))
    out = jax.block_until_ready(fwd(x, memory, src_mask, tgt_mask, params))

    assert out.shape == (B, T, D), out.shape
    assert jnp.all(jnp.isfinite(out))
    print("KERNEL_OK")
</pallas_src>

<mosaic_0001>
module attributes {stable_mosaic.version = 11 : i64} {
  func.func @_attn_block_kernel(%arg0: i32, %arg1: i32, %arg2: memref<1x8x32xf32, #tpu.memory_space<vmem>>, %arg3: memref<1x8x32xf32, #tpu.memory_space<vmem>>, %arg4: memref<1x32xf32, #tpu.memory_space<vmem>>, %arg5: memref<1x32xf32, #tpu.memory_space<vmem>>, %arg6: memref<32x32xbf16, #tpu.memory_space<vmem>>, %arg7: memref<1x32xf32, #tpu.memory_space<vmem>>, %arg8: memref<32x64xbf16, #tpu.memory_space<vmem>>, %arg9: memref<1x64xf32, #tpu.memory_space<vmem>>, %arg10: memref<32x32xbf16, #tpu.memory_space<vmem>>, %arg11: memref<1x32xf32, #tpu.memory_space<vmem>>, %arg12: memref<1x8x8xbf16, #tpu.memory_space<vmem>>, %arg13: memref<1x8x32xbf16, #tpu.memory_space<vmem>>, %arg14: memref<8x32xbf16, #tpu.memory_space<vmem>>) attributes {dimension_semantics = [#tpu.dimension_semantics<parallel>, #tpu.dimension_semantics<parallel>], iteration_bounds = array<i64: 2, 1>, scalar_prefetch = 0 : i64, scratch_operands = 1 : i64, tpu.core_type = #tpu.core_type<tc>, window_params = [{transform_indices = @transform_0, window_bounds = array<i64: 1, 8, 32>}, {transform_indices = @transform_1, window_bounds = array<i64: 1, 8, 32>}, {pipeline_mode = #tpu.pipeline_mode<synchronous>, transform_indices = @transform_2, window_bounds = array<i64: 1, 32>}, {pipeline_mode = #tpu.pipeline_mode<synchronous>, transform_indices = @transform_3, window_bounds = array<i64: 1, 32>}, {pipeline_mode = #tpu.pipeline_mode<synchronous>, transform_indices = @transform_4, window_bounds = array<i64: 32, 32>}, {pipeline_mode = #tpu.pipeline_mode<synchronous>, transform_indices = @transform_5, window_bounds = array<i64: 1, 32>}, {pipeline_mode = #tpu.pipeline_mode<synchronous>, transform_indices = @transform_6, window_bounds = array<i64: 32, 64>}, {pipeline_mode = #tpu.pipeline_mode<synchronous>, transform_indices = @transform_7, window_bounds = array<i64: 1, 64>}, {pipeline_mode = #tpu.pipeline_mode<synchronous>, transform_indices = @transform_8, window_bounds = array<i64: 32, 32>}, {pipeline_mode = #tpu.pipeline_mode<synchronous>, transform_indices = @transform_9, window_bounds = array<i64: 1, 32>}, {transform_indices = @transform_10, window_bounds = array<i64: 1, 8, 8>}, {transform_indices = @transform_11, window_bounds = array<i64: 1, 8, 32>}]} {
    %c0 = arith.constant 0 : index
    %c0_0 = arith.constant 0 : index
    %c0_1 = arith.constant 0 : index
    %0 = vector.load %arg2[%c0, %c0_0, %c0_1] : memref<1x8x32xf32, #tpu.memory_space<vmem>>, vector<1x8x32xf32>
    %1 = vector.shape_cast %0 : vector<1x8x32xf32> to vector<8x32xf32>
    %c0_2 = arith.constant 0 : index
    %c0_3 = arith.constant 0 : index
    %2 = vector.load %arg4[%c0_2, %c0_3] : memref<1x32xf32, #tpu.memory_space<vmem>>, vector<1x32xf32>
    %c0_4 = arith.constant 0 : index
    %c0_5 = arith.constant 0 : index
    %3 = vector.load %arg5[%c0_4, %c0_5] : memref<1x32xf32, #tpu.memory_space<vmem>>, vector<1x32xf32>
    %cst = arith.constant dense<0.000000e+00> : vector<8xf32>
    %4 = vector.multi_reduction <add>, %1, %cst [1] : vector<8x32xf32> to vector<8xf32>
    %5 = vector.shape_cast %4 : vector<8xf32> to vector<8x1xf32>
    %cst_6 = arith.constant 3.200000e+01 : f32
    %6 = vector.broadcast %cst_6 : f32 to vector<8x1xf32>
    %7 = arith.divf %5, %6 : vector<8x1xf32>
    %8 = vector.broadcast %7 : vector<8x1xf32> to vector<8x32xf32>
    %9 = arith.subf %1, %8 : vector<8x32xf32>
    %10 = arith.mulf %9, %9 : vector<8x32xf32>
    %cst_7 = arith.constant dense<0.000000e+00> : vector<8xf32>
    %11 = vector.multi_reduction <add>, %10, %cst_7 [1] : vector<8x32xf32> to vector<8xf32>
    %12 = vector.shape_cast %11 : vector<8xf32> to vector<8x1xf32>
    %cst_8 = arith.constant 0.0322580636 : f32
    %13 = vector.broadcast %cst_8 : f32 to vector<8x1xf32>
    %14 = arith.mulf %12, %13 : vector<8x1xf32>
    %15 = math.sqrt %14 : vector<8x1xf32>
    %cst_9 = arith.constant 9.99999997E-7 : f32
    %16 = vector.broadcast %cst_9 : f32 to vector<8x1xf32>
    %17 = arith.addf %15, %16 : vector<8x1xf32>
    %18 = tpu.reciprocal %17 : vector<8x1xf32> -> vector<8x1xf32>
    %19 = vector.broadcast %7 : vector<8x1xf32> to vector<8x32xf32>
    %20 = arith.subf %1, %19 : vector<8x32xf32>
    %21 = vector.broadcast %2 : vector<1x32xf32> to vector<8x32xf32>
    %22 = arith.mulf %21, %20 : vector<8x32xf32>
    %23 = vector.broadcast %18 : vector<8x1xf32> to vector<8x32xf32>
    %24 = arith.mulf %22, %23 : vector<8x32xf32>
    %25 = vector.broadcast %3 : vector<1x32xf32> to vector<8x32xf32>
    %26 = arith.addf %24, %25 : vector<8x32xf32>
    %c0_10 = arith.constant 0 : index
    %c0_11 = arith.constant 0 : index
    %c0_12 = arith.constant 0 : index
    %27 = vector.load %arg3[%c0_10, %c0_11, %c0_12] : memref<1x8x32xf32, #tpu.memory_space<vmem>>, vector<1x8x32xf32>
    %28 = vector.shape_cast %27 : vector<1x8x32xf32> to vector<8x32xf32>
    %c0_13 = arith.constant 0 : index
    %c0_14 = arith.constant 0 : index
    %29 = vector.load %arg4[%c0_13, %c0_14] : memref<1x32xf32, #tpu.memory_space<vmem>>, vector<1x32xf32>
    %c0_15 = arith.constant 0 : index
    %c0_16 = arith.constant 0 : index
    %30 = vector.load %arg5[%c0_15, %c0_16] : memref<1x32xf32, #tpu.memory_space<vmem>>, vector<1x32xf32>
    %cst_17 = arith.constant dense<0.000000e+00> : vector<8xf32>
    %31 = vector.multi_reduction <add>, %28, %cst_17 [1] : vector<8x32xf32> to vector<8xf32>
    %32 = vector.shape_cast %31 : vector<8xf32> to vector<8x1xf32>
    %cst_18 = arith.constant 3.200000e+01 : f32
    %33 = vector.broadcast %cst_18 : f32 to vector<8x1xf32>
    %34 = arith.divf %32, %33 : vector<8x1xf32>
    %35 = vector.broadcast %34 : vector<8x1xf32> to vector<8x32xf32>
    %36 = arith.subf %28, %35 : vector<8x32xf32>
    %37 = arith.mulf %36, %36 : vector<8x32xf32>
    %cst_19 = arith.constant dense<0.000000e+00> : vector<8xf32>
    %38 = vector.multi_reduction <add>, %37, %cst_19 [1] : vector<8x32xf32> to vector<8xf32>
    %39 = vector.shape_cast %38 : vector<8xf32> to vector<8x1xf32>
    %cst_20 = arith.constant 0.0322580636 : f32
    %40 = vector.broadcast %cst_20 : f32 to vector<8x1xf32>
    %41 = arith.mulf %39, %40 : vector<8x1xf32>
    %42 = math.sqrt %41 : vector<8x1xf32>
    %cst_21 = arith.constant 9.99999997E-7 : f32
    %43 = vector.broadcast %cst_21 : f32 to vector<8x1xf32>
    %44 = arith.addf %42, %43 : vector<8x1xf32>
    %45 = tpu.reciprocal %44 : vector<8x1xf32> -> vector<8x1xf32>
    %46 = vector.broadcast %34 : vector<8x1xf32> to vector<8x32xf32>
    %47 = arith.subf %28, %46 : vector<8x32xf32>
    %48 = vector.broadcast %29 : vector<1x32xf32> to vector<8x32xf32>
    %49 = arith.mulf %48, %47 : vector<8x32xf32>
    %50 = vector.broadcast %45 : vector<8x1xf32> to vector<8x32xf32>
    %51 = arith.mulf %49, %50 : vector<8x32xf32>
    %52 = vector.broadcast %30 : vector<1x32xf32> to vector<8x32xf32>
    %53 = arith.addf %51, %52 : vector<8x32xf32>
    %54 = arith.truncf %53 : vector<8x32xf32> to vector<8x32xbf16>
    %55 = arith.truncf %26 : vector<8x32xf32> to vector<8x32xbf16>
    %c0_22 = arith.constant 0 : index
    %c0_23 = arith.constant 0 : index
    %56 = vector.load %arg6[%c0_22, %c0_23] : memref<32x32xbf16, #tpu.memory_space<vmem>>, vector<32x32xbf16>
    %cst_24 = arith.constant dense<0.000000e+00> : vector<8x32xf32>
    %57 = tpu.matmul %55, %56, %cst_24 {dimension_numbers = #tpu.dot_dimension_numbers<[1], [0], [0], [1], [0, 0, 1, 1], [], []>} : vector<8x32xbf16>, vector<32x32xbf16>, vector<8x32xf32> -> vector<8x32xf32>
    %c0_25 = arith.constant 0 : index
    %c0_26 = arith.constant 0 : index
    %58 = vector.load %arg7[%c0_25, %c0_26] : memref<1x32xf32, #tpu.memory_space<vmem>>, vector<1x32xf32>
    %59 = vector.broadcast %58 : vector<1x32xf32> to vector<8x32xf32>
    %60 = arith.addf %57, %59 : vector<8x32xf32>
    %cst_27 = arith.constant 0.353553385 : f32
    %61 = vector.broadcast %cst_27 : f32 to vector<8x32xf32>
    %62 = arith.mulf %60, %61 : vector<8x32xf32>
    %c0_28 = arith.constant 0 : index
    %c0_29 = arith.constant 0 : index
    %63 = vector.load %arg8[%c0_28, %c0_29] : memref<32x64xbf16, #tpu.memory_space<vmem>>, vector<32x64xbf16>
    %cst_30 = arith.constant dense<0.000000e+00> : vector<8x64xf32>
    %64 = tpu.matmul %54, %63, %cst_30 {dimension_numbers = #tpu.dot_dimension_numbers<[1], [0], [0], [1], [0, 0, 1, 1], [], []>} : vector<8x32xbf16>, vector<32x64xbf16>, vector<8x64xf32> -> vector<8x64xf32>
    %c0_31 = arith.constant 0 : index
    %c0_32 = arith.constant 0 : index
    %65 = vector.load %arg9[%c0_31, %c0_32] : memref<1x64xf32, #tpu.memory_space<vmem>>, vector<1x64xf32>
    %66 = vector.broadcast %65 : vector<1x64xf32> to vector<8x64xf32>
    %67 = arith.addf %64, %66 : vector<8x64xf32>
    %68 = vector.extract_strided_slice %67 {offsets = [0, 0], sizes = [8, 32], strides = [1, 1]} : vector<8x64xf32> to vector<8x32xf32>
    %69 = vector.extract_strided_slice %67 {offsets = [0, 32], sizes = [8, 32], strides = [1, 1]} : vector<8x64xf32> to vector<8x32xf32>
    %c0_33 = arith.constant 0 : index
    %c0_34 = arith.constant 0 : index
    %c0_35 = arith.constant 0 : index
    %70 = vector.load %arg12[%c0_33, %c0_34, %c0_35] : memref<1x8x8xbf16, #tpu.memory_space<vmem>>, vector<1x8x8xbf16>
    %71 = vector.shape_cast %70 : vector<1x8x8xbf16> to vector<8x8xbf16>
    %72 = arith.extf %71 : vector<8x8xbf16> to vector<8x8xf32>
    %73 = vector.extract_strided_slice %62 {offsets = [0, 0], sizes = [8, 8], strides = [1, 1]} : vector<8x32xf32> to vector<8x8xf32>
    %74 = arith.truncf %73 : vector<8x8xf32> to vector<8x8xbf16>
    %75 = vector.extract_strided_slice %68 {offsets = [0, 0], sizes = [8, 8], strides = [1, 1]} : vector<8x32xf32> to vector<8x8xf32>
    %76 = arith.truncf %75 : vector<8x8xf32> to vector<8x8xbf16>
    %cst_36 = arith.constant dense<0.000000e+00> : vector<8x8xf32>
    %77 = tpu.matmul %74, %76, %cst_36 {dimension_numbers = #tpu.dot_dimension_numbers<[1], [1], [0], [0], [0, 0, 1, 0], [], []>} : vector<8x8xbf16>, vector<8x8xbf16>, vector<8x8xf32> -> vector<8x8xf32>
    %78 = arith.addf %77, %72 : vector<8x8xf32>
    %cst_37 = arith.constant dense<0xFF800000> : vector<8xf32>
    %79 = vector.multi_reduction <maximumf>, %78, %cst_37 [1] : vector<8x8xf32> to vector<8xf32>
    %80 = vector.shape_cast %79 : vector<8xf32> to vector<8x1xf32>
    %81 = vector.broadcast %80 : vector<8x1xf32> to vector<8x8xf32>
    %82 = arith.subf %78, %81 : vector<8x8xf32>
    %83 = math.exp %82 : vector<8x8xf32>
    %cst_38 = arith.constant dense<0.000000e+00> : vector<8xf32>
    %84 = vector.multi_reduction <add>, %83, %cst_38 [1] : vector<8x8xf32> to vector<8xf32>
    %85 = vector.shape_cast %84 : vector<8xf32> to vector<8x1xf32>
    %86 = tpu.reciprocal %85 {approx = true} : vector<8x1xf32> -> vector<8x1xf32>
    %87 = vector.broadcast %86 : vector<8x1xf32> to vector<8x8xf32>
    %88 = arith.mulf %83, %87 : vector<8x8xf32>
    %89 = vector.extract_strided_slice %69 {offsets = [0, 0], sizes = [8, 8], strides = [1, 1]} : vector<8x32xf32> to vector<8x8xf32>
    %90 = arith.truncf %89 : vector<8x8xf32> to vector<8x8xbf16>
    %91 = arith.truncf %88 : vector<8x8xf32> to vector<8x8xbf16>
    %cst_39 = arith.constant dense<0.000000e+00> : vector<8x8xf32>
    %92 = tpu.matmul %91, %90, %cst_39 {dimension_numbers = #tpu.dot_dimension_numbers<[1], [0], [0], [1], [0, 0, 1, 1], [], []>} : vector<8x8xbf16>, vector<8x8xbf16>, vector<8x8xf32> -> vector<8x8xf32>
    %93 = arith.truncf %92 : vector<8x8xf32> to vector<8x8xbf16>
    %c0_40 = arith.constant 0 : index
    %c0_41 = arith.constant 0 : index
    %94 = vector.load %arg14[%c0_40, %c0_41] : memref<8x32xbf16, #tpu.memory_space<vmem>>, vector<8x8xbf16>
    tpu.vector_store %arg14[%c0_40, %c0_41], %93 {strides = array<i32>} : memref<8x32xbf16, #tpu.memory_space<vmem>>, vector<8x8xbf16>,
    %95 = vector.extract_strided_slice %62 {offsets = [0, 8], sizes = [8, 8], strides = [1, 1]} : vector<8x32xf32> to vector<8x8xf32>
    %96 = arith.truncf %95 : vector<8x8xf32> to vector<8x8xbf16>
    %97 = vector.extract_strided_slice %68 {offsets = [0, 8], sizes = [8, 8], strides = [1, 1]} : vector<8x32xf32> to vector<8x8xf32>
    %98 = arith.truncf %97 : vector<8x8xf32> to vector<8x8xbf16>
    %cst_42 = arith.constant dense<0.000000e+00> : vector<8x8xf32>
    %99 = tpu.matmul %96, %98, %cst_42 {dimension_numbers = #tpu.dot_dimension_numbers<[1], [1], [0], [0], [0, 0, 1, 0], [], []>} : vector<8x8xbf16>, vector<8x8xbf16>, vector<8x8xf32> -> vector<8x8xf32>
    %100 = arith.addf %99, %72 : vector<8x8xf32>
    %cst_43 = arith.constant dense<0xFF800000> : vector<8xf32>
    %101 = vector.multi_reduction <maximumf>, %100, %cst_43 [1] : vector<8x8xf32> to vector<8xf32>
    %102 = vector.shape_cast %101 : vector<8xf32> to vector<8x1xf32>
    %103 = vector.broadcast %102 : vector<8x1xf32> to vector<8x8xf32>
    %104 = arith.subf %100, %103 : vector<8x8xf32>
    %105 = math.exp %104 : vector<8x8xf32>
    %cst_44 = arith.constant dense<0.000000e+00> : vector<8xf32>
    %106 = vector.multi_reduction <add>, %105, %cst_44 [1] : vector<8x8xf32> to vector<8xf32>
    %107 = vector.shape_cast %106 : vector<8xf32> to vector<8x1xf32>
    %108 = tpu.reciprocal %107 {approx = true} : vector<8x1xf32> -> vector<8x1xf32>
    %109 = vector.broadcast %108 : vector<8x1xf32> to vector<8x8xf32>
    %110 = arith.mulf %105, %109 : vector<8x8xf32>
    %111 = vector.extract_strided_slice %69 {offsets = [0, 8], sizes = [8, 8], strides = [1, 1]} : vector<8x32xf32> to vector<8x8xf32>
    %112 = arith.truncf %111 : vector<8x8xf32> to vector<8x8xbf16>
    %113 = arith.truncf %110 : vector<8x8xf32> to vector<8x8xbf16>
    %cst_45 = arith.constant dense<0.000000e+00> : vector<8x8xf32>
    %114 = tpu.matmul %113, %112, %cst_45 {dimension_numbers = #tpu.dot_dimension_numbers<[1], [0], [0], [1], [0, 0, 1, 1], [], []>} : vector<8x8xbf16>, vector<8x8xbf16>, vector<8x8xf32> -> vector<8x8xf32>
    %115 = arith.truncf %114 : vector<8x8xf32> to vector<8x8xbf16>
    %c0_46 = arith.constant 0 : index
    %c8 = arith.constant 8 : index
    %116 = vector.load %arg14[%c0_46, %c8] : memref<8x32xbf16, #tpu.memory_space<vmem>>, vector<8x8xbf16>
    tpu.vector_store %arg14[%c0_46, %c8], %115 {strides = array<i32>} : memref<8x32xbf16, #tpu.memory_space<vmem>>, vector<8x8xbf16>,
    %117 = vector.extract_strided_slice %62 {offsets = [0, 16], sizes = [8, 8], strides = [1, 1]} : vector<8x32xf32> to vector<8x8xf32>
    %118 = arith.truncf %117 : vector<8x8xf32> to vector<8x8xbf16>
    %119 = vector.extract_strided_slice %68 {offsets = [0, 16], sizes = [8, 8], strides = [1, 1]} : vector<8x32xf32> to vector<8x8xf32>
    %120 = arith.truncf %119 : vector<8x8xf32> to vector<8x8xbf16>
    %cst_47 = arith.constant dense<0.000000e+00> : vector<8x8xf32>
    %121 = tpu.matmul %118, %120, %cst_47 {dimension_numbers = #tpu.dot_dimension_numbers<[1], [1], [0], [0], [0, 0, 1, 0], [], []>} : vector<8x8xbf16>, vector<8x8xbf16>, vector<8x8xf32> -> vector<8x8xf32>
    %122 = arith.addf %121, %72 : vector<8x8xf32>
    %cst_48 = arith.constant dense<0xFF800000> : vector<8xf32>
    %123 = vector.multi_reduction <maximumf>, %122, %cst_48 [1] : vector<8x8xf32> to vector<8xf32>
    %124 = vector.shape_cast %123 : vector<8xf32> to vector<8x1xf32>
    %125 = vector.broadcast %124 : vector<8x1xf32> to vector<8x8xf32>
    %126 = arith.subf %122, %125 : vector<8x8xf32>
    %127 = math.exp %126 : vector<8x8xf32>
    %cst_49 = arith.constant dense<0.000000e+00> : vector<8xf32>
    %128 = vector.multi_reduction <add>, %127, %cst_49 [1] : vector<8x8xf32> to vector<8xf32>
    %129 = vector.shape_cast %128 : vector<8xf32> to vector<8x1xf32>
    %130 = tpu.reciprocal %129 {approx = true} : vector<8x1xf32> -> vector<8x1xf32>
    %131 = vector.broadcast %130 : vector<8x1xf32> to vector<8x8xf32>
    %132 = arith.mulf %127, %131 : vector<8x8xf32>
    %133 = vector.extract_strided_slice %69 {offsets = [0, 16], sizes = [8, 8], strides = [1, 1]} : vector<8x32xf32> to vector<8x8xf32>
    %134 = arith.truncf %133 : vector<8x8xf32> to vector<8x8xbf16>
    %135 = arith.truncf %132 : vector<8x8xf32> to vector<8x8xbf16>
    %cst_50 = arith.constant dense<0.000000e+00> : vector<8x8xf32>
    %136 = tpu.matmul %135, %134, %cst_50 {dimension_numbers = #tpu.dot_dimension_numbers<[1], [0], [0], [1], [0, 0, 1, 1], [], []>} : vector<8x8xbf16>, vector<8x8xbf16>, vector<8x8xf32> -> vector<8x8xf32>
    %137 = arith.truncf %136 : vector<8x8xf32> to vector<8x8xbf16>
    %c0_51 = arith.constant 0 : index
    %c16 = arith.constant 16 : index
    %138 = vector.load %arg14[%c0_51, %c16] : memref<8x32xbf16, #tpu.memory_space<vmem>>, vector<8x8xbf16>
    tpu.vector_store %arg14[%c0_51, %c16], %137 {strides = array<i32>} : memref<8x32xbf16, #tpu.memory_space<vmem>>, vector<8x8xbf16>,
    %139 = vector.extract_strided_slice %62 {offsets = [0, 24], sizes = [8, 8], strides = [1, 1]} : vector<8x32xf32> to vector<8x8xf32>
    %140 = arith.truncf %139 : vector<8x8xf32> to vector<8x8xbf16>
    %141 = vector.extract_strided_slice %68 {offsets = [0, 24], sizes = [8, 8], strides = [1, 1]} : vector<8x32xf32> to vector<8x8xf32>
    %142 = arith.truncf %141 : vector<8x8xf32> to vector<8x8xbf16>
    %cst_52 = arith.constant dense<0.000000e+00> : vector<8x8xf32>
    %143 = tpu.matmul %140, %142, %cst_52 {dimension_numbers = #tpu.dot_dimension_numbers<[1], [1], [0], [0], [0, 0, 1, 0], [], []>} : vector<8x8xbf16>, vector<8x8xbf16>, vector<8x8xf32> -> vector<8x8xf32>
    %144 = arith.addf %143, %72 : vector<8x8xf32>
    %cst_53 = arith.constant dense<0xFF800000> : vector<8xf32>
    %145 = vector.multi_reduction <maximumf>, %144, %cst_53 [1] : vector<8x8xf32> to vector<8xf32>
    %146 = vector.shape_cast %145 : vector<8xf32> to vector<8x1xf32>
    %147 = vector.broadcast %146 : vector<8x1xf32> to vector<8x8xf32>
    %148 = arith.subf %144, %147 : vector<8x8xf32>
    %149 = math.exp %148 : vector<8x8xf32>
    %cst_54 = arith.constant dense<0.000000e+00> : vector<8xf32>
    %150 = vector.multi_reduction <add>, %149, %cst_54 [1] : vector<8x8xf32> to vector<8xf32>
    %151 = vector.shape_cast %150 : vector<8xf32> to vector<8x1xf32>
    %152 = tpu.reciprocal %151 {approx = true} : vector<8x1xf32> -> vector<8x1xf32>
    %153 = vector.broadcast %152 : vector<8x1xf32> to vector<8x8xf32>
    %154 = arith.mulf %149, %153 : vector<8x8xf32>
    %155 = vector.extract_strided_slice %69 {offsets = [0, 24], sizes = [8, 8], strides = [1, 1]} : vector<8x32xf32> to vector<8x8xf32>
    %156 = arith.truncf %155 : vector<8x8xf32> to vector<8x8xbf16>
    %157 = arith.truncf %154 : vector<8x8xf32> to vector<8x8xbf16>
    %cst_55 = arith.constant dense<0.000000e+00> : vector<8x8xf32>
    %158 = tpu.matmul %157, %156, %cst_55 {dimension_numbers = #tpu.dot_dimension_numbers<[1], [0], [0], [1], [0, 0, 1, 1], [], []>} : vector<8x8xbf16>, vector<8x8xbf16>, vector<8x8xf32> -> vector<8x8xf32>
    %159 = arith.truncf %158 : vector<8x8xf32> to vector<8x8xbf16>
    %c0_56 = arith.constant 0 : index
    %c24 = arith.constant 24 : index
    %160 = vector.load %arg14[%c0_56, %c24] : memref<8x32xbf16, #tpu.memory_space<vmem>>, vector<8x8xbf16>
    tpu.vector_store %arg14[%c0_56, %c24], %159 {strides = array<i32>} : memref<8x32xbf16, #tpu.memory_space<vmem>>, vector<8x8xbf16>,
    %c0_57 = arith.constant 0 : index
    %c0_58 = arith.constant 0 : index
    %161 = vector.load %arg14[%c0_57, %c0_58] : memref<8x32xbf16, #tpu.memory_space<vmem>>, vector<8x32xbf16>
    %c0_59 = arith.constant 0 : index
    %c0_60 = arith.constant 0 : index
    %162 = vector.load %arg10[%c0_59, %c0_60] : memref<32x32xbf16, #tpu.memory_space<vmem>>, vector<32x32xbf16>
    %cst_61 = arith.constant dense<0.000000e+00> : vector<8x32xf32>
    %163 = tpu.matmul %161, %162, %cst_61 {dimension_numbers = #tpu.dot_dimension_numbers<[1], [0], [0], [1], [0, 0, 1, 1], [], []>} : vector<8x32xbf16>, vector<32x32xbf16>, vector<8x32xf32> -> vector<8x32xf32>
    %c0_62 = arith.constant 0 : index
    %c0_63 = arith.constant 0 : index
    %164 = vector.load %arg11[%c0_62, %c0_63] : memref<1x32xf32, #tpu.memory_space<vmem>>, vector<1x32xf32>
    %165 = vector.broadcast %164 : vector<1x32xf32> to vector<8x32xf32>
    %166 = arith.addf %163, %165 : vector<8x32xf32>
    %167 = arith.addf %1, %166 : vector<8x32xf32>
    %168 = arith.truncf %167 : vector<8x32xf32> to vector<8x32xbf16>
    %c0_64 = arith.constant 0 : index
    %c0_65 = arith.constant 0 : index
    %c0_66 = arith.constant 0 : index
    %169 = vector.load %arg13[%c0_64, %c0_65, %c0_66] : memref<1x8x32xbf16, #tpu.memory_space<vmem>>, vector<1x8x32xbf16>
    %170 = vector.shape_cast %169 : vector<1x8x32xbf16> to vector<8x32xbf16>
    %171 = vector.shape_cast %168 : vector<8x32xbf16> to vector<1x8x32xbf16>
    tpu.vector_store %arg13[%c0_64, %c0_65, %c0_66], %171 {strides = array<i32>} : memref<1x8x32xbf16, #tpu.memory_space<vmem>>, vector<1x8x32xbf16>,
    return
  }
  func.func @transform_0(%arg0: i32, %arg1: i32) -> (i32, i32, i32) {
    %c0_i32 = arith.constant 0 : i32
    %c0_i32_0 = arith.constant 0 : i32
    return %arg0, %arg1, %c0_i32 : i32, i32, i32
  }
  func.func @transform_1(%arg0: i32, %arg1: i32) -> (i32, i32, i32) {
    %c0_i32 = arith.constant 0 : i32
    %c0_i32_0 = arith.constant 0 : i32
    %c0_i32_1 = arith.constant 0 : i32
    return %arg0, %c0_i32, %c0_i32_0 : i32, i32, i32
  }
  func.func @transform_2(%arg0: i32, %arg1: i32) -> (i32, i32) {
    %c0_i32 = arith.constant 0 : i32
    %c0_i32_0 = arith.constant 0 : i32
    %c0_i32_1 = arith.constant 0 : i32
    return %c0_i32, %c0_i32_0 : i32, i32
  }
  func.func @transform_3(%arg0: i32, %arg1: i32) -> (i32, i32) {
    %c0_i32 = arith.constant 0 : i32
    %c0_i32_0 = arith.constant 0 : i32
    %c0_i32_1 = arith.constant 0 : i32
    return %c0_i32, %c0_i32_0 : i32, i32
  }
  func.func @transform_4(%arg0: i32, %arg1: i32) -> (i32, i32) {
    %c0_i32 = arith.constant 0 : i32
    %c0_i32_0 = arith.constant 0 : i32
    %c0_i32_1 = arith.constant 0 : i32
    return %c0_i32, %c0_i32_0 : i32, i32
  }
  func.func @transform_5(%arg0: i32, %arg1: i32) -> (i32, i32) {
    %c0_i32 = arith.constant 0 : i32
    %c0_i32_0 = arith.constant 0 : i32
    %c0_i32_1 = arith.constant 0 : i32
    return %c0_i32, %c0_i32_0 : i32, i32
  }
  func.func @transform_6(%arg0: i32, %arg1: i32) -> (i32, i32) {
    %c0_i32 = arith.constant 0 : i32
    %c0_i32_0 = arith.constant 0 : i32
    %c0_i32_1 = arith.constant 0 : i32
    return %c0_i32, %c0_i32_0 : i32, i32
  }
  func.func @transform_7(%arg0: i32, %arg1: i32) -> (i32, i32) {
    %c0_i32 = arith.constant 0 : i32
    %c0_i32_0 = arith.constant 0 : i32
    %c0_i32_1 = arith.constant 0 : i32
    return %c0_i32, %c0_i32_0 : i32, i32
  }
  func.func @transform_8(%arg0: i32, %arg1: i32) -> (i32, i32) {
    %c0_i32 = arith.constant 0 : i32
    %c0_i32_0 = arith.constant 0 : i32
    %c0_i32_1 = arith.constant 0 : i32
    return %c0_i32, %c0_i32_0 : i32, i32
  }
  func.func @transform_9(%arg0: i32, %arg1: i32) -> (i32, i32) {
    %c0_i32 = arith.constant 0 : i32
    %c0_i32_0 = arith.constant 0 : i32
    %c0_i32_1 = arith.constant 0 : i32
    return %c0_i32, %c0_i32_0 : i32, i32
  }
  func.func @transform_10(%arg0: i32, %arg1: i32) -> (i32, i32, i32) {
    %c0_i32 = arith.constant 0 : i32
    %c0_i32_0 = arith.constant 0 : i32
    %c0_i32_1 = arith.constant 0 : i32
    return %c0_i32, %arg1, %c0_i32_0 : i32, i32, i32
  }
  func.func @transform_11(%arg0: i32, %arg1: i32) -> (i32, i32, i32) {
    %c0_i32 = arith.constant 0 : i32
    %c0_i32_0 = arith.constant 0 : i32
    return %arg0, %arg1, %c0_i32 : i32, i32, i32
  }
}

module attributes {stable_mosaic.version = 11 : i64} {
  func.func @_ffn_block_kernel(%arg0: i32, %arg1: memref<8x32xbf16, #tpu.memory_space<vmem>>, %arg2: memref<1x32xf32, #tpu.memory_space<vmem>>, %arg3: memref<1x32xf32, #tpu.memory_space<vmem>>, %arg4: memref<32x64xbf16, #tpu.memory_space<vmem>>, %arg5: memref<1x64xf32, #tpu.memory_space<vmem>>, %arg6: memref<64x32xbf16, #tpu.memory_space<vmem>>, %arg7: memref<1x32xf32, #tpu.memory_space<vmem>>, %arg8: memref<8x32xbf16, #tpu.memory_space<vmem>>) attributes {dimension_semantics = [#tpu.dimension_semantics<parallel>], iteration_bounds = array<i64: 2>, scalar_prefetch = 0 : i64, scratch_operands = 0 : i64, tpu.core_type = #tpu.core_type<tc>, window_params = [{transform_indices = @transform_0, window_bounds = array<i64: 8, 32>}, {pipeline_mode = #tpu.pipeline_mode<synchronous>, transform_indices = @transform_1, window_bounds = array<i64: 1, 32>}, {pipeline_mode = #tpu.pipeline_mode<synchronous>, transform_indices = @transform_2, window_bounds = array<i64: 1, 32>}, {pipeline_mode = #tpu.pipeline_mode<synchronous>, transform_indices = @transform_3, window_bounds = array<i64: 32, 64>}, {pipeline_mode = #tpu.pipeline_mode<synchronous>, transform_indices = @transform_4, window_bounds = array<i64: 1, 64>}, {pipeline_mode = #tpu.pipeline_mode<synchronous>, transform_indices = @transform_5, window_bounds = array<i64: 64, 32>}, {pipeline_mode = #tpu.pipeline_mode<synchronous>, transform_indices = @transform_6, window_bounds = array<i64: 1, 32>}, {transform_indices = @transform_7, window_bounds = array<i64: 8, 32>}]} {
    %c0 = arith.constant 0 : index
    %c0_0 = arith.constant 0 : index
    %0 = vector.load %arg1[%c0, %c0_0] : memref<8x32xbf16, #tpu.memory_space<vmem>>, vector<8x32xbf16>
    %1 = arith.extf %0 : vector<8x32xbf16> to vector<8x32xf32>
    %c0_1 = arith.constant 0 : index
    %c0_2 = arith.constant 0 : index
    %2 = vector.load %arg2[%c0_1, %c0_2] : memref<1x32xf32, #tpu.memory_space<vmem>>, vector<1x32xf32>
    %c0_3 = arith.constant 0 : index
    %c0_4 = arith.constant 0 : index
    %3 = vector.load %arg3[%c0_3, %c0_4] : memref<1x32xf32, #tpu.memory_space<vmem>>, vector<1x32xf32>
    %cst = arith.constant dense<0.000000e+00> : vector<8xf32>
    %4 = vector.multi_reduction <add>, %1, %cst [1] : vector<8x32xf32> to vector<8xf32>
    %5 = vector.shape_cast %4 : vector<8xf32> to vector<8x1xf32>
    %cst_5 = arith.constant 3.200000e+01 : f32
    %6 = vector.broadcast %cst_5 : f32 to vector<8x1xf32>
    %7 = arith.divf %5, %6 : vector<8x1xf32>
    %8 = vector.broadcast %7 : vector<8x1xf32> to vector<8x32xf32>
    %9 = arith.subf %1, %8 : vector<8x32xf32>
    %10 = arith.mulf %9, %9 : vector<8x32xf32>
    %cst_6 = arith.constant dense<0.000000e+00> : vector<8xf32>
    %11 = vector.multi_reduction <add>, %10, %cst_6 [1] : vector<8x32xf32> to vector<8xf32>
    %12 = vector.shape_cast %11 : vector<8xf32> to vector<8x1xf32>
    %cst_7 = arith.constant 0.0322580636 : f32
    %13 = vector.broadcast %cst_7 : f32 to vector<8x1xf32>
    %14 = arith.mulf %12, %13 : vector<8x1xf32>
    %15 = math.sqrt %14 : vector<8x1xf32>
    %cst_8 = arith.constant 9.99999997E-7 : f32
    %16 = vector.broadcast %cst_8 : f32 to vector<8x1xf32>
    %17 = arith.addf %15, %16 : vector<8x1xf32>
    %18 = tpu.reciprocal %17 : vector<8x1xf32> -> vector<8x1xf32>
    %19 = vector.broadcast %7 : vector<8x1xf32> to vector<8x32xf32>
    %20 = arith.subf %1, %19 : vector<8x32xf32>
    %21 = vector.broadcast %2 : vector<1x32xf32> to vector<8x32xf32>
    %22 = arith.mulf %21, %20 : vector<8x32xf32>
    %23 = vector.broadcast %18 : vector<8x1xf32> to vector<8x32xf32>
    %24 = arith.mulf %22, %23 : vector<8x32xf32>
    %25 = vector.broadcast %3 : vector<1x32xf32> to vector<8x32xf32>
    %26 = arith.addf %24, %25 : vector<8x32xf32>
    %27 = arith.truncf %26 : vector<8x32xf32> to vector<8x32xbf16>
    %c0_9 = arith.constant 0 : index
    %c0_10 = arith.constant 0 : index
    %28 = vector.load %arg4[%c0_9, %c0_10] : memref<32x64xbf16, #tpu.memory_space<vmem>>, vector<32x64xbf16>
    %cst_11 = arith.constant dense<0.000000e+00> : vector<8x64xf32>
    %29 = tpu.matmul %27, %28, %cst_11 {dimension_numbers = #tpu.dot_dimension_numbers<[1], [0], [0], [1], [0, 0, 1, 1], [], []>} : vector<8x32xbf16>, vector<32x64xbf16>, vector<8x64xf32> -> vector<8x64xf32>
    %c0_12 = arith.constant 0 : index
    %c0_13 = arith.constant 0 : index
    %30 = vector.load %arg5[%c0_12, %c0_13] : memref<1x64xf32, #tpu.memory_space<vmem>>, vector<1x64xf32>
    %31 = vector.broadcast %30 : vector<1x64xf32> to vector<8x64xf32>
    %32 = arith.addf %29, %31 : vector<8x64xf32>
    %cst_14 = arith.constant 0.000000e+00 : f32
    %33 = vector.broadcast %cst_14 : f32 to vector<8x64xf32>
    %34 = arith.maximumf %32, %33 : vector<8x64xf32>
    %35 = arith.truncf %34 : vector<8x64xf32> to vector<8x64xbf16>
    %c0_15 = arith.constant 0 : index
    %c0_16 = arith.constant 0 : index
    %36 = vector.load %arg6[%c0_15, %c0_16] : memref<64x32xbf16, #tpu.memory_space<vmem>>, vector<64x32xbf16>
    %cst_17 = arith.constant dense<0.000000e+00> : vector<8x32xf32>
    %37 = tpu.matmul %35, %36, %cst_17 {dimension_numbers = #tpu.dot_dimension_numbers<[1], [0], [0], [1], [0, 0, 1, 1], [], []>} : vector<8x64xbf16>, vector<64x32xbf16>, vector<8x32xf32> -> vector<8x32xf32>
    %c0_18 = arith.constant 0 : index
    %c0_19 = arith.constant 0 : index
    %38 = vector.load %arg7[%c0_18, %c0_19] : memref<1x32xf32, #tpu.memory_space<vmem>>, vector<1x32xf32>
    %39 = vector.broadcast %38 : vector<1x32xf32> to vector<8x32xf32>
    %40 = arith.addf %37, %39 : vector<8x32xf32>
    %41 = arith.addf %1, %40 : vector<8x32xf32>
    %42 = arith.truncf %41 : vector<8x32xf32> to vector<8x32xbf16>
    %c0_20 = arith.constant 0 : index
    %c0_21 = arith.constant 0 : index
    %43 = vector.load %arg8[%c0_20, %c0_21] : memref<8x32xbf16, #tpu.memory_space<vmem>>, vector<8x32xbf16>
    tpu.vector_store %arg8[%c0_20, %c0_21], %42 {strides = array<i32>} : memref<8x32xbf16, #tpu.memory_space<vmem>>, vector<8x32xbf16>,
    return
  }
  func.func @transform_0(%arg0: i32) -> (i32, i32) {
    %c0_i32 = arith.constant 0 : i32
    %c0_i32_0 = arith.constant 0 : i32
    return %arg0, %c0_i32 : i32, i32
  }
  func.func @transform_1(%arg0: i32) -> (i32, i32) {
    %c0_i32 = arith.constant 0 : i32
    %c0_i32_0 = arith.constant 0 : i32
    %c0_i32_1 = arith.constant 0 : i32
    return %c0_i32, %c0_i32_0 : i32, i32
  }
  func.func @transform_2(%arg0: i32) -> (i32, i32) {
    %c0_i32 = arith.constant 0 : i32
    %c0_i32_0 = arith.constant 0 : i32
    %c0_i32_1 = arith.constant 0 : i32
    return %c0_i32, %c0_i32_0 : i32, i32
  }
  func.func @transform_3(%arg0: i32) -> (i32, i32) {
    %c0_i32 = arith.constant 0 : i32
    %c0_i32_0 = arith.constant 0 : i32
    %c0_i32_1 = arith.constant 0 : i32
    return %c0_i32, %c0_i32_0 : i32, i32
  }
  func.func @transform_4(%arg0: i32) -> (i32, i32) {
    %c0_i32 = arith.constant 0 : i32
    %c0_i32_0 = arith.constant 0 : i32
    %c0_i32_1 = arith.constant 0 : i32
    return %c0_i32, %c0_i32_0 : i32, i32
  }
  func.func @transform_5(%arg0: i32) -> (i32, i32) {
    %c0_i32 = arith.constant 0 : i32
    %c0_i32_0 = arith.constant 0 : i32
    %c0_i32_1 = arith.constant 0 : i32
    return %c0_i32, %c0_i32_0 : i32, i32
  }
  func.func @transform_6(%arg0: i32) -> (i32, i32) {
    %c0_i32 = arith.constant 0 : i32
    %c0_i32_0 = arith.constant 0 : i32
    %c0_i32_1 = arith.constant 0 : i32
    return %c0_i32, %c0_i32_0 : i32, i32
  }
  func.func @transform_7(%arg0: i32) -> (i32, i32) {
    %c0_i32 = arith.constant 0 : i32
    %c0_i32_0 = arith.constant 0 : i32
    return %arg0, %c0_i32 : i32, i32
  }
}

module attributes {stable_mosaic.version = 11 : i64} {
  func.func @_attn_block_kernel(%arg0: i32, %arg1: i32, %arg2: memref<1x8x32xbf16, #tpu.memory_space<vmem>>, %arg3: memref<1x8x32xbf16, #tpu.memory_space<vmem>>, %arg4: memref<1x32xf32, #tpu.memory_space<vmem>>, %arg5: memref<1x32xf32, #tpu.memory_space<vmem>>, %arg6: memref<32x32xbf16, #tpu.memory_space<vmem>>, %arg7: memref<1x32xf32, #tpu.memory_space<vmem>>, %arg8: memref<32x64xbf16, #tpu.memory_space<vmem>>, %arg9: memref<1x64xf32, #tpu.memory_space<vmem>>, %arg10: memref<32x32xbf16, #tpu.memory_space<vmem>>, %arg11: memref<1x32xf32, #tpu.memory_space<vmem>>, %arg12: memref<1x8x8xbf16, #tpu.memory_space<vmem>>, %arg13: memref<1x8x32xbf16, #tpu.memory_space<vmem>>, %arg14: memref<8x32xbf16, #tpu.memory_space<vmem>>) attributes {dimension_semantics = [#tpu.dimension_semantics<parallel>, #tpu.dimension_semantics<parallel>], iteration_bounds = array<i64: 2, 1>, scalar_prefetch = 0 : i64, scratch_operands = 1 : i64, tpu.core_type = #tpu.core_type<tc>, window_params = [{transform_indices = @transform_0, window_bounds = array<i64: 1, 8, 32>}, {transform_indices = @transform_1, window_bounds = array<i64: 1, 8, 32>}, {pipeline_mode = #tpu.pipeline_mode<synchronous>, transform_indices = @transform_2, window_bounds = array<i64: 1, 32>}, {pipeline_mode = #tpu.pipeline_mode<synchronous>, transform_indices = @transform_3, window_bounds = array<i64: 1, 32>}, {pipeline_mode = #tpu.pipeline_mode<synchronous>, transform_indices = @transform_4, window_bounds = array<i64: 32, 32>}, {pipeline_mode = #tpu.pipeline_mode<synchronous>, transform_indices = @transform_5, window_bounds = array<i64: 1, 32>}, {pipeline_mode = #tpu.pipeline_mode<synchronous>, transform_indices = @transform_6, window_bounds = array<i64: 32, 64>}, {pipeline_mode = #tpu.pipeline_mode<synchronous>, transform_indices = @transform_7, window_bounds = array<i64: 1, 64>}, {pipeline_mode = #tpu.pipeline_mode<synchronous>, transform_indices = @transform_8, window_bounds = array<i64: 32, 32>}, {pipeline_mode = #tpu.pipeline_mode<synchronous>, transform_indices = @transform_9, window_bounds = array<i64: 1, 32>}, {transform_indices = @transform_10, window_bounds = array<i64: 1, 8, 8>}, {transform_indices = @transform_11, window_bounds = array<i64: 1, 8, 32>}]} {
    %c0 = arith.constant 0 : index
    %c0_0 = arith.constant 0 : index
    %c0_1 = arith.constant 0 : index
    %0 = vector.load %arg2[%c0, %c0_0, %c0_1] : memref<1x8x32xbf16, #tpu.memory_space<vmem>>, vector<1x8x32xbf16>
    %1 = vector.shape_cast %0 : vector<1x8x32xbf16> to vector<8x32xbf16>
    %2 = arith.extf %1 : vector<8x32xbf16> to vector<8x32xf32>
    %c0_2 = arith.constant 0 : index
    %c0_3 = arith.constant 0 : index
    %3 = vector.load %arg4[%c0_2, %c0_3] : memref<1x32xf32, #tpu.memory_space<vmem>>, vector<1x32xf32>
    %c0_4 = arith.constant 0 : index
    %c0_5 = arith.constant 0 : index
    %4 = vector.load %arg5[%c0_4, %c0_5] : memref<1x32xf32, #tpu.memory_space<vmem>>, vector<1x32xf32>
    %cst = arith.constant dense<0.000000e+00> : vector<8xf32>
    %5 = vector.multi_reduction <add>, %2, %cst [1] : vector<8x32xf32> to vector<8xf32>
    %6 = vector.shape_cast %5 : vector<8xf32> to vector<8x1xf32>
    %cst_6 = arith.constant 3.200000e+01 : f32
    %7 = vector.broadcast %cst_6 : f32 to vector<8x1xf32>
    %8 = arith.divf %6, %7 : vector<8x1xf32>
    %9 = vector.broadcast %8 : vector<8x1xf32> to vector<8x32xf32>
    %10 = arith.subf %2, %9 : vector<8x32xf32>
    %11 = arith.mulf %10, %10 : vector<8x32xf32>
    %cst_7 = arith.constant dense<0.000000e+00> : vector<8xf32>
    %12 = vector.multi_reduction <add>, %11, %cst_7 [1] : vector<8x32xf32> to vector<8xf32>
    %13 = vector.shape_cast %12 : vector<8xf32> to vector<8x1xf32>
    %cst_8 = arith.constant 0.0322580636 : f32
    %14 = vector.broadcast %cst_8 : f32 to vector<8x1xf32>
    %15 = arith.mulf %13, %14 : vector<8x1xf32>
    %16 = math.sqrt %15 : vector<8x1xf32>
    %cst_9 = arith.constant 9.99999997E-7 : f32
    %17 = vector.broadcast %cst_9 : f32 to vector<8x1xf32>
    %18 = arith.addf %16, %17 : vector<8x1xf32>
    %19 = tpu.reciprocal %18 : vector<8x1xf32> -> vector<8x1xf32>
    %20 = vector.broadcast %8 : vector<8x1xf32> to vector<8x32xf32>
    %21 = arith.subf %2, %20 : vector<8x32xf32>
    %22 = vector.broadcast %3 : vector<1x32xf32> to vector<8x32xf32>
    %23 = arith.mulf %22, %21 : vector<8x32xf32>
    %24 = vector.broadcast %19 : vector<8x1xf32> to vector<8x32xf32>
    %25 = arith.mulf %23, %24 : vector<8x32xf32>
    %26 = vector.broadcast %4 : vector<1x32xf32> to vector<8x32xf32>
    %27 = arith.addf %25, %26 : vector<8x32xf32>
    %c0_10 = arith.constant 0 : index
    %c0_11 = arith.constant 0 : index
    %c0_12 = arith.constant 0 : index
    %28 = vector.load %arg3[%c0_10, %c0_11, %c0_12] : memref<1x8x32xbf16, #tpu.memory_space<vmem>>, vector<1x8x32xbf16>
    %29 = vector.shape_cast %28 : vector<1x8x32xbf16> to vector<8x32xbf16>
    %30 = arith.truncf %27 : vector<8x32xf32> to vector<8x32xbf16>
    %c0_13 = arith.constant 0 : index
    %c0_14 = arith.constant 0 : index
    %31 = vector.load %arg6[%c0_13, %c0_14] : memref<32x32xbf16, #tpu.memory_space<vmem>>, vector<32x32xbf16>
    %cst_15 = arith.constant dense<0.000000e+00> : vector<8x32xf32>
    %32 = tpu.matmul %30, %31, %cst_15 {dimension_numbers = #tpu.dot_dimension_numbers<[1], [0], [0], [1], [0, 0, 1, 1], [], []>} : vector<8x32xbf16>, vector<32x32xbf16>, vector<8x32xf32> -> vector<8x32xf32>
    %c0_16 = arith.constant 0 : index
    %c0_17 = arith.constant 0 : index
    %33 = vector.load %arg7[%c0_16, %c0_17] : memref<1x32xf32, #tpu.memory_space<vmem>>, vector<1x32xf32>
    %34 = vector.broadcast %33 : vector<1x32xf32> to vector<8x32xf32>
    %35 = arith.addf %32, %34 : vector<8x32xf32>
    %cst_18 = arith.constant 0.353553385 : f32
    %36 = vector.broadcast %cst_18 : f32 to vector<8x32xf32>
    %37 = arith.mulf %35, %36 : vector<8x32xf32>
    %c0_19 = arith.constant 0 : index
    %c0_20 = arith.constant 0 : index
    %38 = vector.load %arg8[%c0_19, %c0_20] : memref<32x64xbf16, #tpu.memory_space<vmem>>, vector<32x64xbf16>
    %cst_21 = arith.constant dense<0.000000e+00> : vector<8x64xf32>
    %39 = tpu.matmul %29, %38, %cst_21 {dimension_numbers = #tpu.dot_dimension_numbers<[1], [0], [0], [1], [0, 0, 1, 1], [], []>} : vector<8x32xbf16>, vector<32x64xbf16>, vector<8x64xf32> -> vector<8x64xf32>
    %c0_22 = arith.constant 0 : index
    %c0_23 = arith.constant 0 : index
    %40 = vector.load %arg9[%c0_22, %c0_23] : memref<1x64xf32, #tpu.memory_space<vmem>>, vector<1x64xf32>
    %41 = vector.broadcast %40 : vector<1x64xf32> to vector<8x64xf32>
    %42 = arith.addf %39, %41 : vector<8x64xf32>
    %43 = vector.extract_strided_slice %42 {offsets = [0, 0], sizes = [8, 32], strides = [1, 1]} : vector<8x64xf32> to vector<8x32xf32>
    %44 = vector.extract_strided_slice %42 {offsets = [0, 32], sizes = [8, 32], strides = [1, 1]} : vector<8x64xf32> to vector<8x32xf32>
    %c0_24 = arith.constant 0 : index
    %c0_25 = arith.constant 0 : index
    %c0_26 = arith.constant 0 : index
    %45 = vector.load %arg12[%c0_24, %c0_25, %c0_26] : memref<1x8x8xbf16, #tpu.memory_space<vmem>>, vector<1x8x8xbf16>
    %46 = vector.shape_cast %45 : vector<1x8x8xbf16> to vector<8x8xbf16>
    %47 = arith.extf %46 : vector<8x8xbf16> to vector<8x8xf32>
    %48 = vector.extract_strided_slice %37 {offsets = [0, 0], sizes = [8, 8], strides = [1, 1]} : vector<8x32xf32> to vector<8x8xf32>
    %49 = arith.truncf %48 : vector<8x8xf32> to vector<8x8xbf16>
    %50 = vector.extract_strided_slice %43 {offsets = [0, 0], sizes = [8, 8], strides = [1, 1]} : vector<8x32xf32> to vector<8x8xf32>
    %51 = arith.truncf %50 : vector<8x8xf32> to vector<8x8xbf16>
    %cst_27 = arith.constant dense<0.000000e+00> : vector<8x8xf32>
    %52 = tpu.matmul %49, %51, %cst_27 {dimension_numbers = #tpu.dot_dimension_numbers<[1], [1], [0], [0], [0, 0, 1, 0], [], []>} : vector<8x8xbf16>, vector<8x8xbf16>, vector<8x8xf32> -> vector<8x8xf32>
    %53 = arith.addf %52, %47 : vector<8x8xf32>
    %cst_28 = arith.constant dense<0xFF800000> : vector<8xf32>
    %54 = vector.multi_reduction <maximumf>, %53, %cst_28 [1] : vector<8x8xf32> to vector<8xf32>
    %55 = vector.shape_cast %54 : vector<8xf32> to vector<8x1xf32>
    %56 = vector.broadcast %55 : vector<8x1xf32> to vector<8x8xf32>
    %57 = arith.subf %53, %56 : vector<8x8xf32>
    %58 = math.exp %57 : vector<8x8xf32>
    %cst_29 = arith.constant dense<0.000000e+00> : vector<8xf32>
    %59 = vector.multi_reduction <add>, %58, %cst_29 [1] : vector<8x8xf32> to vector<8xf32>
    %60 = vector.shape_cast %59 : vector<8xf32> to vector<8x1xf32>
    %61 = tpu.reciprocal %60 {approx = true} : vector<8x1xf32> -> vector<8x1xf32>
    %62 = vector.broadcast %61 : vector<8x1xf32> to vector<8x8xf32>
    %63 = arith.mulf %58, %62 : vector<8x8xf32>
    %64 = vector.extract_strided_slice %44 {offsets = [0, 0], sizes = [8, 8], strides = [1, 1]} : vector<8x32xf32> to vector<8x8xf32>
    %65 = arith.truncf %64 : vector<8x8xf32> to vector<8x8xbf16>
    %66 = arith.truncf %63 : vector<8x8xf32> to vector<8x8xbf16>
    %cst_30 = arith.constant dense<0.000000e+00> : vector<8x8xf32>
    %67 = tpu.matmul %66, %65, %cst_30 {dimension_numbers = #tpu.dot_dimension_numbers<[1], [0], [0], [1], [0, 0, 1, 1], [], []>} : vector<8x8xbf16>, vector<8x8xbf16>, vector<8x8xf32> -> vector<8x8xf32>
    %68 = arith.truncf %67 : vector<8x8xf32> to vector<8x8xbf16>
    %c0_31 = arith.constant 0 : index
    %c0_32 = arith.constant 0 : index
    %69 = vector.load %arg14[%c0_31, %c0_32] : memref<8x32xbf16, #tpu.memory_space<vmem>>, vector<8x8xbf16>
    tpu.vector_store %arg14[%c0_31, %c0_32], %68 {strides = array<i32>} : memref<8x32xbf16, #tpu.memory_space<vmem>>, vector<8x8xbf16>,
    %70 = vector.extract_strided_slice %37 {offsets = [0, 8], sizes = [8, 8], strides = [1, 1]} : vector<8x32xf32> to vector<8x8xf32>
    %71 = arith.truncf %70 : vector<8x8xf32> to vector<8x8xbf16>
    %72 = vector.extract_strided_slice %43 {offsets = [0, 8], sizes = [8, 8], strides = [1, 1]} : vector<8x32xf32> to vector<8x8xf32>
    %73 = arith.truncf %72 : vector<8x8xf32> to vector<8x8xbf16>
    %cst_33 = arith.constant dense<0.000000e+00> : vector<8x8xf32>
    %74 = tpu.matmul %71, %73, %cst_33 {dimension_numbers = #tpu.dot_dimension_numbers<[1], [1], [0], [0], [0, 0, 1, 0], [], []>} : vector<8x8xbf16>, vector<8x8xbf16>, vector<8x8xf32> -> vector<8x8xf32>
    %75 = arith.addf %74, %47 : vector<8x8xf32>
    %cst_34 = arith.constant dense<0xFF800000> : vector<8xf32>
    %76 = vector.multi_reduction <maximumf>, %75, %cst_34 [1] : vector<8x8xf32> to vector<8xf32>
    %77 = vector.shape_cast %76 : vector<8xf32> to vector<8x1xf32>
    %78 = vector.broadcast %77 : vector<8x1xf32> to vector<8x8xf32>
    %79 = arith.subf %75, %78 : vector<8x8xf32>
    %80 = math.exp %79 : vector<8x8xf32>
    %cst_35 = arith.constant dense<0.000000e+00> : vector<8xf32>
    %81 = vector.multi_reduction <add>, %80, %cst_35 [1] : vector<8x8xf32> to vector<8xf32>
    %82 = vector.shape_cast %81 : vector<8xf32> to vector<8x1xf32>
    %83 = tpu.reciprocal %82 {approx = true} : vector<8x1xf32> -> vector<8x1xf32>
    %84 = vector.broadcast %83 : vector<8x1xf32> to vector<8x8xf32>
    %85 = arith.mulf %80, %84 : vector<8x8xf32>
    %86 = vector.extract_strided_slice %44 {offsets = [0, 8], sizes = [8, 8], strides = [1, 1]} : vector<8x32xf32> to vector<8x8xf32>
    %87 = arith.truncf %86 : vector<8x8xf32> to vector<8x8xbf16>
    %88 = arith.truncf %85 : vector<8x8xf32> to vector<8x8xbf16>
    %cst_36 = arith.constant dense<0.000000e+00> : vector<8x8xf32>
    %89 = tpu.matmul %88, %87, %cst_36 {dimension_numbers = #tpu.dot_dimension_numbers<[1], [0], [0], [1], [0, 0, 1, 1], [], []>} : vector<8x8xbf16>, vector<8x8xbf16>, vector<8x8xf32> -> vector<8x8xf32>
    %90 = arith.truncf %89 : vector<8x8xf32> to vector<8x8xbf16>
    %c0_37 = arith.constant 0 : index
    %c8 = arith.constant 8 : index
    %91 = vector.load %arg14[%c0_37, %c8] : memref<8x32xbf16, #tpu.memory_space<vmem>>, vector<8x8xbf16>
    tpu.vector_store %arg14[%c0_37, %c8], %90 {strides = array<i32>} : memref<8x32xbf16, #tpu.memory_space<vmem>>, vector<8x8xbf16>,
    %92 = vector.extract_strided_slice %37 {offsets = [0, 16], sizes = [8, 8], strides = [1, 1]} : vector<8x32xf32> to vector<8x8xf32>
    %93 = arith.truncf %92 : vector<8x8xf32> to vector<8x8xbf16>
    %94 = vector.extract_strided_slice %43 {offsets = [0, 16], sizes = [8, 8], strides = [1, 1]} : vector<8x32xf32> to vector<8x8xf32>
    %95 = arith.truncf %94 : vector<8x8xf32> to vector<8x8xbf16>
    %cst_38 = arith.constant dense<0.000000e+00> : vector<8x8xf32>
    %96 = tpu.matmul %93, %95, %cst_38 {dimension_numbers = #tpu.dot_dimension_numbers<[1], [1], [0], [0], [0, 0, 1, 0], [], []>} : vector<8x8xbf16>, vector<8x8xbf16>, vector<8x8xf32> -> vector<8x8xf32>
    %97 = arith.addf %96, %47 : vector<8x8xf32>
    %cst_39 = arith.constant dense<0xFF800000> : vector<8xf32>
    %98 = vector.multi_reduction <maximumf>, %97, %cst_39 [1] : vector<8x8xf32> to vector<8xf32>
    %99 = vector.shape_cast %98 : vector<8xf32> to vector<8x1xf32>
    %100 = vector.broadcast %99 : vector<8x1xf32> to vector<8x8xf32>
    %101 = arith.subf %97, %100 : vector<8x8xf32>
    %102 = math.exp %101 : vector<8x8xf32>
    %cst_40 = arith.constant dense<0.000000e+00> : vector<8xf32>
    %103 = vector.multi_reduction <add>, %102, %cst_40 [1] : vector<8x8xf32> to vector<8xf32>
    %104 = vector.shape_cast %103 : vector<8xf32> to vector<8x1xf32>
    %105 = tpu.reciprocal %104 {approx = true} : vector<8x1xf32> -> vector<8x1xf32>
    %106 = vector.broadcast %105 : vector<8x1xf32> to vector<8x8xf32>
    %107 = arith.mulf %102, %106 : vector<8x8xf32>
    %108 = vector.extract_strided_slice %44 {offsets = [0, 16], sizes = [8, 8], strides = [1, 1]} : vector<8x32xf32> to vector<8x8xf32>
    %109 = arith.truncf %108 : vector<8x8xf32> to vector<8x8xbf16>
    %110 = arith.truncf %107 : vector<8x8xf32> to vector<8x8xbf16>
    %cst_41 = arith.constant dense<0.000000e+00> : vector<8x8xf32>
    %111 = tpu.matmul %110, %109, %cst_41 {dimension_numbers = #tpu.dot_dimension_numbers<[1], [0], [0], [1], [0, 0, 1, 1], [], []>} : vector<8x8xbf16>, vector<8x8xbf16>, vector<8x8xf32> -> vector<8x8xf32>
    %112 = arith.truncf %111 : vector<8x8xf32> to vector<8x8xbf16>
    %c0_42 = arith.constant 0 : index
    %c16 = arith.constant 16 : index
    %113 = vector.load %arg14[%c0_42, %c16] : memref<8x32xbf16, #tpu.memory_space<vmem>>, vector<8x8xbf16>
    tpu.vector_store %arg14[%c0_42, %c16], %112 {strides = array<i32>} : memref<8x32xbf16, #tpu.memory_space<vmem>>, vector<8x8xbf16>,
    %114 = vector.extract_strided_slice %37 {offsets = [0, 24], sizes = [8, 8], strides = [1, 1]} : vector<8x32xf32> to vector<8x8xf32>
    %115 = arith.truncf %114 : vector<8x8xf32> to vector<8x8xbf16>
    %116 = vector.extract_strided_slice %43 {offsets = [0, 24], sizes = [8, 8], strides = [1, 1]} : vector<8x32xf32> to vector<8x8xf32>
    %117 = arith.truncf %116 : vector<8x8xf32> to vector<8x8xbf16>
    %cst_43 = arith.constant dense<0.000000e+00> : vector<8x8xf32>
    %118 = tpu.matmul %115, %117, %cst_43 {dimension_numbers = #tpu.dot_dimension_numbers<[1], [1], [0], [0], [0, 0, 1, 0], [], []>} : vector<8x8xbf16>, vector<8x8xbf16>, vector<8x8xf32> -> vector<8x8xf32>
    %119 = arith.addf %118, %47 : vector<8x8xf32>
    %cst_44 = arith.constant dense<0xFF800000> : vector<8xf32>
    %120 = vector.multi_reduction <maximumf>, %119, %cst_44 [1] : vector<8x8xf32> to vector<8xf32>
    %121 = vector.shape_cast %120 : vector<8xf32> to vector<8x1xf32>
    %122 = vector.broadcast %121 : vector<8x1xf32> to vector<8x8xf32>
    %123 = arith.subf %119, %122 : vector<8x8xf32>
    %124 = math.exp %123 : vector<8x8xf32>
    %cst_45 = arith.constant dense<0.000000e+00> : vector<8xf32>
    %125 = vector.multi_reduction <add>, %124, %cst_45 [1] : vector<8x8xf32> to vector<8xf32>
    %126 = vector.shape_cast %125 : vector<8xf32> to vector<8x1xf32>
    %127 = tpu.reciprocal %126 {approx = true} : vector<8x1xf32> -> vector<8x1xf32>
    %128 = vector.broadcast %127 : vector<8x1xf32> to vector<8x8xf32>
    %129 = arith.mulf %124, %128 : vector<8x8xf32>
    %130 = vector.extract_strided_slice %44 {offsets = [0, 24], sizes = [8, 8], strides = [1, 1]} : vector<8x32xf32> to vector<8x8xf32>
    %131 = arith.truncf %130 : vector<8x8xf32> to vector<8x8xbf16>
    %132 = arith.truncf %129 : vector<8x8xf32> to vector<8x8xbf16>
    %cst_46 = arith.constant dense<0.000000e+00> : vector<8x8xf32>
    %133 = tpu.matmul %132, %131, %cst_46 {dimension_numbers = #tpu.dot_dimension_numbers<[1], [0], [0], [1], [0, 0, 1, 1], [], []>} : vector<8x8xbf16>, vector<8x8xbf16>, vector<8x8xf32> -> vector<8x8xf32>
    %134 = arith.truncf %133 : vector<8x8xf32> to vector<8x8xbf16>
    %c0_47 = arith.constant 0 : index
    %c24 = arith.constant 24 : index
    %135 = vector.load %arg14[%c0_47, %c24] : memref<8x32xbf16, #tpu.memory_space<vmem>>, vector<8x8xbf16>
    tpu.vector_store %arg14[%c0_47, %c24], %134 {strides = array<i32>} : memref<8x32xbf16, #tpu.memory_space<vmem>>, vector<8x8xbf16>,
    %c0_48 = arith.constant 0 : index
    %c0_49 = arith.constant 0 : index
    %136 = vector.load %arg14[%c0_48, %c0_49] : memref<8x32xbf16, #tpu.memory_space<vmem>>, vector<8x32xbf16>
    %c0_50 = arith.constant 0 : index
    %c0_51 = arith.constant 0 : index
    %137 = vector.load %arg10[%c0_50, %c0_51] : memref<32x32xbf16, #tpu.memory_space<vmem>>, vector<32x32xbf16>
    %cst_52 = arith.constant dense<0.000000e+00> : vector<8x32xf32>
    %138 = tpu.matmul %136, %137, %cst_52 {dimension_numbers = #tpu.dot_dimension_numbers<[1], [0], [0], [1], [0, 0, 1, 1], [], []>} : vector<8x32xbf16>, vector<32x32xbf16>, vector<8x32xf32> -> vector<8x32xf32>
    %c0_53 = arith.constant 0 : index
    %c0_54 = arith.constant 0 : index
    %139 = vector.load %arg11[%c0_53, %c0_54] : memref<1x32xf32, #tpu.memory_space<vmem>>, vector<1x32xf32>
    %140 = vector.broadcast %139 : vector<1x32xf32> to vector<8x32xf32>
    %141 = arith.addf %138, %140 : vector<8x32xf32>
    %142 = arith.addf %2, %141 : vector<8x32xf32>
    %143 = arith.truncf %142 : vector<8x32xf32> to vector<8x32xbf16>
    %c0_55 = arith.constant 0 : index
    %c0_56 = arith.constant 0 : index
    %c0_57 = arith.constant 0 : index
    %144 = vector.load %arg13[%c0_55, %c0_56, %c0_57] : memref<1x8x32xbf16, #tpu.memory_space<vmem>>, vector<1x8x32xbf16>
    %145 = vector.shape_cast %144 : vector<1x8x32xbf16> to vector<8x32xbf16>
    %146 = vector.shape_cast %143 : vector<8x32xbf16> to vector<1x8x32xbf16>
    tpu.vector_store %arg13[%c0_55, %c0_56, %c0_57], %146 {strides = array<i32>} : memref<1x8x32xbf16, #tpu.memory_space<vmem>>, vector<1x8x32xbf16>,
    return
  }
  func.func @transform_0(%arg0: i32, %arg1: i32) -> (i32, i32, i32) {
    %c0_i32 = arith.constant 0 : i32
    %c0_i32_0 = arith.constant 0 : i32
    return %arg0, %arg1, %c0_i32 : i32, i32, i32
  }
  func.func @transform_1(%arg0: i32, %arg1: i32) -> (i32, i32, i32) {
    %c0_i32 = arith.constant 0 : i32
    %c0_i32_0 = arith.constant 0 : i32
    %c0_i32_1 = arith.constant 0 : i32
    return %arg0, %c0_i32, %c0_i32_0 : i32, i32, i32
  }
  func.func @transform_2(%arg0: i32, %arg1: i32) -> (i32, i32) {
    %c0_i32 = arith.constant 0 : i32
    %c0_i32_0 = arith.constant 0 : i32
    %c0_i32_1 = arith.constant 0 : i32
    return %c0_i32, %c0_i32_0 : i32, i32
  }
  func.func @transform_3(%arg0: i32, %arg1: i32) -> (i32, i32) {
    %c0_i32 = arith.constant 0 : i32
    %c0_i32_0 = arith.constant 0 : i32
    %c0_i32_1 = arith.constant 0 : i32
    return %c0_i32, %c0_i32_0 : i32, i32
  }
  func.func @transform_4(%arg0: i32, %arg1: i32) -> (i32, i32) {
    %c0_i32 = arith.constant 0 : i32
    %c0_i32_0 = arith.constant 0 : i32
    %c0_i32_1 = arith.constant 0 : i32
    return %c0_i32, %c0_i32_0 : i32, i32
  }
  func.func @transform_5(%arg0: i32, %arg1: i32) -> (i32, i32) {
    %c0_i32 = arith.constant 0 : i32
    %c0_i32_0 = arith.constant 0 : i32
    %c0_i32_1 = arith.constant 0 : i32
    return %c0_i32, %c0_i32_0 : i32, i32
  }
  func.func @transform_6(%arg0: i32, %arg1: i32) -> (i32, i32) {
    %c0_i32 = arith.constant 0 : i32
    %c0_i32_0 = arith.constant 0 : i32
    %c0_i32_1 = arith.constant 0 : i32
    return %c0_i32, %c0_i32_0 : i32, i32
  }
  func.func @transform_7(%arg0: i32, %arg1: i32) -> (i32, i32) {
    %c0_i32 = arith.constant 0 : i32
    %c0_i32_0 = arith.constant 0 : i32
    %c0_i32_1 = arith.constant 0 : i32
    return %c0_i32, %c0_i32_0 : i32, i32
  }
  func.func @transform_8(%arg0: i32, %arg1: i32) -> (i32, i32) {
    %c0_i32 = arith.constant 0 : i32
    %c0_i32_0 = arith.constant 0 : i32
    %c0_i32_1 = arith.constant 0 : i32
    return %c0_i32, %c0_i32_0 : i32, i32
  }
  func.func @transform_9(%arg0: i32, %arg1: i32) -> (i32, i32) {
    %c0_i32 = arith.constant 0 : i32
    %c0_i32_0 = arith.constant 0 : i32
    %c0_i32_1 = arith.constant 0 : i32
    return %c0_i32, %c0_i32_0 : i32, i32
  }
  func.func @transform_10(%arg0: i32, %arg1: i32) -> (i32, i32, i32) {
    %c0_i32 = arith.constant 0 : i32
    %c0_i32_0 = arith.constant 0 : i32
    return %arg0, %arg1, %c0_i32 : i32, i32, i32
  }
  func.func @transform_11(%arg0: i32, %arg1: i32) -> (i32, i32, i32) {
    %c0_i32 = arith.constant 0 : i32
    %c0_i32_0 = arith.constant 0 : i32
    return %arg0, %arg1, %c0_i32 : i32, i32, i32
  }
}

module attributes {stable_mosaic.version = 11 : i64} {
  func.func @_attn_block_kernel(%arg0: i32, %arg1: i32, %arg2: memref<1x8x32xbf16, #tpu.memory_space<vmem>>, %arg3: memref<1x8x32xbf16, #tpu.memory_space<vmem>>, %arg4: memref<1x32xf32, #tpu.memory_space<vmem>>, %arg5: memref<1x32xf32, #tpu.memory_space<vmem>>, %arg6: memref<32x32xbf16, #tpu.memory_space<vmem>>, %arg7: memref<1x32xf32, #tpu.memory_space<vmem>>, %arg8: memref<32x64xbf16, #tpu.memory_space<vmem>>, %arg9: memref<1x64xf32, #tpu.memory_space<vmem>>, %arg10: memref<32x32xbf16, #tpu.memory_space<vmem>>, %arg11: memref<1x32xf32, #tpu.memory_space<vmem>>, %arg12: memref<1x8x8xbf16, #tpu.memory_space<vmem>>, %arg13: memref<1x8x32xbf16, #tpu.memory_space<vmem>>, %arg14: memref<8x32xbf16, #tpu.memory_space<vmem>>) attributes {dimension_semantics = [#tpu.dimension_semantics<parallel>, #tpu.dimension_semantics<parallel>], iteration_bounds = array<i64: 2, 1>, scalar_prefetch = 0 : i64, scratch_operands = 1 : i64, tpu.core_type = #tpu.core_type<tc>, window_params = [{transform_indices = @transform_0, window_bounds = array<i64: 1, 8, 32>}, {transform_indices = @transform_1, window_bounds = array<i64: 1, 8, 32>}, {pipeline_mode = #tpu.pipeline_mode<synchronous>, transform_indices = @transform_2, window_bounds = array<i64: 1, 32>}, {pipeline_mode = #tpu.pipeline_mode<synchronous>, transform_indices = @transform_3, window_bounds = array<i64: 1, 32>}, {pipeline_mode = #tpu.pipeline_mode<synchronous>, transform_indices = @transform_4, window_bounds = array<i64: 32, 32>}, {pipeline_mode = #tpu.pipeline_mode<synchronous>, transform_indices = @transform_5, window_bounds = array<i64: 1, 32>}, {pipeline_mode = #tpu.pipeline_mode<synchronous>, transform_indices = @transform_6, window_bounds = array<i64: 32, 64>}, {pipeline_mode = #tpu.pipeline_mode<synchronous>, transform_indices = @transform_7, window_bounds = array<i64: 1, 64>}, {pipeline_mode = #tpu.pipeline_mode<synchronous>, transform_indices = @transform_8, window_bounds = array<i64: 32, 32>}, {pipeline_mode = #tpu.pipeline_mode<synchronous>, transform_indices = @transform_9, window_bounds = array<i64: 1, 32>}, {transform_indices = @transform_10, window_bounds = array<i64: 1, 8, 8>}, {transform_indices = @transform_11, window_bounds = array<i64: 1, 8, 32>}]} {
    %c0 = arith.constant 0 : index
    %c0_0 = arith.constant 0 : index
    %c0_1 = arith.constant 0 : index
    %0 = vector.load %arg2[%c0, %c0_0, %c0_1] : memref<1x8x32xbf16, #tpu.memory_space<vmem>>, vector<1x8x32xbf16>
    %1 = vector.shape_cast %0 : vector<1x8x32xbf16> to vector<8x32xbf16>
    %2 = arith.extf %1 : vector<8x32xbf16> to vector<8x32xf32>
    %c0_2 = arith.constant 0 : index
    %c0_3 = arith.constant 0 : index
    %3 = vector.load %arg4[%c0_2, %c0_3] : memref<1x32xf32, #tpu.memory_space<vmem>>, vector<1x32xf32>
    %c0_4 = arith.constant 0 : index
    %c0_5 = arith.constant 0 : index
    %4 = vector.load %arg5[%c0_4, %c0_5] : memref<1x32xf32, #tpu.memory_space<vmem>>, vector<1x32xf32>
    %cst = arith.constant dense<0.000000e+00> : vector<8xf32>
    %5 = vector.multi_reduction <add>, %2, %cst [1] : vector<8x32xf32> to vector<8xf32>
    %6 = vector.shape_cast %5 : vector<8xf32> to vector<8x1xf32>
    %cst_6 = arith.constant 3.200000e+01 : f32
    %7 = vector.broadcast %cst_6 : f32 to vector<8x1xf32>
    %8 = arith.divf %6, %7 : vector<8x1xf32>
    %9 = vector.broadcast %8 : vector<8x1xf32> to vector<8x32xf32>
    %10 = arith.subf %2, %9 : vector<8x32xf32>
    %11 = arith.mulf %10, %10 : vector<8x32xf32>
    %cst_7 = arith.constant dense<0.000000e+00> : vector<8xf32>
    %12 = vector.multi_reduction <add>, %11, %cst_7 [1] : vector<8x32xf32> to vector<8xf32>
    %13 = vector.shape_cast %12 : vector<8xf32> to vector<8x1xf32>
    %cst_8 = arith.constant 0.0322580636 : f32
    %14 = vector.broadcast %cst_8 : f32 to vector<8x1xf32>
    %15 = arith.mulf %13, %14 : vector<8x1xf32>
    %16 = math.sqrt %15 : vector<8x1xf32>
    %cst_9 = arith.constant 9.99999997E-7 : f32
    %17 = vector.broadcast %cst_9 : f32 to vector<8x1xf32>
    %18 = arith.addf %16, %17 : vector<8x1xf32>
    %19 = tpu.reciprocal %18 : vector<8x1xf32> -> vector<8x1xf32>
    %20 = vector.broadcast %8 : vector<8x1xf32> to vector<8x32xf32>
    %21 = arith.subf %2, %20 : vector<8x32xf32>
    %22 = vector.broadcast %3 : vector<1x32xf32> to vector<8x32xf32>
    %23 = arith.mulf %22, %21 : vector<8x32xf32>
    %24 = vector.broadcast %19 : vector<8x1xf32> to vector<8x32xf32>
    %25 = arith.mulf %23, %24 : vector<8x32xf32>
    %26 = vector.broadcast %4 : vector<1x32xf32> to vector<8x32xf32>
    %27 = arith.addf %25, %26 : vector<8x32xf32>
    %c0_10 = arith.constant 0 : index
    %c0_11 = arith.constant 0 : index
    %c0_12 = arith.constant 0 : index
    %28 = vector.load %arg3[%c0_10, %c0_11, %c0_12] : memref<1x8x32xbf16, #tpu.memory_space<vmem>>, vector<1x8x32xbf16>
    %29 = vector.shape_cast %28 : vector<1x8x32xbf16> to vector<8x32xbf16>
    %30 = arith.extf %29 : vector<8x32xbf16> to vector<8x32xf32>
    %c0_13 = arith.constant 0 : index
    %c0_14 = arith.constant 0 : index
    %31 = vector.load %arg4[%c0_13, %c0_14] : memref<1x32xf32, #tpu.memory_space<vmem>>, vector<1x32xf32>
    %c0_15 = arith.constant 0 : index
    %c0_16 = arith.constant 0 : index
    %32 = vector.load %arg5[%c0_15, %c0_16] : memref<1x32xf32, #tpu.memory_space<vmem>>, vector<1x32xf32>
    %cst_17 = arith.constant dense<0.000000e+00> : vector<8xf32>
    %33 = vector.multi_reduction <add>, %30, %cst_17 [1] : vector<8x32xf32> to vector<8xf32>
    %34 = vector.shape_cast %33 : vector<8xf32> to vector<8x1xf32>
    %cst_18 = arith.constant 3.200000e+01 : f32
    %35 = vector.broadcast %cst_18 : f32 to vector<8x1xf32>
    %36 = arith.divf %34, %35 : vector<8x1xf32>
    %37 = vector.broadcast %36 : vector<8x1xf32> to vector<8x32xf32>
    %38 = arith.subf %30, %37 : vector<8x32xf32>
    %39 = arith.mulf %38, %38 : vector<8x32xf32>
    %cst_19 = arith.constant dense<0.000000e+00> : vector<8xf32>
    %40 = vector.multi_reduction <add>, %39, %cst_19 [1] : vector<8x32xf32> to vector<8xf32>
    %41 = vector.shape_cast %40 : vector<8xf32> to vector<8x1xf32>
    %cst_20 = arith.constant 0.0322580636 : f32
    %42 = vector.broadcast %cst_20 : f32 to vector<8x1xf32>
    %43 = arith.mulf %41, %42 : vector<8x1xf32>
    %44 = math.sqrt %43 : vector<8x1xf32>
    %cst_21 = arith.constant 9.99999997E-7 : f32
    %45 = vector.broadcast %cst_21 : f32 to vector<8x1xf32>
    %46 = arith.addf %44, %45 : vector<8x1xf32>
    %47 = tpu.reciprocal %46 : vector<8x1xf32> -> vector<8x1xf32>
    %48 = vector.broadcast %36 : vector<8x1xf32> to vector<8x32xf32>
    %49 = arith.subf %30, %48 : vector<8x32xf32>
    %50 = vector.broadcast %31 : vector<1x32xf32> to vector<8x32xf32>
    %51 = arith.mulf %50, %49 : vector<8x32xf32>
    %52 = vector.broadcast %47 : vector<8x1xf32> to vector<8x32xf32>
    %53 = arith.mulf %51, %52 : vector<8x32xf32>
    %54 = vector.broadcast %32 : vector<1x32xf32> to vector<8x32xf32>
    %55 = arith.addf %53, %54 : vector<8x32xf32>
    %56 = arith.truncf %55 : vector<8x32xf32> to vector<8x32xbf16>
    %57 = arith.truncf %27 : vector<8x32xf32> to vector<8x32xbf16>
    %c0_22 = arith.constant 0 : index
    %c0_23 = arith.constant 0 : index
    %58 = vector.load %arg6[%c0_22, %c0_23] : memref<32x32xbf16, #tpu.memory_space<vmem>>, vector<32x32xbf16>
    %cst_24 = arith.constant dense<0.000000e+00> : vector<8x32xf32>
    %59 = tpu.matmul %57, %58, %cst_24 {dimension_numbers = #tpu.dot_dimension_numbers<[1], [0], [0], [1], [0, 0, 1, 1], [], []>} : vector<8x32xbf16>, vector<32x32xbf16>, vector<8x32xf32> -> vector<8x32xf32>
    %c0_25 = arith.constant 0 : index
    %c0_26 = arith.constant 0 : index
    %60 = vector.load %arg7[%c0_25, %c0_26] : memref<1x32xf32, #tpu.memory_space<vmem>>, vector<1x32xf32>
    %61 = vector.broadcast %60 : vector<1x32xf32> to vector<8x32xf32>
    %62 = arith.addf %59, %61 : vector<8x32xf32>
    %cst_27 = arith.constant 0.353553385 : f32
    %63 = vector.broadcast %cst_27 : f32 to vector<8x32xf32>
    %64 = arith.mulf %62, %63 : vector<8x32xf32>
    %c0_28 = arith.constant 0 : index
    %c0_29 = arith.constant 0 : index
    %65 = vector.load %arg8[%c0_28, %c0_29] : memref<32x64xbf16, #tpu.memory_space<vmem>>, vector<32x64xbf16>
    %cst_30 = arith.constant dense<0.000000e+00> : vector<8x64xf32>
    %66 = tpu.matmul %56, %65, %cst_30 {dimension_numbers = #tpu.dot_dimension_numbers<[1], [0], [0], [1], [0, 0, 1, 1], [], []>} : vector<8x32xbf16>, vector<32x64xbf16>, vector<8x64xf32> -> vector<8x64xf32>
    %c0_31 = arith.constant 0 : index
    %c0_32 = arith.constant 0 : index
    %67 = vector.load %arg9[%c0_31, %c0_32] : memref<1x64xf32, #tpu.memory_space<vmem>>, vector<1x64xf32>
    %68 = vector.broadcast %67 : vector<1x64xf32> to vector<8x64xf32>
    %69 = arith.addf %66, %68 : vector<8x64xf32>
    %70 = vector.extract_strided_slice %69 {offsets = [0, 0], sizes = [8, 32], strides = [1, 1]} : vector<8x64xf32> to vector<8x32xf32>
    %71 = vector.extract_strided_slice %69 {offsets = [0, 32], sizes = [8, 32], strides = [1, 1]} : vector<8x64xf32> to vector<8x32xf32>
    %c0_33 = arith.constant 0 : index
    %c0_34 = arith.constant 0 : index
    %c0_35 = arith.constant 0 : index
    %72 = vector.load %arg12[%c0_33, %c0_34, %c0_35] : memref<1x8x8xbf16, #tpu.memory_space<vmem>>, vector<1x8x8xbf16>
    %73 = vector.shape_cast %72 : vector<1x8x8xbf16> to vector<8x8xbf16>
    %74 = arith.extf %73 : vector<8x8xbf16> to vector<8x8xf32>
    %75 = vector.extract_strided_slice %64 {offsets = [0, 0], sizes = [8, 8], strides = [1, 1]} : vector<8x32xf32> to vector<8x8xf32>
    %76 = arith.truncf %75 : vector<8x8xf32> to vector<8x8xbf16>
    %77 = vector.extract_strided_slice %70 {offsets = [0, 0], sizes = [8, 8], strides = [1, 1]} : vector<8x32xf32> to vector<8x8xf32>
    %78 = arith.truncf %77 : vector<8x8xf32> to vector<8x8xbf16>
    %cst_36 = arith.constant dense<0.000000e+00> : vector<8x8xf32>
    %79 = tpu.matmul %76, %78, %cst_36 {dimension_numbers = #tpu.dot_dimension_numbers<[1], [1], [0], [0], [0, 0, 1, 0], [], []>} : vector<8x8xbf16>, vector<8x8xbf16>, vector<8x8xf32> -> vector<8x8xf32>
    %80 = arith.addf %79, %74 : vector<8x8xf32>
    %cst_37 = arith.constant dense<0xFF800000> : vector<8xf32>
    %81 = vector.multi_reduction <maximumf>, %80, %cst_37 [1] : vector<8x8xf32> to vector<8xf32>
    %82 = vector.shape_cast %81 : vector<8xf32> to vector<8x1xf32>
    %83 = vector.broadcast %82 : vector<8x1xf32> to vector<8x8xf32>
    %84 = arith.subf %80, %83 : vector<8x8xf32>
    %85 = math.exp %84 : vector<8x8xf32>
    %cst_38 = arith.constant dense<0.000000e+00> : vector<8xf32>
    %86 = vector.multi_reduction <add>, %85, %cst_38 [1] : vector<8x8xf32> to vector<8xf32>
    %87 = vector.shape_cast %86 : vector<8xf32> to vector<8x1xf32>
    %88 = tpu.reciprocal %87 {approx = true} : vector<8x1xf32> -> vector<8x1xf32>
    %89 = vector.broadcast %88 : vector<8x1xf32> to vector<8x8xf32>
    %90 = arith.mulf %85, %89 : vector<8x8xf32>
    %91 = vector.extract_strided_slice %71 {offsets = [0, 0], sizes = [8, 8], strides = [1, 1]} : vector<8x32xf32> to vector<8x8xf32>
    %92 = arith.truncf %91 : vector<8x8xf32> to vector<8x8xbf16>
    %93 = arith.truncf %90 : vector<8x8xf32> to vector<8x8xbf16>
    %cst_39 = arith.constant dense<0.000000e+00> : vector<8x8xf32>
    %94 = tpu.matmul %93, %92, %cst_39 {dimension_numbers = #tpu.dot_dimension_numbers<[1], [0], [0], [1], [0, 0, 1, 1], [], []>} : vector<8x8xbf16>, vector<8x8xbf16>, vector<8x8xf32> -> vector<8x8xf32>
    %95 = arith.truncf %94 : vector<8x8xf32> to vector<8x8xbf16>
    %c0_40 = arith.constant 0 : index
    %c0_41 = arith.constant 0 : index
    %96 = vector.load %arg14[%c0_40, %c0_41] : memref<8x32xbf16, #tpu.memory_space<vmem>>, vector<8x8xbf16>
    tpu.vector_store %arg14[%c0_40, %c0_41], %95 {strides = array<i32>} : memref<8x32xbf16, #tpu.memory_space<vmem>>, vector<8x8xbf16>,
    %97 = vector.extract_strided_slice %64 {offsets = [0, 8], sizes = [8, 8], strides = [1, 1]} : vector<8x32xf32> to vector<8x8xf32>
    %98 = arith.truncf %97 : vector<8x8xf32> to vector<8x8xbf16>
    %99 = vector.extract_strided_slice %70 {offsets = [0, 8], sizes = [8, 8], strides = [1, 1]} : vector<8x32xf32> to vector<8x8xf32>
    %100 = arith.truncf %99 : vector<8x8xf32> to vector<8x8xbf16>
    %cst_42 = arith.constant dense<0.000000e+00> : vector<8x8xf32>
    %101 = tpu.matmul %98, %100, %cst_42 {dimension_numbers = #tpu.dot_dimension_numbers<[1], [1], [0], [0], [0, 0, 1, 0], [], []>} : vector<8x8xbf16>, vector<8x8xbf16>, vector<8x8xf32> -> vector<8x8xf32>
    %102 = arith.addf %101, %74 : vector<8x8xf32>
    %cst_43 = arith.constant dense<0xFF800000> : vector<8xf32>
    %103 = vector.multi_reduction <maximumf>, %102, %cst_43 [1] : vector<8x8xf32> to vector<8xf32>
    %104 = vector.shape_cast %103 : vector<8xf32> to vector<8x1xf32>
    %105 = vector.broadcast %104 : vector<8x1xf32> to vector<8x8xf32>
    %106 = arith.subf %102, %105 : vector<8x8xf32>
    %107 = math.exp %106 : vector<8x8xf32>
    %cst_44 = arith.constant dense<0.000000e+00> : vector<8xf32>
    %108 = vector.multi_reduction <add>, %107, %cst_44 [1] : vector<8x8xf32> to vector<8xf32>
    %109 = vector.shape_cast %108 : vector<8xf32> to vector<8x1xf32>
    %110 = tpu.reciprocal %109 {approx = true} : vector<8x1xf32> -> vector<8x1xf32>
    %111 = vector.broadcast %110 : vector<8x1xf32> to vector<8x8xf32>
    %112 = arith.mulf %107, %111 : vector<8x8xf32>
    %113 = vector.extract_strided_slice %71 {offsets = [0, 8], sizes = [8, 8], strides = [1, 1]} : vector<8x32xf32> to vector<8x8xf32>
    %114 = arith.truncf %113 : vector<8x8xf32> to vector<8x8xbf16>
    %115 = arith.truncf %112 : vector<8x8xf32> to vector<8x8xbf16>
    %cst_45 = arith.constant dense<0.000000e+00> : vector<8x8xf32>
    %116 = tpu.matmul %115, %114, %cst_45 {dimension_numbers = #tpu.dot_dimension_numbers<[1], [0], [0], [1], [0, 0, 1, 1], [], []>} : vector<8x8xbf16>, vector<8x8xbf16>, vector<8x8xf32> -> vector<8x8xf32>
    %117 = arith.truncf %116 : vector<8x8xf32> to vector<8x8xbf16>
    %c0_46 = arith.constant 0 : index
    %c8 = arith.constant 8 : index
    %118 = vector.load %arg14[%c0_46, %c8] : memref<8x32xbf16, #tpu.memory_space<vmem>>, vector<8x8xbf16>
    tpu.vector_store %arg14[%c0_46, %c8], %117 {strides = array<i32>} : memref<8x32xbf16, #tpu.memory_space<vmem>>, vector<8x8xbf16>,
    %119 = vector.extract_strided_slice %64 {offsets = [0, 16], sizes = [8, 8], strides = [1, 1]} : vector<8x32xf32> to vector<8x8xf32>
    %120 = arith.truncf %119 : vector<8x8xf32> to vector<8x8xbf16>
    %121 = vector.extract_strided_slice %70 {offsets = [0, 16], sizes = [8, 8], strides = [1, 1]} : vector<8x32xf32> to vector<8x8xf32>
    %122 = arith.truncf %121 : vector<8x8xf32> to vector<8x8xbf16>
    %cst_47 = arith.constant dense<0.000000e+00> : vector<8x8xf32>
    %123 = tpu.matmul %120, %122, %cst_47 {dimension_numbers = #tpu.dot_dimension_numbers<[1], [1], [0], [0], [0, 0, 1, 0], [], []>} : vector<8x8xbf16>, vector<8x8xbf16>, vector<8x8xf32> -> vector<8x8xf32>
    %124 = arith.addf %123, %74 : vector<8x8xf32>
    %cst_48 = arith.constant dense<0xFF800000> : vector<8xf32>
    %125 = vector.multi_reduction <maximumf>, %124, %cst_48 [1] : vector<8x8xf32> to vector<8xf32>
    %126 = vector.shape_cast %125 : vector<8xf32> to vector<8x1xf32>
    %127 = vector.broadcast %126 : vector<8x1xf32> to vector<8x8xf32>
    %128 = arith.subf %124, %127 : vector<8x8xf32>
    %129 = math.exp %128 : vector<8x8xf32>
    %cst_49 = arith.constant dense<0.000000e+00> : vector<8xf32>
    %130 = vector.multi_reduction <add>, %129, %cst_49 [1] : vector<8x8xf32> to vector<8xf32>
    %131 = vector.shape_cast %130 : vector<8xf32> to vector<8x1xf32>
    %132 = tpu.reciprocal %131 {approx = true} : vector<8x1xf32> -> vector<8x1xf32>
    %133 = vector.broadcast %132 : vector<8x1xf32> to vector<8x8xf32>
    %134 = arith.mulf %129, %133 : vector<8x8xf32>
    %135 = vector.extract_strided_slice %71 {offsets = [0, 16], sizes = [8, 8], strides = [1, 1]} : vector<8x32xf32> to vector<8x8xf32>
    %136 = arith.truncf %135 : vector<8x8xf32> to vector<8x8xbf16>
    %137 = arith.truncf %134 : vector<8x8xf32> to vector<8x8xbf16>
    %cst_50 = arith.constant dense<0.000000e+00> : vector<8x8xf32>
    %138 = tpu.matmul %137, %136, %cst_50 {dimension_numbers = #tpu.dot_dimension_numbers<[1], [0], [0], [1], [0, 0, 1, 1], [], []>} : vector<8x8xbf16>, vector<8x8xbf16>, vector<8x8xf32> -> vector<8x8xf32>
    %139 = arith.truncf %138 : vector<8x8xf32> to vector<8x8xbf16>
    %c0_51 = arith.constant 0 : index
    %c16 = arith.constant 16 : index
    %140 = vector.load %arg14[%c0_51, %c16] : memref<8x32xbf16, #tpu.memory_space<vmem>>, vector<8x8xbf16>
    tpu.vector_store %arg14[%c0_51, %c16], %139 {strides = array<i32>} : memref<8x32xbf16, #tpu.memory_space<vmem>>, vector<8x8xbf16>,
    %141 = vector.extract_strided_slice %64 {offsets = [0, 24], sizes = [8, 8], strides = [1, 1]} : vector<8x32xf32> to vector<8x8xf32>
    %142 = arith.truncf %141 : vector<8x8xf32> to vector<8x8xbf16>
    %143 = vector.extract_strided_slice %70 {offsets = [0, 24], sizes = [8, 8], strides = [1, 1]} : vector<8x32xf32> to vector<8x8xf32>
    %144 = arith.truncf %143 : vector<8x8xf32> to vector<8x8xbf16>
    %cst_52 = arith.constant dense<0.000000e+00> : vector<8x8xf32>
    %145 = tpu.matmul %142, %144, %cst_52 {dimension_numbers = #tpu.dot_dimension_numbers<[1], [1], [0], [0], [0, 0, 1, 0], [], []>} : vector<8x8xbf16>, vector<8x8xbf16>, vector<8x8xf32> -> vector<8x8xf32>
    %146 = arith.addf %145, %74 : vector<8x8xf32>
    %cst_53 = arith.constant dense<0xFF800000> : vector<8xf32>
    %147 = vector.multi_reduction <maximumf>, %146, %cst_53 [1] : vector<8x8xf32> to vector<8xf32>
    %148 = vector.shape_cast %147 : vector<8xf32> to vector<8x1xf32>
    %149 = vector.broadcast %148 : vector<8x1xf32> to vector<8x8xf32>
    %150 = arith.subf %146, %149 : vector<8x8xf32>
    %151 = math.exp %150 : vector<8x8xf32>
    %cst_54 = arith.constant dense<0.000000e+00> : vector<8xf32>
    %152 = vector.multi_reduction <add>, %151, %cst_54 [1] : vector<8x8xf32> to vector<8xf32>
    %153 = vector.shape_cast %152 : vector<8xf32> to vector<8x1xf32>
    %154 = tpu.reciprocal %153 {approx = true} : vector<8x1xf32> -> vector<8x1xf32>
    %155 = vector.broadcast %154 : vector<8x1xf32> to vector<8x8xf32>
    %156 = arith.mulf %151, %155 : vector<8x8xf32>
    %157 = vector.extract_strided_slice %71 {offsets = [0, 24], sizes = [8, 8], strides = [1, 1]} : vector<8x32xf32> to vector<8x8xf32>
    %158 = arith.truncf %157 : vector<8x8xf32> to vector<8x8xbf16>
    %159 = arith.truncf %156 : vector<8x8xf32> to vector<8x8xbf16>
    %cst_55 = arith.constant dense<0.000000e+00> : vector<8x8xf32>
    %160 = tpu.matmul %159, %158, %cst_55 {dimension_numbers = #tpu.dot_dimension_numbers<[1], [0], [0], [1], [0, 0, 1, 1], [], []>} : vector<8x8xbf16>, vector<8x8xbf16>, vector<8x8xf32> -> vector<8x8xf32>
    %161 = arith.truncf %160 : vector<8x8xf32> to vector<8x8xbf16>
    %c0_56 = arith.constant 0 : index
    %c24 = arith.constant 24 : index
    %162 = vector.load %arg14[%c0_56, %c24] : memref<8x32xbf16, #tpu.memory_space<vmem>>, vector<8x8xbf16>
    tpu.vector_store %arg14[%c0_56, %c24], %161 {strides = array<i32>} : memref<8x32xbf16, #tpu.memory_space<vmem>>, vector<8x8xbf16>,
    %c0_57 = arith.constant 0 : index
    %c0_58 = arith.constant 0 : index
    %163 = vector.load %arg14[%c0_57, %c0_58] : memref<8x32xbf16, #tpu.memory_space<vmem>>, vector<8x32xbf16>
    %c0_59 = arith.constant 0 : index
    %c0_60 = arith.constant 0 : index
    %164 = vector.load %arg10[%c0_59, %c0_60] : memref<32x32xbf16, #tpu.memory_space<vmem>>, vector<32x32xbf16>
    %cst_61 = arith.constant dense<0.000000e+00> : vector<8x32xf32>
    %165 = tpu.matmul %163, %164, %cst_61 {dimension_numbers = #tpu.dot_dimension_numbers<[1], [0], [0], [1], [0, 0, 1, 1], [], []>} : vector<8x32xbf16>, vector<32x32xbf16>, vector<8x32xf32> -> vector<8x32xf32>
    %c0_62 = arith.constant 0 : index
    %c0_63 = arith.constant 0 : index
    %166 = vector.load %arg11[%c0_62, %c0_63] : memref<1x32xf32, #tpu.memory_space<vmem>>, vector<1x32xf32>
    %167 = vector.broadcast %166 : vector<1x32xf32> to vector<8x32xf32>
    %168 = arith.addf %165, %167 : vector<8x32xf32>
    %169 = arith.addf %2, %168 : vector<8x32xf32>
    %170 = arith.truncf %169 : vector<8x32xf32> to vector<8x32xbf16>
    %c0_64 = arith.constant 0 : index
    %c0_65 = arith.constant 0 : index
    %c0_66 = arith.constant 0 : index
    %171 = vector.load %arg13[%c0_64, %c0_65, %c0_66] : memref<1x8x32xbf16, #tpu.memory_space<vmem>>, vector<1x8x32xbf16>
    %172 = vector.shape_cast %171 : vector<1x8x32xbf16> to vector<8x32xbf16>
    %173 = vector.shape_cast %170 : vector<8x32xbf16> to vector<1x8x32xbf16>
    tpu.vector_store %arg13[%c0_64, %c0_65, %c0_66], %173 {strides = array<i32>} : memref<1x8x32xbf16, #tpu.memory_space<vmem>>, vector<1x8x32xbf16>,
    return
  }
  func.func @transform_0(%arg0: i32, %arg1: i32) -> (i32, i32, i32) {
    %c0_i32 = arith.constant 0 : i32
    %c0_i32_0 = arith.constant 0 : i32
    return %arg0, %arg1, %c0_i32 : i32, i32, i32
  }
  func.func @transform_1(%arg0: i32, %arg1: i32) -> (i32, i32, i32) {
    %c0_i32 = arith.constant 0 : i32
    %c0_i32_0 = arith.constant 0 : i32
    %c0_i32_1 = arith.constant 0 : i32
    return %arg0, %c0_i32, %c0_i32_0 : i32, i32, i32
  }
  func.func @transform_2(%arg0: i32, %arg1: i32) -> (i32, i32) {
    %c0_i32 = arith.constant 0 : i32
    %c0_i32_0 = arith.constant 0 : i32
    %c0_i32_1 = arith.constant 0 : i32
    return %c0_i32, %c0_i32_0 : i32, i32
  }
  func.func @transform_3(%arg0: i32, %arg1: i32) -> (i32, i32) {
    %c0_i32 = arith.constant 0 : i32
    %c0_i32_0 = arith.constant 0 : i32
    %c0_i32_1 = arith.constant 0 : i32
    return %c0_i32, %c0_i32_0 : i32, i32
  }
  func.func @transform_4(%arg0: i32, %arg1: i32) -> (i32, i32) {
    %c0_i32 = arith.constant 0 : i32
    %c0_i32_0 = arith.constant 0 : i32
    %c0_i32_1 = arith.constant 0 : i32
    return %c0_i32, %c0_i32_0 : i32, i32
  }
  func.func @transform_5(%arg0: i32, %arg1: i32) -> (i32, i32) {
    %c0_i32 = arith.constant 0 : i32
    %c0_i32_0 = arith.constant 0 : i32
    %c0_i32_1 = arith.constant 0 : i32
    return %c0_i32, %c0_i32_0 : i32, i32
  }
  func.func @transform_6(%arg0: i32, %arg1: i32) -> (i32, i32) {
    %c0_i32 = arith.constant 0 : i32
    %c0_i32_0 = arith.constant 0 : i32
    %c0_i32_1 = arith.constant 0 : i32
    return %c0_i32, %c0_i32_0 : i32, i32
  }
  func.func @transform_7(%arg0: i32, %arg1: i32) -> (i32, i32) {
    %c0_i32 = arith.constant 0 : i32
    %c0_i32_0 = arith.constant 0 : i32
    %c0_i32_1 = arith.constant 0 : i32
    return %c0_i32, %c0_i32_0 : i32, i32
  }
  func.func @transform_8(%arg0: i32, %arg1: i32) -> (i32, i32) {
    %c0_i32 = arith.constant 0 : i32
    %c0_i32_0 = arith.constant 0 : i32
    %c0_i32_1 = arith.constant 0 : i32
    return %c0_i32, %c0_i32_0 : i32, i32
  }
  func.func @transform_9(%arg0: i32, %arg1: i32) -> (i32, i32) {
    %c0_i32 = arith.constant 0 : i32
    %c0_i32_0 = arith.constant 0 : i32
    %c0_i32_1 = arith.constant 0 : i32
    return %c0_i32, %c0_i32_0 : i32, i32
  }
  func.func @transform_10(%arg0: i32, %arg1: i32) -> (i32, i32, i32) {
    %c0_i32 = arith.constant 0 : i32
    %c0_i32_0 = arith.constant 0 : i32
    %c0_i32_1 = arith.constant 0 : i32
    return %c0_i32, %arg1, %c0_i32_0 : i32, i32, i32
  }
  func.func @transform_11(%arg0: i32, %arg1: i32) -> (i32, i32, i32) {
    %c0_i32 = arith.constant 0 : i32
    %c0_i32_0 = arith.constant 0 : i32
    return %arg0, %arg1, %c0_i32 : i32, i32, i32
  }
}

module attributes {stable_mosaic.version = 11 : i64} {
  func.func @_layernorm_kernel(%arg0: i32, %arg1: memref<8x32xbf16, #tpu.memory_space<vmem>>, %arg2: memref<1x32xf32, #tpu.memory_space<vmem>>, %arg3: memref<1x32xf32, #tpu.memory_space<vmem>>, %arg4: memref<8x32xf32, #tpu.memory_space<vmem>>) attributes {dimension_semantics = [#tpu.dimension_semantics<parallel>], iteration_bounds = array<i64: 2>, scalar_prefetch = 0 : i64, scratch_operands = 0 : i64, tpu.core_type = #tpu.core_type<tc>, window_params = [{transform_indices = @transform_0, window_bounds = array<i64: 8, 32>}, {pipeline_mode = #tpu.pipeline_mode<synchronous>, transform_indices = @transform_1, window_bounds = array<i64: 1, 32>}, {pipeline_mode = #tpu.pipeline_mode<synchronous>, transform_indices = @transform_2, window_bounds = array<i64: 1, 32>}, {transform_indices = @transform_3, window_bounds = array<i64: 8, 32>}]} {
    %c0 = arith.constant 0 : index
    %c0_0 = arith.constant 0 : index
    %0 = vector.load %arg1[%c0, %c0_0] : memref<8x32xbf16, #tpu.memory_space<vmem>>, vector<8x32xbf16>
    %1 = arith.extf %0 : vector<8x32xbf16> to vector<8x32xf32>
    %c0_1 = arith.constant 0 : index
    %c0_2 = arith.constant 0 : index
    %2 = vector.load %arg2[%c0_1, %c0_2] : memref<1x32xf32, #tpu.memory_space<vmem>>, vector<1x32xf32>
    %c0_3 = arith.constant 0 : index
    %c0_4 = arith.constant 0 : index
    %3 = vector.load %arg3[%c0_3, %c0_4] : memref<1x32xf32, #tpu.memory_space<vmem>>, vector<1x32xf32>
    %cst = arith.constant dense<0.000000e+00> : vector<8xf32>
    %4 = vector.multi_reduction <add>, %1, %cst [1] : vector<8x32xf32> to vector<8xf32>
    %5 = vector.shape_cast %4 : vector<8xf32> to vector<8x1xf32>
    %cst_5 = arith.constant 3.200000e+01 : f32
    %6 = vector.broadcast %cst_5 : f32 to vector<8x1xf32>
    %7 = arith.divf %5, %6 : vector<8x1xf32>
    %8 = vector.broadcast %7 : vector<8x1xf32> to vector<8x32xf32>
    %9 = arith.subf %1, %8 : vector<8x32xf32>
    %10 = arith.mulf %9, %9 : vector<8x32xf32>
    %cst_6 = arith.constant dense<0.000000e+00> : vector<8xf32>
    %11 = vector.multi_reduction <add>, %10, %cst_6 [1] : vector<8x32xf32> to vector<8xf32>
    %12 = vector.shape_cast %11 : vector<8xf32> to vector<8x1xf32>
    %cst_7 = arith.constant 0.0322580636 : f32
    %13 = vector.broadcast %cst_7 : f32 to vector<8x1xf32>
    %14 = arith.mulf %12, %13 : vector<8x1xf32>
    %15 = math.sqrt %14 : vector<8x1xf32>
    %cst_8 = arith.constant 9.99999997E-7 : f32
    %16 = vector.broadcast %cst_8 : f32 to vector<8x1xf32>
    %17 = arith.addf %15, %16 : vector<8x1xf32>
    %18 = tpu.reciprocal %17 : vector<8x1xf32> -> vector<8x1xf32>
    %19 = vector.broadcast %7 : vector<8x1xf32> to vector<8x32xf32>
    %20 = arith.subf %1, %19 : vector<8x32xf32>
    %21 = vector.broadcast %2 : vector<1x32xf32> to vector<8x32xf32>
    %22 = arith.mulf %21, %20 : vector<8x32xf32>
    %23 = vector.broadcast %18 : vector<8x1xf32> to vector<8x32xf32>
    %24 = arith.mulf %22, %23 : vector<8x32xf32>
    %25 = vector.broadcast %3 : vector<1x32xf32> to vector<8x32xf32>
    %26 = arith.addf %24, %25 : vector<8x32xf32>
    %c0_9 = arith.constant 0 : index
    %c0_10 = arith.constant 0 : index
    %27 = vector.load %arg4[%c0_9, %c0_10] : memref<8x32xf32, #tpu.memory_space<vmem>>, vector<8x32xf32>
    tpu.vector_store %arg4[%c0_9, %c0_10], %26 {strides = array<i32>} : memref<8x32xf32, #tpu.memory_space<vmem>>, vector<8x32xf32>,
    return
  }
  func.func @transform_0(%arg0: i32) -> (i32, i32) {
    %c0_i32 = arith.constant 0 : i32
    %c0_i32_0 = arith.constant 0 : i32
    return %arg0, %c0_i32 : i32, i32
  }
  func.func @transform_1(%arg0: i32) -> (i32, i32) {
    %c0_i32 = arith.constant 0 : i32
    %c0_i32_0 = arith.constant 0 : i32
    %c0_i32_1 = arith.constant 0 : i32
    return %c0_i32, %c0_i32_0 : i32, i32
  }
  func.func @transform_2(%arg0: i32) -> (i32, i32) {
    %c0_i32 = arith.constant 0 : i32
    %c0_i32_0 = arith.constant 0 : i32
    %c0_i32_1 = arith.constant 0 : i32
    return %c0_i32, %c0_i32_0 : i32, i32
  }
  func.func @transform_3(%arg0: i32) -> (i32, i32) {
    %c0_i32 = arith.constant 0 : i32
    %c0_i32_0 = arith.constant 0 : i32
    return %arg0, %c0_i32 : i32, i32
  }
}

</mosaic_0001>

<bundles_post_ra>
// kernel: decoder_forward.9
= control target key start
LH: loop header
LB: loop body
LE: loop exit
PB: predicated region body
PF: predicated region fallthrough
CT: control target
= control target key end

     0   :  { %12 = vsyncpa [#allocation3], 0  ;;  %s1559_s0 = inlined_call_operand.hbm [shape: bf16[16,32], index: 0, kind: input, shape index: {}]   ;;  %s1560_s1 = inlined_call_operand.hbm [shape: f32[1,32], index: 1, kind: input, shape index: {}]   ;;  %s1561_s2 = inlined_call_operand.hbm [shape: f32[1,32], index: 2, kind: input, shape index: {}]   ;;  %s1562_s3 = inlined_call_operand.hbm [shape: bf16[32,64], index: 3, kind: input, shape index: {}]   ;;  %s1563_s4 = inlined_call_operand.hbm [shape: f32[1,64], index: 4, kind: input, shape index: {}]   ;;  %s1564_s5 = inlined_call_operand.hbm [shape: bf16[64,32], index: 5, kind: input, shape index: {}]   ;;  %s1565_s6 = inlined_call_operand.hbm [shape: f32[1,32], index: 6, kind: input, shape index: {}]   ;;  %s1566_s7 = inlined_call_operand.hbm [shape: bf16[16,32], index: 7, kind: output, shape index: {}]  }
   0x1   :  { %14 = vsyncpa [#allocation3 + $0x1], 0 }
   0x2   :  { %15 = vsyncpa [#allocation6], 0 }
   0x3   :  { %16 = vsyncpa [#allocation9], 0 }
   0x4   :  { %17 = vsyncpa [#allocation12], 0 }
   0x5   :  { %18 = vsyncpa [#allocation4], 0 }
   0x6   :  { %20 = vsyncpa [#allocation4 + $0x1], 0  ;;  %s1226_s24 = smov 0   ;;  %s1228_s25 = smov 0  }
   0x7   :  { %s1230_s26 = smov 0   ;;  %s1232_s27 = smov 0  }
   0x8 LB: > { %s1174_s28 = smov [#allocation5]   ;;  %s1247_s30 = sadd.s32 4294967295, %s1172_s27   ;;  %s1172_s27 = sphi %s1232_s27, %s1592_s27   ;;  %s1168_s26 = sphi %s1230_s26, %s1591_s26   ;;  %s1164_s25 = sphi %s1228_s25, %s1590_s25   ;;  %s1160_s24 = sphi %s1226_s24, %s1589_s24  }
   0x9   : > { %s222_s29 = sshll.u32 %s1174_s28, 4  ;;  %p712_p0 = scmp.ge.s32.totalorder %s1172_s27, 1  ;;  %s1252_s29 = int_to_ptr.vmem [resolvable:$true] %s222_s29 }
   0xa   : > { %p1567_p1 = scmp.eq.s32.totalorder %s1247_s30, 0  ;;  %p209_p2 = scmp.lt.s32.totalorder %s1172_s27, 3 }
   0xb   : > { %s1175_s9 = smov [#allocation8]   ;;  %s1176_s12 = smov [#allocation11]  }
   0xc   : > { %p1254_p3 = pnand %p712_p0, %p209_p2  ;;  %s243_s10 = sshll.u32 %s1175_s9, 4  ;;  %s1261_s10 = int_to_ptr.vmem [resolvable:$true] %s243_s10 }
   0xd   : > { %s267_s13 = sshll.u32 %s1176_s12, 4  ;;  %s896_s16 = scalar_lea.hbm %s1560_s1, 16  ;;  %s1269_s13 = int_to_ptr.vmem [resolvable:$true] %s267_s13 }
   0xe   : > { %s1570_s8 = scalar_select %p1254_p3, 1, 0 }
   0xf   : > { %p803_p5 = pneg %p1254_p3  ;;  %p897_p7 = scmp.ne.s32.totalorder %s1560_s1, %s896_s16 }
  0x10   : > { %p903_p11 = scmp.lt.u32.totalorder %s896_s16, %s1560_s1 }
  0x11   : > { %p1265_p6 = pnand %p803_p5, %p1567_p1 }
  0x13   : > { %p1279_p8 = pneg %p1265_p6 }
  0x15   : > { %p899_p9 = pnand %p1279_p8, %p897_p7 }
  0x17   : > { %p900_p10 = pneg %p899_p9 }
  0x19   : > { %p905_p12 = pnand %p903_p11, %p900_p10 }
  0x1b   : > { %908 = shalt.err (!%p905_p12)
}
  0x1c   : > { %s909_s22 = scalar_lea.vmem %s1252_s29, 16  ;;  %s916_s23 = scalar_lea.vmem %s1252_s29, 32 }
  0x1d   : > { %p910_p13 = scmp.ne.s32.totalorder %s1252_s29, %s909_s22  ;;  %p917_p5 = scmp.lt.s32.totalorder %s1252_s29, %s1252_s29 }
  0x1e   : > { %p918_p7 = scmp.lt.s32.totalorder %s916_s23, %s909_s22 }
  0x1f   : > { %p912_p0 = pnand %p910_p13, %p1279_p8 }
  0x20   : > { %p919_p9 = por %p918_p7, %p917_p5 }
  0x21   : > { %p913_p2 = pneg %p912_p0 }
  0x23   : > { %p920_p4 = pnand %p919_p9, %p913_p2 }
  0x25   : > { %923 = shalt.err (!%p920_p4)
}
  0x26   : > { %806 = dma.hbm_to_vmem [thread:$0]  (!%p1265_p6), %s1560_s1, 16, %s1252_s29, [#allocation6]  }
  0x27   : > { %s924_s15 = scalar_lea.hbm %s1562_s3, 256 }
  0x28   : > { %p925_p10 = scmp.ne.s32.totalorder %s1562_s3, %s924_s15  ;;  %p931_p4 = scmp.lt.u32.totalorder %s924_s15, %s1562_s3 }
  0x2a   : > { %p927_p11 = pnand %p925_p10, %p1279_p8 }
  0x2c   : > { %p928_p12 = pneg %p927_p11 }
  0x2e   : > { %p933_p13 = pnand %p931_p4, %p928_p12 }
  0x30   : > { %936 = shalt.err (!%p933_p13)
}
  0x31   : > { %s937_s29 = scalar_lea.vmem %s1261_s10, 256  ;;  %p945_p7 = scmp.lt.s32.totalorder %s1261_s10, %s1261_s10 }
  0x32   : > { %p938_p0 = scmp.ne.s32.totalorder %s1261_s10, %s937_s29  ;;  %p946_p9 = scmp.lt.s32.totalorder %s937_s29, %s937_s29 }
  0x34   : > { %p940_p2 = pnand %p938_p0, %p1279_p8  ;;  %p947_p10 = por %p946_p9, %p945_p7 }
  0x36   : > { %p941_p5 = pneg %p940_p2 }
  0x38   : > { %p948_p11 = pnand %p947_p10, %p941_p5 }
  0x3a   : > { %951 = shalt.err (!%p948_p11)
}
  0x3b   : > { %s1177_s21 = smov 64   ;;  %s1178_s22 = smov 4  }
  0x3c   : > { %812 = dma.hbm_to_vmem [thread:$0]  (!%p1265_p6), %s1562_s3, 256, %s1261_s10, [#allocation9], %s1177_s21, %s1177_s21, %s1178_s22  }
  0x3d   : > { %s952_s14 = scalar_lea.hbm %s1564_s5, 512 }
  0x3e   : > { %p953_p12 = scmp.ne.s32.totalorder %s1564_s5, %s952_s14  ;;  %p959_p0 = scmp.lt.u32.totalorder %s952_s14, %s1564_s5 }
  0x40   : > { %p955_p4 = pnand %p953_p12, %p1279_p8 }
  0x42   : > { %p956_p13 = pneg %p955_p4 }
  0x44   : > { %p961_p2 = pnand %p959_p0, %p956_p13 }
  0x46   : > { %964 = shalt.err (!%p961_p2)
}
  0x47   : > { %s965_s10 = scalar_lea.vmem %s1269_s13, 512  ;;  %p973_p10 = scmp.lt.s32.totalorder %s1269_s13, %s1269_s13 }
  0x48   : > { %p966_p5 = scmp.ne.s32.totalorder %s1269_s13, %s965_s10  ;;  %p974_p11 = scmp.lt.s32.totalorder %s965_s10, %s965_s10 }
  0x4a   : > { %p968_p7 = pnand %p966_p5, %p1279_p8  ;;  %p975_p12 = por %p974_p11, %p973_p10 }
  0x4c   : > { %p969_p9 = pneg %p968_p7 }
  0x4e   : > { %p976_p4 = pnand %p975_p12, %p969_p9 }
  0x50   : > { %979 = shalt.err (!%p976_p4)
}
  0x51   : > { %818 = dma.hbm_to_vmem [thread:$0]  (!%p1265_p6), %s1564_s5, 512, %s1269_s13, [#allocation12], %s1177_s21, %s1177_s21, %s1178_s22  }
  0x52   : > { %s1179_s23 = smov [#allocation7]   ;;  %s1180_s9 = smov [#allocation10]  }
  0x53   : > { %s233_s28 = sshll.u32 %s1179_s23, 4  ;;  %s257_s12 = sshll.u32 %s1180_s9, 4  ;;  %s234_s28 = int_to_ptr.vmem [resolvable:$true] %s233_s28  ;;  %s258_s12 = int_to_ptr.vmem [resolvable:$true] %s257_s12 }
  0x54   : > { %s980_s16 = scalar_lea.hbm %s1561_s2, 16 }
  0x55   : > { %p981_p13 = scmp.ne.s32.totalorder %s1561_s2, %s980_s16  ;;  %p987_p5 = scmp.lt.u32.totalorder %s980_s16, %s1561_s2 }
  0x57   : > { %p983_p0 = pnand %p981_p13, %p1279_p8 }
  0x59   : > { %p984_p2 = pneg %p983_p0 }
  0x5b   : > { %p989_p7 = pnand %p987_p5, %p984_p2 }
  0x5d   : > { %992 = shalt.err (!%p989_p7)
}
  0x5e   : > { %s993_s13 = scalar_lea.vmem %s234_s28, 16  ;;  %s1000_s21 = scalar_lea.vmem %s234_s28, 32 }
  0x5f   : > { %p994_p9 = scmp.ne.s32.totalorder %s234_s28, %s993_s13  ;;  %p1001_p12 = scmp.lt.s32.totalorder %s234_s28, %s234_s28 }
  0x60   : > { %p1002_p4 = scmp.lt.s32.totalorder %s1000_s21, %s993_s13 }
  0x61   : > { %p996_p10 = pnand %p994_p9, %p1279_p8 }
  0x62   : > { %p1003_p1 = por %p1002_p4, %p1001_p12 }
  0x63   : > { %p997_p11 = pneg %p996_p10 }
  0x65   : > { %p1004_p3 = pnand %p1003_p1, %p997_p11 }
  0x67   : > { %1007 = shalt.err (!%p1004_p3)
}
  0x68   : > { %809 = dma.hbm_to_vmem [thread:$0]  (!%p1265_p6), %s1561_s2, 16, %s234_s28, [#allocation6]  }
  0x69   : > { %s1008_s14 = scalar_lea.hbm %s1563_s4, 16 }
  0x6a   : > { %p1009_p13 = scmp.ne.s32.totalorder %s1563_s4, %s1008_s14  ;;  %p1015_p3 = scmp.lt.u32.totalorder %s1008_s14, %s1563_s4 }
  0x6c   : > { %p1011_p0 = pnand %p1009_p13, %p1279_p8 }
  0x6e   : > { %p1012_p1 = pneg %p1011_p0 }
  0x70   : > { %p1017_p2 = pnand %p1015_p3, %p1012_p1 }
  0x72   : > { %1020 = shalt.err (!%p1017_p2)
}
  0x73   : > { %s1021_s10 = scalar_lea.vmem %s258_s12, 16  ;;  %s1028_s28 = scalar_lea.vmem %s258_s12, 32 }
  0x74   : > { %p1022_p5 = scmp.ne.s32.totalorder %s258_s12, %s1021_s10  ;;  %p1029_p10 = scmp.lt.s32.totalorder %s258_s12, %s258_s12 }
  0x75   : > { %p1030_p11 = scmp.lt.s32.totalorder %s1028_s28, %s1021_s10 }
  0x76   : > { %p1024_p7 = pnand %p1022_p5, %p1279_p8 }
  0x77   : > { %p1031_p12 = por %p1030_p11, %p1029_p10 }
  0x78   : > { %p1025_p9 = pneg %p1024_p7 }
  0x7a   : > { %p1032_p4 = pnand %p1031_p12, %p1025_p9 }
  0x7c   : > { %1035 = shalt.err (!%p1032_p4)
}
  0x7d   : > { %815 = dma.hbm_to_vmem [thread:$0]  (!%p1265_p6), %s1563_s4, 16, %s258_s12, [#allocation9]  }
  0x7e   : > { %s1181_s21 = smov [#allocation13]   ;;  %s1036_s9 = scalar_lea.hbm %s1565_s6, 16 }
  0x7f   : > { %s281_s22 = sshll.u32 %s1181_s21, 4  ;;  %p1037_p13 = scmp.ne.s32.totalorder %s1565_s6, %s1036_s9  ;;  %s282_s22 = int_to_ptr.vmem [resolvable:$true] %s281_s22 }
  0x80   : > { %p1043_p3 = scmp.lt.u32.totalorder %s1036_s9, %s1565_s6 }
  0x81   : > { %p1039_p0 = pnand %p1037_p13, %p1279_p8 }
  0x83   : > { %p1040_p1 = pneg %p1039_p0 }
  0x85   : > { %p1045_p2 = pnand %p1043_p3, %p1040_p1 }
  0x87   : > { %1048 = shalt.err (!%p1045_p2)
}
  0x88   : > { %s1049_s12 = scalar_lea.vmem %s282_s22, 16  ;;  %s1056_s18 = scalar_lea.vmem %s282_s22, 32 }
  0x89   : > { %p1050_p5 = scmp.ne.s32.totalorder %s282_s22, %s1049_s12  ;;  %p1057_p10 = scmp.lt.s32.totalorder %s282_s22, %s282_s22 }
  0x8a   : > { %p1058_p11 = scmp.lt.s32.totalorder %s1056_s18, %s1049_s12 }
  0x8b   : > { %p1052_p7 = pnand %p1050_p5, %p1279_p8 }
  0x8c   : > { %p1059_p12 = por %p1058_p11, %p1057_p10 }
  0x8d   : > { %p1053_p9 = pneg %p1052_p7 }
  0x8f   : > { %p1060_p4 = pnand %p1059_p12, %p1053_p9 }
  0x91   : > { %1063 = shalt.err (!%p1060_p4)
}
  0x92   : > { %821 = dma.hbm_to_vmem [thread:$0]  (!%p1265_p6), %s1565_s6, 16, %s282_s22, [#allocation12]  }
  0x93   : > { %s711_s19 = sadd.s32 4294967294, %s1172_s27   ;;  %s1403_s11 = sadd.s32 1, %s1172_s27  }
  0x94   : > { %s30_s20 = ssub.s32 %s1172_s27, %s1403_s11  ;;  %s33_s13 = sadd.s32 1, %s1168_s26 }
  0x95   : > { %p31_p8 = scmp.eq.s32.totalorder %s30_s20, 0  ;;  %p40_p13 = scmp.ne.s32.totalorder %s1168_s26, %s1164_s25 }
  0x96   : > { %p41_p0 = scmp.eq.s32.totalorder %s1172_s27, 0  ;;  %p46_p1 = scmp.ne.s32.totalorder %s1164_s25, %s1160_s24 }
  0x97   : > { %s1414_s21 = scalar_select %p31_p8, %s1168_s26, %s33_s13  }
  0x98   : > { %p1416_p3 = por %p41_p0, %p40_p13  ;;  %p1574_p2 = scmp.eq.s32.totalorder %s1247_s30, 0 }
  0x99   : > { %p196_p5 = scmp.eq.s32.totalorder %s1247_s30, 1  ;;  %p202_p7 = scmp.eq.s32.totalorder %s711_s19, 1 }
  0x9a   : > { %p1422_p6 = por %p1574_p2, %p46_p1  ;;  %p836_p9 = scmp.lt.s32.totalorder %s1172_s27, 2 }
  0x9b   : > { %s292_s23 = sand.u32 1, %s1168_s26   ;;  %p1429_p10 = por %p196_p5, %p40_p13 }
  0x9c   : > { %p1433_p11 = por %p202_p7, %p46_p1  ;;  %s720_s15 = sshll.u32 %s292_s23, 2 }
  0x9d   : > { %s1576_s9 = scalar_select %p1429_p10, 1, 0 }
  0x9e   : > { %s1577_s14 = scalar_select %p1433_p11, 1, 0 }
  0x9f   : > { %s721_s16 = sshll.u32 %s1172_s27, 6  ;;  %s296_s10 = scalar_lea.vmem [#allocation2], %s720_s15 }
  0xa0   : > { %s1441_s18 = scalar_lea.hbm %s1559_s0, %s721_s16  ;;  %s303_s28 = sshll.u32 %s296_s10, 4  ;;  %s1443_s28 = int_to_ptr.vmem [resolvable:$true] %s303_s28 }
  0xa1   : > { %p1447_p12 = pnand %p836_p9, %p1416_p3  ;;  %s293_s20 = scalar_lea.sflag [#allocation3], %s292_s23 }
  0xa2   : > { %s1064_s13 = scalar_lea.hbm %s1441_s18, 64  ;;  %s1069_s17 = scalar_lea.hbm %s1559_s0, 128 }
  0xa3   : > { %p1065_p4 = scmp.ne.s32.totalorder %s1441_s18, %s1064_s13  ;;  %p1066_p8 = pneg %p1447_p12 }
  0xa4   : > { %p1070_p1 = scmp.lt.u32.totalorder %s1441_s18, %s1559_s0  ;;  %p1071_p3 = scmp.lt.u32.totalorder %s1069_s17, %s1064_s13 }
  0xa5   : > { %p1067_p13 = pnand %p1066_p8, %p1065_p4  ;;  %p1073_p5 = scmp.lt.u32.totalorder %s1064_s13, %s1441_s18 }
  0xa6   : > { %p1072_p2 = por %p1071_p3, %p1070_p1 }
  0xa7   : > { %p1068_p0 = pneg %p1067_p13 }
  0xa8   : > { %p1074_p7 = por %p1073_p5, %p1072_p2 }
  0xaa   : > { %p1075_p9 = pnand %p1074_p7, %p1068_p0 }
  0xac   : > { %1078 = shalt.err (!%p1075_p9)
}
  0xad   : > { %s1079_s23 = scalar_lea.vmem %s1443_s28, 64  ;;  %s1182_s10 = smov [#allocation2]  }
  0xae   : > { %p1080_p4 = scmp.ne.s32.totalorder %s1443_s28, %s1079_s23  ;;  %s1084_s15 = sshll.u32 %s1182_s10, 4  ;;  %s1085_s15 = int_to_ptr.vmem [resolvable:$false] %s1084_s15 }
  0xaf   : > { %s1086_s16 = scalar_lea.vmem %s1085_s15, 128  ;;  %p1087_p10 = scmp.lt.s32.totalorder %s1443_s28, %s1085_s15 }
  0xb0   : > { %p1082_p13 = pnand %p1080_p4, %p1066_p8  ;;  %p1088_p1 = scmp.lt.s32.totalorder %s1086_s16, %s1079_s23 }
  0xb2   : > { %p1083_p11 = pneg %p1082_p13  ;;  %p1089_p3 = por %p1088_p1, %p1087_p10 }
  0xb4   : > { %p1090_p2 = pnand %p1089_p3, %p1083_p11 }
  0xb6   : > { %1093 = shalt.err (!%p1090_p2)
}
  0xb7   : > { %825 = dma.hbm_to_vmem [thread:$0]  (!%p1447_p12), %s1441_s18, 64, %s1443_s28, %s293_s20  }
  0xb8   : > { %p1579_p0 = scmp.ne.s32.totalorder %s1570_s8, 0 }
  0xb9   : > { %s1479_s13 = sand.u32 (!%p1579_p0), 1, %s1164_s25  }
  0xba   : > { %312 = sbr.rel (%p1579_p0) target bundleno = 985 (0x3d9), region = 48  ;;  %s723_s17 = sshll.u32 (!%p1579_p0), %s1479_s13, 2 }
  0xbb   : > { %s315_s29 = scalar_lea.sflag (!%p1579_p0), [#allocation3], %s1479_s13  ;;  %s318_s12 = scalar_lea.vmem (!%p1579_p0), [#allocation2], %s723_s17 }
  0xc1   : > { %1139 = dma.done.wait (%p1422_p6), %s315_s29, 64  }
  0xc2   : > { %1141 = vsyncadd (%p1422_p6), %s315_s29, 4294967232  ;;  %p1580_p10 = scmp.eq.s32.totalorder %s1247_s30, 0 }
  0xc4   : > { %1143 = dma.done.wait (%p1580_p10), [#allocation6], 32   ;;  %p1581_p11 = pmov %p1580_p10 }
  0xc5   : > { %p1582_p12 = pmov %p1580_p10 }
  0xc6   : > { %1145 = vsyncadd (%p1581_p11), [#allocation6], 4294967264 }
  0xc7   : > { %1147 = dma.done.wait (%p1582_p12), [#allocation9], 272   ;;  %p1583_p8 = pmov %p1580_p10 }
  0xc9   : > { %1149 = vsyncadd (%p1583_p8), [#allocation9], 4294967024  ;;  %p1584_p5 = pmov %p1583_p8 }
  0xcb   : > { %1151 = dma.done.wait (%p1584_p5), [#allocation12], 528   ;;  %p1585_p7 = pmov %p1584_p5 }
  0xcc   : > { %v374_v0 = vld [vmem:[%s318_s12] sm:$0xf]  ;;  %vm378_vm0 = vcmask 261120   ;;  %v886_v8 = vld [vmem:[#allocation8] sm:$0xff]   ;;  %v1183_v9 = vmov 0.0   ;;  %vm1184_vm1 = vmmov 0  }
  0xcd   : > { %1153 = vsyncadd (%p1585_p7), [#allocation12], 4294966768  ;;  %v1501_v1 = vunpack.c.l.bf16 %v374_v0  ;;  %755 = vmatprep.subr.bf16.mxu0 %v1183_v9  ;;  %759 = vmatprep.mubr.msk.bf16.mxu0 %vm1184_vm1, %v1183_v9  ;;  %v887_v10 = vld [vmem:[#allocation8 + $0x8] sm:$0xff]   ;;  %v888_v11 = vld [vmem:[#allocation11] sm:$0xff]   ;;  %vm522_vm4 = vcmask 523264   ;;  %s744_s8 = sshll.u32 %s1247_s30, 6 }
  0xce   : > { %756 = vmatpush3.bf16.msra.mxu0 %v886_v8  ;;  %763 = vmatprep.subr.bf16.mxu1 %v1183_v9  ;;  %v889_v12 = vld [vmem:[#allocation11 + $0x8] sm:$0xff]   ;;  %v890_v28 = vld [vmem:[#allocation11 + $0x10] sm:$0xff]   ;;  %v891_v29 = vld [vmem:[#allocation11 + $0x18] sm:$0xff]   ;;  %s372_s22 = scalar_lea.vmem [#allocation14], %s723_s17  ;;  %vm568_vm5 = vcmask 257024   ;;  %s1515_s20 = scalar_lea.hbm %s1566_s7, %s744_s8 }
  0xcf   : > { %v379_v2 = vsel %vm378_vm0, %v1501_v1, 0.0  ;;  %757 = vmatprep.subr.bf16.mxu0 %v1183_v9  ;;  %771 = vmatprep.mubr.msk.bf16.mxu1 %vm1184_vm1, %v1183_v9  ;;  %v731_v21 = vld [vmem:[#allocation5] ss:$0 sm:$0xff]  ;;  %v732_v24 = vld [vmem:[#allocation7] ss:$0 sm:$0xff]  ;;  %s584_s18 = sshll.u32 %s372_s22, 4  ;;  %s1517_s18 = int_to_ptr.vmem [resolvable:$true] %s584_s18 }
  0xd0   : > { %380 = vadd.xlane.f32.xlu0 %v379_v2  ;;  %764 = vmatpush3.bf16.msra.mxu1 %v888_v11  ;;  %v733_v30 = vld [vmem:[#allocation10] ss:$0 sm:$0xff]  ;;  %v737_v38 = vld [vmem:[#allocation13] ss:$0 sm:$0xff]  ;;  %s571_s30 = scalar_lea.sflag [#allocation4], %s1479_s13  ;;  %s1094_s23 = scalar_lea.vmem %s1517_s18, 64 }
  0xd1   : > { %765 = vmatprep.subr.bf16.mxu1 %v1183_v9  ;;  %p1095_p6 = scmp.ne.s32.totalorder %s1517_s18, %s1094_s23  ;;  %p1586_p9 = scmp.ne.s32.totalorder %s1576_s9, 0 }
  0xd2   : > { %758 = vmatpush3.bf16.msra.mxu0 %v887_v10  ;;  %s1185_s10 = smov [#allocation14]  }
  0xd3   : > { %p1096_p4 = pnand %p1095_p6, %p1586_p9  ;;  %s1098_s15 = sshll.u32 %s1185_s10, 4  ;;  %s1099_s15 = int_to_ptr.vmem [resolvable:$false] %s1098_s15 }
  0xd4   : > { %766 = vmatpush3.bf16.msra.mxu1 %v889_v12  ;;  %s1100_s16 = scalar_lea.vmem %s1099_s15, 128  ;;  %p1101_p1 = scmp.lt.s32.totalorder %s1517_s18, %s1099_s15 }
  0xd5   : > { %767 = vmatprep.subr.bf16.mxu1 %v1183_v9  ;;  %p1097_p13 = pneg %p1096_p4  ;;  %p1102_p3 = scmp.lt.s32.totalorder %s1100_s16, %s1094_s23 }
  0xd7   : > { %p1103_p2 = por %p1102_p3, %p1101_p1 }
  0xd8   : > { %768 = vmatpush3.bf16.msra.mxu1 %v890_v28 }
  0xd9   : > { %769 = vmatprep.subr.bf16.mxu1 %v1183_v9  ;;  %p1104_p0 = pnand %p1103_p2, %p1097_p13 }
  0xdc   : > { %770 = vmatpush3.bf16.msra.mxu1 %v891_v29 }
 0x15d   : > { %v381_v3 = vpop.xlane.xlu0 %380 }
 0x15e   : > { %v383_v4 = vmul.f32 0.03125, %v381_v3 }
 0x160   : > { %v384_v5 = vsub.f32 %v1501_v1, %v383_v4 }
 0x162   : > { %v385_v6 = vmul.f32 %v384_v5, %v384_v5  ;;  %v405_v22 = vmul.f32 %v731_v21, %v384_v5 }
 0x164   : > { %v386_v7 = vsel %vm378_vm0, %v385_v6, 0.0 }
 0x165   : > { %387 = vadd.xlane.f32.xlu0 %v386_v7 }
 0x1f2   : > { %v388_v13 = vpop.xlane.xlu0 %387 }
 0x1f3   : > { %v389_v14 = vmul.f32 0.032258064, %v388_v13 }
 0x1f5   : > { %892 = vrsqrt.f32 %v389_v14  ;;  %vm392_vm2 = vcmp.eq.f32.partialorder %v389_v14, inf  ;;  %v395_v17 = vand.u32 2147483648, %v389_v14  ;;  %vm394_vm3 = vcmp.eq.f32.partialorder %v389_v14, 0.0 }
 0x1ff   : > { %v893_v15 = vpop.eup %892 }
 0x200   : > { %v391_v16 = vmul.f32 %v893_v15, %v389_v14 }
 0x202   : > { %v393_v18 = vsel %vm392_vm2, %v389_v14, %v391_v16 }
 0x203   : > { %v396_v19 = vsel %vm394_vm3, %v395_v17, %v393_v18 }
 0x204   : > { %v397_v20 = vadd.f32 1e-06, %v396_v19 }
 0x206   : > { %894 = vrcp.f32 %v397_v20 }
 0x210   : > { %v895_v23 = vpop.eup %894 }
 0x211   : > { %v406_v25 = vmul.f32 %v895_v23, %v405_v22 }
 0x213   : > { %v413_v26 = vadd.f32 %v732_v24, %v406_v25 }
 0x215   : > { %v414_v27 = vpack.c.bf16 %v413_v26, %v413_v26 }
 0x217   : > { %760 = vmatmul.mubr.msk.bf16.vlgmr.msra.gmra.mrb[0].mxu0 %vm378_vm0, %v414_v27 }
 0x2ea   : > { %v475_v31 = vpop.f32.mrb[0].mxu0 }
 0x2eb   : > { %v476_v32 = vadd.f32 %v733_v30, %v475_v31  ;;  %v761_v33 = vpop.f32.mrb[1].mxu0 }
 0x2ec   : > { %v478_v34 = vpop.f32.mrb[2].mxu0 }
 0x2ed   : > { %v481_v35 = vmax.f32 %v476_v32, 0.0  ;;  %v762_v36 = vpop.f32.mrb[3].mxu0 }
 0x2ef   : > { %v482_v37 = vpack.c.bf16 %v481_v35, %v481_v35 }
 0x2f1   : > { %772 = vmatmul.mubr.msk.bf16.vlgmr.msra.gmra.mrb[0].mxu1 %vm522_vm4, %v482_v37 }
 0x3c4   : > { %v560_v39 = vpop.f32.mrb[0].mxu1 }
 0x3c5   : > { %v561_v40 = vadd.f32 %v737_v38, %v560_v39  ;;  %v773_v41 = vpop.f32.mrb[1].mxu1 }
 0x3c6   : > { %v563_v42 = vpop.f32.mrb[2].mxu1 }
 0x3c7   : > { %v566_v43 = vadd.f32 %v561_v40, %v1501_v1  ;;  %v774_v44 = vpop.f32.mrb[3].mxu1 }
 0x3c9   : > { %v567_v45 = vpack.c.bf16 %v566_v43, %v566_v43 }
 0x3cb   : > { %569 = vst.msk [vmem:[%s372_s22] sm:$0xf] %vm568_vm5, %v567_v45 }
 0x3cc   : > { %1107 = shalt.err (!%p1104_p0)
}
 0x3cd   : > { %s1108_s13 = scalar_lea.hbm %s1515_s20, 64  ;;  %s1112_s12 = scalar_lea.hbm %s1566_s7, 128 }
 0x3ce   : > { %p1109_p10 = scmp.ne.s32.totalorder %s1515_s20, %s1108_s13  ;;  %p1113_p8 = scmp.lt.u32.totalorder %s1515_s20, %s1566_s7 }
 0x3cf   : > { %p1114_p5 = scmp.lt.u32.totalorder %s1112_s12, %s1108_s13  ;;  %p1116_p6 = scmp.lt.u32.totalorder %s1108_s13, %s1515_s20 }
 0x3d0   : > { %p1110_p11 = pnand %p1109_p10, %p1586_p9 }
 0x3d1   : > { %p1115_p7 = por %p1114_p5, %p1113_p8 }
 0x3d2   : > { %p1111_p12 = pneg %p1110_p11 }
 0x3d3   : > { %p1117_p4 = por %p1116_p6, %p1115_p7 }
 0x3d5   : > { %p1118_p13 = pnand %p1117_p4, %p1111_p12 }
 0x3d7   : > { %1121 = shalt.err (!%p1118_p13)
}
 0x3d8   : > { %801 = dma.vmem_to_hbm [thread:$0]  (%p1586_p9), %s1517_s18, 64, %s1515_s20, %s571_s30  }
 0x3d9 PF: > { %s596_s28 = sand.u32 1, %s1160_s24   ;;  %p1587_p1 = scmp.ne.s32.totalorder %s1577_s14, 0 }
 0x3da   : > { %p1588_p3 = scmp.ge.s32.totalorder %s1172_s27, 2  ;;  %s597_s19 = scalar_lea.sflag [#allocation4], %s596_s28 }
 0x3dc   : > { %p827_p2 = pnand %p1588_p3, %p1587_p1 }
 0x3de   : > { %1155 = dma.done.wait (!%p827_p2), %s597_s19, 64  }
 0x3df   : > { %1157 = vsyncadd (!%p827_p2), %s597_s19, 4294967232  ;;  %p23_p0 = scmp.ge.s32.totalorder %s1403_s11, 4   ;;  %s1589_s24 = smov %s1164_s25 }
 0x3e0   : > { %s1590_s25 = smov %s1168_s26  ;;  %s1591_s26 = smov %s1414_s21 }
 0x3e1   : > { %s1592_s27 = smov %s1403_s11  ;;  %25 = sbr.rel (!%p23_p0) target bundleno = 8 (0x8), region = 117 }
 0x3e8   :  { %602 = vsyncpa [#allocation3], 1 }
 0x3e9   :  { %604 = vsyncpa [#allocation3 + $0x1], 1 }
 0x3ea   :  { %605 = vsyncpa [#allocation6], 1 }
 0x3eb   :  { %606 = vsyncpa [#allocation9], 1 }
 0x3ec   :  { %607 = vsyncpa [#allocation12], 1 }
 0x3ed   :  { %608 = vsyncpa [#allocation4], 1 }
 0x3ee   :  { %610 = vsyncpa [#allocation4 + $0x1], 1 }

// kernel: decoder_forward.7
= control target key start
LH: loop header
LB: loop body
LE: loop exit
PB: predicated region body
PF: predicated region fallthrough
CT: control target
= control target key end

     0   :  { %s2923_s0 = inlined_call_operand.hbm [shape: f32[2,8,32], index: 0, kind: input, shape index: {}, may-alias: {0,1}]   ;;  %s2924_s1 = inlined_call_operand.hbm [shape: f32[2,8,32], index: 1, kind: input, shape index: {}, may-alias: {0,1}]   ;;  %s2925_s2 = inlined_call_operand.hbm [shape: f32[1,32], index: 2, kind: input, shape index: {}]   ;;  %s2926_s3 = inlined_call_operand.hbm [shape: f32[1,32], index: 3, kind: input, shape index: {}]   ;;  %s2927_s4 = inlined_call_operand.hbm [shape: bf16[32,32], index: 4, kind: input, shape index: {}]   ;;  %s2928_s5 = inlined_call_operand.hbm [shape: f32[1,32], index: 5, kind: input, shape index: {}]   ;;  %s2929_s6 = inlined_call_operand.hbm [shape: bf16[32,64], index: 6, kind: input, shape index: {}]   ;;  %s2930_s7 = inlined_call_operand.hbm [shape: f32[1,64], index: 7, kind: input, shape index: {}]   ;;  %s2931_s8 = inlined_call_operand.hbm [shape: bf16[32,32], index: 8, kind: input, shape index: {}]   ;;  %s2932_s9 = inlined_call_operand.hbm [shape: f32[1,32], index: 9, kind: input, shape index: {}]   ;;  %s2933_s10 = inlined_call_operand.hbm [shape: bf16[1,8,8], index: 10, kind: input, shape index: {}]   ;;  %s2934_s11 = inlined_call_operand.hbm [shape: bf16[2,8,32], index: 11, kind: output, shape index: {}]  }
   0x1   :  { %2941 = sst [smem:[#allocation32_spill]] %s2925_s2 }
   0x2   :  { %2942 = sst [smem:[#allocation33_spill]] %s2926_s3 }
   0x3   :  { %2943 = sst [smem:[#allocation34_spill]] %s2927_s4 }
   0x4   :  { %2944 = sst [smem:[#allocation35_spill]] %s2928_s5 }
   0x5   :  { %2945 = sst [smem:[#allocation36_spill]] %s2929_s6 }
   0x6   :  { %2946 = sst [smem:[#allocation37_spill]] %s2930_s7 }
   0x7   :  { %2947 = sst [smem:[#allocation38_spill]] %s2931_s8 }
   0x8   :  { %2948 = sst [smem:[#allocation39_spill]] %s2934_s11 }
   0x9   :  { %16 = vsyncpa [#allocation4], 0 }
   0xa   :  { %18 = vsyncpa [#allocation4 + $0x1], 0 }
   0xb   :  { %19 = vsyncpa [#allocation7], 0 }
   0xc   :  { %21 = vsyncpa [#allocation7 + $0x1], 0 }
   0xd   :  { %22 = vsyncpa [#allocation10], 0 }
   0xe   :  { %23 = vsyncpa [#allocation13], 0 }
   0xf   :  { %24 = vsyncpa [#allocation16], 0 }
  0x10   :  { %25 = vsyncpa [#allocation19], 0 }
  0x11   :  { %26 = vsyncpa [#allocation5], 0 }
  0x12   :  { %28 = vsyncpa [#allocation5 + $0x1], 0  ;;  %s2396_s17 = smov 0   ;;  %s2398_s18 = smov 0  }
  0x13   :  { %s2400_s19 = smov 0   ;;  %s2402_s20 = smov 0  }
  0x14   :  { %s2404_s21 = smov 0   ;;  %s2406_s22 = smov 0  }
  0x15 LB: > { %2949 = sst [smem:[#allocation30_spill]] %s2300_s20  ;;  %s2427_s23 = sadd.s32 4294967295, %s2308_s22   ;;  %s2308_s22 = sphi %s2406_s22, %s34_s22   ;;  %s2304_s21 = sphi %s2404_s21, %s2989_s21   ;;  %s2300_s20 = sphi %s2402_s20, %s2988_s20   ;;  %s2296_s19 = sphi %s2400_s19, %s2987_s19   ;;  %s2292_s18 = sphi %s2398_s18, %s2986_s18   ;;  %s2288_s17 = sphi %s2396_s17, %s2985_s17  }
  0x16   : > { %p1531_p0 = scmp.ge.s32.totalorder %s2308_s22, 1  ;;  %p2936_p1 = scmp.eq.s32.totalorder %s2427_s23, 0 }
  0x17   : > { %p327_p2 = scmp.lt.s32.totalorder %s2308_s22, 3  ;;  %s2310_s25 = smov [#allocation8]  }
  0x18   : > { %s340_s26 = sshll.u32 %s2310_s25, 4  ;;  %s2311_s27 = smov [#allocation9]   ;;  %s341_s26 = int_to_ptr.vmem [resolvable:$true] %s340_s26 }
  0x19   : > { %p2432_p3 = pnand %p1531_p0, %p327_p2  ;;  %s351_s28 = sshll.u32 %s2311_s27, 4  ;;  %s2445_s28 = int_to_ptr.vmem [resolvable:$true] %s351_s28 }
  0x1a   : > { %s2312_s30 = smov [#allocation12]   ;;  %s2953_s2 = sld [smem:[#allocation32_spill]] }
  0x1b   : > { %s2950_s24 = scalar_select %p2432_p3, 1, 0 }
  0x1c   : > { %p1730_p5 = pneg %p2432_p3  ;;  %s375_s12 = sshll.u32 %s2312_s30, 4  ;;  %s2447_s12 = int_to_ptr.vmem [resolvable:$true] %s375_s12 }
  0x1d   : > { %2951 = sst [smem:[#allocation31_spill]] %s2950_s24 }
  0x1e   : > { %p2441_p6 = pnand %p1730_p5, %p2936_p1 }
  0x20   : > { %s1890_s15 = scalar_lea.hbm %s2953_s2, 16  ;;  %p2457_p8 = pneg %p2441_p6 }
  0x21   : > { %p1891_p7 = scmp.ne.s32.totalorder %s2953_s2, %s1890_s15  ;;  %p1897_p11 = scmp.lt.u32.totalorder %s1890_s15, %s2953_s2 }
  0x23   : > { %p1893_p9 = pnand %p2457_p8, %p1891_p7 }
  0x25   : > { %p1894_p10 = pneg %p1893_p9 }
  0x27   : > { %p1899_p12 = pnand %p1897_p11, %p1894_p10 }
  0x29   : > { %1902 = shalt.err (!%p1899_p12)
}
  0x2a   : > { %s1903_s13 = scalar_lea.vmem %s341_s26, 16  ;;  %s1910_s14 = scalar_lea.vmem %s341_s26, 32 }
  0x2b   : > { %p1904_p13 = scmp.ne.s32.totalorder %s341_s26, %s1903_s13  ;;  %p1911_p5 = scmp.lt.s32.totalorder %s341_s26, %s341_s26 }
  0x2c   : > { %p1912_p4 = scmp.lt.s32.totalorder %s1910_s14, %s1903_s13 }
  0x2d   : > { %p1906_p0 = pnand %p1904_p13, %p2457_p8 }
  0x2e   : > { %p1913_p1 = por %p1912_p4, %p1911_p5 }
  0x2f   : > { %p1907_p2 = pneg %p1906_p0 }
  0x31   : > { %p1914_p3 = pnand %p1913_p1, %p1907_p2 }
  0x33   : > { %1917 = shalt.err (!%p1914_p3)
}
  0x34   : > { %1733 = dma.hbm_to_vmem [thread:$0]  (!%p2441_p6), %s2953_s2, 16, %s341_s26, [#allocation7]  }
  0x35   : > { %s2955_s3 = sld [smem:[#allocation33_spill]] }
  0x3b   : > { %s1918_s30 = scalar_lea.hbm %s2955_s3, 16 }
  0x3c   : > { %p1919_p7 = scmp.ne.s32.totalorder %s2955_s3, %s1918_s30  ;;  %p1925_p1 = scmp.lt.u32.totalorder %s1918_s30, %s2955_s3 }
  0x3e   : > { %p1921_p9 = pnand %p1919_p7, %p2457_p8 }
  0x40   : > { %p1922_p4 = pneg %p1921_p9 }
  0x42   : > { %p1927_p3 = pnand %p1925_p1, %p1922_p4 }
  0x44   : > { %1930 = shalt.err (!%p1927_p3)
}
  0x45   : > { %s1931_s26 = scalar_lea.vmem %s2445_s28, 16  ;;  %s1938_s20 = scalar_lea.vmem %s2445_s28, 32 }
  0x46   : > { %p1932_p10 = scmp.ne.s32.totalorder %s2445_s28, %s1931_s26  ;;  %p1939_p13 = scmp.lt.s32.totalorder %s2445_s28, %s2445_s28 }
  0x47   : > { %p1940_p0 = scmp.lt.s32.totalorder %s1938_s20, %s1931_s26 }
  0x48   : > { %p1934_p11 = pnand %p1932_p10, %p2457_p8 }
  0x49   : > { %p1941_p2 = por %p1940_p0, %p1939_p13 }
  0x4a   : > { %p1935_p12 = pneg %p1934_p11 }
  0x4c   : > { %p1942_p5 = pnand %p1941_p2, %p1935_p12 }
  0x4e   : > { %1945 = shalt.err (!%p1942_p5)
}
  0x4f   : > { %1736 = dma.hbm_to_vmem [thread:$0]  (!%p2441_p6), %s2955_s3, 16, %s2445_s28, [#allocation10]  }
  0x50   : > { %s2956_s5 = sld [smem:[#allocation35_spill]] }
  0x56   : > { %s1946_s15 = scalar_lea.hbm %s2956_s5, 16 }
  0x57   : > { %p1947_p7 = scmp.ne.s32.totalorder %s2956_s5, %s1946_s15  ;;  %p1953_p1 = scmp.lt.u32.totalorder %s1946_s15, %s2956_s5 }
  0x59   : > { %p1949_p9 = pnand %p1947_p7, %p2457_p8 }
  0x5b   : > { %p1950_p4 = pneg %p1949_p9 }
  0x5d   : > { %p1955_p3 = pnand %p1953_p1, %p1950_p4 }
  0x5f   : > { %1958 = shalt.err (!%p1955_p3)
}
  0x60   : > { %s1959_s28 = scalar_lea.vmem %s2447_s12, 16  ;;  %s1966_s20 = scalar_lea.vmem %s2447_s12, 32 }
  0x61   : > { %p1960_p10 = scmp.ne.s32.totalorder %s2447_s12, %s1959_s28  ;;  %p1967_p13 = scmp.lt.s32.totalorder %s2447_s12, %s2447_s12 }
  0x62   : > { %p1968_p0 = scmp.lt.s32.totalorder %s1966_s20, %s1959_s28 }
  0x63   : > { %p1962_p11 = pnand %p1960_p10, %p2457_p8 }
  0x64   : > { %p1969_p2 = por %p1968_p0, %p1967_p13 }
  0x65   : > { %p1963_p12 = pneg %p1962_p11 }
  0x67   : > { %p1970_p5 = pnand %p1969_p2, %p1963_p12 }
  0x69   : > { %1973 = shalt.err (!%p1970_p5)
}
  0x6a   : > { %1742 = dma.hbm_to_vmem [thread:$0]  (!%p2441_p6), %s2956_s5, 16, %s2447_s12, [#allocation13]  }
  0x6b   : > { %s2313_s25 = smov [#allocation15]   ;;  %s2314_s15 = smov [#allocation18]  }
  0x6c   : > { %s399_s11 = sshll.u32 %s2313_s25, 4  ;;  %s423_s30 = sshll.u32 %s2314_s15, 4  ;;  %s400_s11 = int_to_ptr.vmem [resolvable:$true] %s399_s11  ;;  %s424_s30 = int_to_ptr.vmem [resolvable:$true] %s423_s30 }
  0x6d   : > { %s2957_s7 = sld [smem:[#allocation37_spill]] }
  0x73   : > { %s1974_s26 = scalar_lea.hbm %s2957_s7, 16 }
  0x74   : > { %p1975_p7 = scmp.ne.s32.totalorder %s2957_s7, %s1974_s26  ;;  %p1981_p1 = scmp.lt.u32.totalorder %s1974_s26, %s2957_s7 }
  0x76   : > { %p1977_p9 = pnand %p1975_p7, %p2457_p8 }
  0x78   : > { %p1978_p4 = pneg %p1977_p9 }
  0x7a   : > { %p1983_p3 = pnand %p1981_p1, %p1978_p4 }
  0x7c   : > { %1986 = shalt.err (!%p1983_p3)
}
  0x7d   : > { %s1987_s12 = scalar_lea.vmem %s400_s11, 16  ;;  %s1994_s16 = scalar_lea.vmem %s400_s11, 32 }
  0x7e   : > { %p1988_p10 = scmp.ne.s32.totalorder %s400_s11, %s1987_s12  ;;  %p1995_p13 = scmp.lt.s32.totalorder %s400_s11, %s400_s11 }
  0x7f   : > { %p1996_p0 = scmp.lt.s32.totalorder %s1994_s16, %s1987_s12 }
  0x80   : > { %p1990_p11 = pnand %p1988_p10, %p2457_p8 }
  0x81   : > { %p1997_p2 = por %p1996_p0, %p1995_p13 }
  0x82   : > { %p1991_p12 = pneg %p1990_p11 }
  0x84   : > { %p1998_p5 = pnand %p1997_p2, %p1991_p12 }
  0x86   : > { %2001 = shalt.err (!%p1998_p5)
}
  0x87   : > { %1748 = dma.hbm_to_vmem [thread:$0]  (!%p2441_p6), %s2957_s7, 16, %s400_s11, [#allocation16]  }
  0x88   : > { %s2002_s14 = scalar_lea.hbm %s2932_s9, 16 }
  0x89   : > { %p2003_p7 = scmp.ne.s32.totalorder %s2932_s9, %s2002_s14  ;;  %p2009_p1 = scmp.lt.u32.totalorder %s2002_s14, %s2932_s9 }
  0x8b   : > { %p2005_p9 = pnand %p2003_p7, %p2457_p8 }
  0x8d   : > { %p2006_p4 = pneg %p2005_p9 }
  0x8f   : > { %p2011_p3 = pnand %p2009_p1, %p2006_p4 }
  0x91   : > { %2014 = shalt.err (!%p2011_p3)
}
  0x92   : > { %s2015_s12 = scalar_lea.vmem %s424_s30, 16  ;;  %s2022_s11 = scalar_lea.vmem %s424_s30, 32 }
  0x93   : > { %p2016_p10 = scmp.ne.s32.totalorder %s424_s30, %s2015_s12  ;;  %p2023_p13 = scmp.lt.s32.totalorder %s424_s30, %s424_s30 }
  0x94   : > { %p2024_p0 = scmp.lt.s32.totalorder %s2022_s11, %s2015_s12 }
  0x95   : > { %p2018_p11 = pnand %p2016_p10, %p2457_p8 }
  0x96   : > { %p2025_p2 = por %p2024_p0, %p2023_p13 }
  0x97   : > { %p2019_p12 = pneg %p2018_p11 }
  0x99   : > { %p2026_p5 = pnand %p2025_p2, %p2019_p12 }
  0x9b   : > { %2029 = shalt.err (!%p2026_p5)
}
  0x9c   : > { %1754 = dma.hbm_to_vmem [thread:$0]  (!%p2441_p6), %s2932_s9, 16, %s424_s30, [#allocation19]  }
  0x9d   : > { %s2315_s15 = smov [#allocation11]   ;;  %s2958_s4 = sld [smem:[#allocation34_spill]] }
  0x9e   : > { %s361_s2 = sshll.u32 %s2315_s15, 4  ;;  %s362_s2 = int_to_ptr.vmem [resolvable:$true] %s361_s2 }
  0xa3   : > { %s2030_s26 = scalar_lea.hbm %s2958_s4, 256 }
  0xa4   : > { %p2031_p7 = scmp.ne.s32.totalorder %s2958_s4, %s2030_s26  ;;  %p2037_p1 = scmp.lt.u32.totalorder %s2030_s26, %s2958_s4 }
  0xa6   : > { %p2033_p9 = pnand %p2031_p7, %p2457_p8 }
  0xa8   : > { %p2034_p4 = pneg %p2033_p9 }
  0xaa   : > { %p2039_p3 = pnand %p2037_p1, %p2034_p4 }
  0xac   : > { %2042 = shalt.err (!%p2039_p3)
}
  0xad   : > { %s2043_s30 = scalar_lea.vmem %s362_s2, 256  ;;  %p2051_p13 = scmp.lt.s32.totalorder %s362_s2, %s362_s2 }
  0xae   : > { %p2044_p10 = scmp.ne.s32.totalorder %s362_s2, %s2043_s30  ;;  %p2052_p0 = scmp.lt.s32.totalorder %s2043_s30, %s2043_s30 }
  0xb0   : > { %p2046_p11 = pnand %p2044_p10, %p2457_p8  ;;  %p2053_p2 = por %p2052_p0, %p2051_p13 }
  0xb2   : > { %p2047_p12 = pneg %p2046_p11 }
  0xb4   : > { %p2054_p5 = pnand %p2053_p2, %p2047_p12 }
  0xb6   : > { %2057 = shalt.err (!%p2054_p5)
}
  0xb7   : > { %s2316_s11 = smov 64   ;;  %s2317_s16 = smov 4  }
  0xb8   : > { %1739 = dma.hbm_to_vmem [thread:$0]  (!%p2441_p6), %s2958_s4, 256, %s362_s2, [#allocation10], %s2316_s11, %s2316_s11, %s2317_s16  }
  0xb9   : > { %s2318_s13 = smov [#allocation14]   ;;  %s2319_s26 = smov [#allocation17]  }
  0xba   : > { %s385_s14 = sshll.u32 %s2318_s13, 4  ;;  %s409_s28 = sshll.u32 %s2319_s26, 4  ;;  %s386_s14 = int_to_ptr.vmem [resolvable:$true] %s385_s14  ;;  %s2578_s28 = int_to_ptr.vmem [resolvable:$true] %s409_s28 }
  0xbb   : > { %s2959_s6 = sld [smem:[#allocation36_spill]] }
  0xc1   : > { %s2058_s12 = scalar_lea.hbm %s2959_s6, 256 }
  0xc2   : > { %p2059_p7 = scmp.ne.s32.totalorder %s2959_s6, %s2058_s12  ;;  %p2065_p1 = scmp.lt.u32.totalorder %s2058_s12, %s2959_s6 }
  0xc4   : > { %p2061_p9 = pnand %p2059_p7, %p2457_p8 }
  0xc6   : > { %p2062_p4 = pneg %p2061_p9 }
  0xc8   : > { %p2067_p3 = pnand %p2065_p1, %p2062_p4 }
  0xca   : > { %2070 = shalt.err (!%p2067_p3)
}
  0xcb   : > { %s2071_s15 = scalar_lea.vmem %s386_s14, 256  ;;  %p2079_p13 = scmp.lt.s32.totalorder %s386_s14, %s386_s14 }
  0xcc   : > { %p2072_p10 = scmp.ne.s32.totalorder %s386_s14, %s2071_s15  ;;  %p2080_p0 = scmp.lt.s32.totalorder %s2071_s15, %s2071_s15 }
  0xce   : > { %p2074_p11 = pnand %p2072_p10, %p2457_p8  ;;  %p2081_p2 = por %p2080_p0, %p2079_p13 }
  0xd0   : > { %p2075_p12 = pneg %p2074_p11 }
  0xd2   : > { %p2082_p5 = pnand %p2081_p2, %p2075_p12 }
  0xd4   : > { %2085 = shalt.err (!%p2082_p5)
}
  0xd5   : > { %1745 = dma.hbm_to_vmem [thread:$0]  (!%p2441_p6), %s2959_s6, 256, %s386_s14, [#allocation13], %s2316_s11, %s2316_s11, %s2317_s16  }
  0xd6   : > { %s2960_s8 = sld [smem:[#allocation38_spill]] }
  0xdc   : > { %s2086_s24 = scalar_lea.hbm %s2960_s8, 256 }
  0xdd   : > { %p2087_p7 = scmp.ne.s32.totalorder %s2960_s8, %s2086_s24  ;;  %p2093_p1 = scmp.lt.u32.totalorder %s2086_s24, %s2960_s8 }
  0xdf   : > { %p2089_p9 = pnand %p2087_p7, %p2457_p8 }
  0xe1   : > { %p2090_p4 = pneg %p2089_p9 }
  0xe3   : > { %p2095_p3 = pnand %p2093_p1, %p2090_p4 }
  0xe5   : > { %2098 = shalt.err (!%p2095_p3)
}
  0xe6   : > { %s2099_s14 = scalar_lea.vmem %s2578_s28, 256  ;;  %p2107_p13 = scmp.lt.s32.totalorder %s2578_s28, %s2578_s28 }
  0xe7   : > { %p2100_p10 = scmp.ne.s32.totalorder %s2578_s28, %s2099_s14  ;;  %p2108_p0 = scmp.lt.s32.totalorder %s2099_s14, %s2099_s14 }
  0xe9   : > { %p2102_p11 = pnand %p2100_p10, %p2457_p8  ;;  %p2109_p2 = por %p2108_p0, %p2107_p13 }
  0xeb   : > { %p2103_p12 = pneg %p2102_p11 }
  0xed   : > { %p2110_p5 = pnand %p2109_p2, %p2103_p12 }
  0xef   : > { %2113 = shalt.err (!%p2110_p5)
}
  0xf0   : > { %1751 = dma.hbm_to_vmem [thread:$0]  (!%p2441_p6), %s2960_s8, 256, %s2578_s28, [#allocation16], %s2316_s11, %s2316_s11, %s2317_s16  }
  0xf1   : > { %s2320_s13 = smov [#allocation20]   ;;  %s2114_s12 = scalar_lea.hbm %s2933_s10, 64 }
  0xf2   : > { %s436_s26 = sshll.u32 %s2320_s13, 4  ;;  %p2115_p7 = scmp.ne.s32.totalorder %s2933_s10, %s2114_s12  ;;  %s437_s26 = int_to_ptr.vmem [resolvable:$true] %s436_s26 }
  0xf3   : > { %p2121_p1 = scmp.lt.u32.totalorder %s2114_s12, %s2933_s10 }
  0xf4   : > { %p2117_p9 = pnand %p2115_p7, %p2457_p8 }
  0xf6   : > { %p2118_p4 = pneg %p2117_p9 }
  0xf8   : > { %p2123_p3 = pnand %p2121_p1, %p2118_p4 }
  0xfa   : > { %2126 = shalt.err (!%p2123_p3)
}
  0xfb   : > { %s2127_s11 = scalar_lea.vmem %s437_s26, 64  ;;  %p2135_p13 = scmp.lt.s32.totalorder %s437_s26, %s437_s26 }
  0xfc   : > { %p2128_p10 = scmp.ne.s32.totalorder %s437_s26, %s2127_s11  ;;  %p2136_p0 = scmp.lt.s32.totalorder %s2127_s11, %s2127_s11 }
  0xfe   : > { %p2130_p11 = pnand %p2128_p10, %p2457_p8  ;;  %p2137_p2 = por %p2136_p0, %p2135_p13 }
 0x100   : > { %p2131_p12 = pneg %p2130_p11 }
 0x102   : > { %p2138_p5 = pnand %p2137_p2, %p2131_p12 }
 0x104   : > { %2141 = shalt.err (!%p2138_p5)
}
 0x105   : > { %1757 = dma.hbm_to_vmem [thread:$0]  (!%p2441_p6), %s2933_s10, 64, %s437_s26, [#allocation19]  }
 0x106   : > { %s1530_s27 = sadd.s32 4294967294, %s2308_s22   ;;  %s46_s15 = sadd.s32 1, %s2304_s21 }
 0x107   : > { %s55_s29 = sadd.s32 1, %s2296_s19  ;;  %p48_p8 = scmp.ge.s32.totalorder %s46_s15, 2 }
 0x108   : > { %p62_p7 = scmp.ne.s32.totalorder %s2296_s19, %s2292_s18  ;;  %p63_p9 = scmp.eq.s32.totalorder %s2308_s22, 0 }
 0x109   : > { %p68_p4 = scmp.ne.s32.totalorder %s2292_s18, %s2288_s17  ;;  %s2991_s15 = smov (%p48_p8, %s46_s15), 0 }
 0x10a   : > { %p2655_p1 = por %p63_p9, %p62_p7  ;;  %p2962_p3 = scmp.eq.s32.totalorder %s2427_s23, 0 }
 0x10b   : > { %s50_s26 = ssub.s32 %s2304_s21, %s2991_s15  ;;  %p314_p10 = scmp.eq.s32.totalorder %s2427_s23, 1 }
 0x10c   : > { %p2661_p6 = por %p2962_p3, %p68_p4  ;;  %p53_p11 = scmp.eq.s32.totalorder %s50_s26, 0 }
 0x10d   : > { %p320_p12 = scmp.eq.s32.totalorder %s1530_s27, 1  ;;  %p2668_p13 = por %p314_p10, %p62_p7 }
 0x10e   : > { %s2963_s13 = scalar_select %p2661_p6, 1, 0 }
 0x10f   : > { %s2964_s20 = scalar_select %p2668_p13, 1, 0 }
 0x110   : > { %p1778_p0 = scmp.lt.s32.totalorder %s2308_s22, 2  ;;  %p2676_p2 = por %p320_p12, %p68_p4 }
 0x111   : > { %s2674_s24 = scalar_select %p53_p11, %s2296_s19, %s55_s29  }
 0x112   : > { %s2965_s12 = scalar_select %p2676_p2, 1, 0 }
 0x113   : > { %s447_s30 = sand.u32 1, %s2296_s19   ;;  %s1543_s2 = sshll.u32 %s2304_s21, 7 }
 0x114   : > { %s2681_s25 = sshll.u32 %s447_s30, 3  ;;  %s2687_s16 = scalar_lea.hbm %s2923_s0, %s1543_s2 }
 0x115   : > { %s451_s28 = scalar_lea.vmem [#allocation3], %s2681_s25  ;;  %p2694_p5 = pnand %p1778_p0, %p2655_p1 }
 0x116   : > { %s459_s27 = sshll.u32 %s451_s28, 4  ;;  %s2701_s14 = scalar_lea.hbm %s2924_s1, %s1543_s2  ;;  %s2690_s27 = int_to_ptr.vmem [resolvable:$true] %s459_s27 }
 0x117   : > { %s466_s11 = sand.u32 1, %s2308_s22   ;;  %s448_s5 = scalar_lea.sflag [#allocation4], %s447_s30 }
 0x118   : > { %s2142_s6 = scalar_lea.hbm %s2687_s16, 128  ;;  %p2144_p7 = pneg %p2694_p5 }
 0x119   : > { %p2143_p8 = scmp.ne.s32.totalorder %s2687_s16, %s2142_s6  ;;  %s2147_s7 = scalar_lea.hbm %s2923_s0, 256 }
 0x11a   : > { %p2148_p1 = scmp.lt.u32.totalorder %s2687_s16, %s2923_s0  ;;  %p2149_p3 = scmp.lt.u32.totalorder %s2147_s7, %s2142_s6 }
 0x11b   : > { %p2145_p9 = pnand %p2144_p7, %p2143_p8  ;;  %p2151_p11 = scmp.lt.u32.totalorder %s2142_s6, %s2687_s16 }
 0x11c   : > { %p2150_p10 = por %p2149_p3, %p2148_p1 }
 0x11d   : > { %p2146_p4 = pneg %p2145_p9 }
 0x11e   : > { %p2152_p12 = por %p2151_p11, %p2150_p10 }
 0x120   : > { %p2153_p0 = pnand %p2152_p12, %p2146_p4 }
 0x122   : > { %2156 = shalt.err (!%p2153_p0)
}
 0x123   : > { %s2157_s30 = scalar_lea.vmem %s2690_s27, 128  ;;  %s2321_s2 = smov [#allocation3]  }
 0x124   : > { %p2158_p8 = scmp.ne.s32.totalorder %s2690_s27, %s2157_s30  ;;  %s2162_s26 = sshll.u32 %s2321_s2, 4  ;;  %s2163_s26 = int_to_ptr.vmem [resolvable:$false] %s2162_s26 }
 0x125   : > { %s2164_s8 = scalar_lea.vmem %s2163_s26, 256  ;;  %p2165_p13 = scmp.lt.s32.totalorder %s2690_s27, %s2163_s26 }
 0x126   : > { %p2160_p9 = pnand %p2158_p8, %p2144_p7  ;;  %p2166_p1 = scmp.lt.s32.totalorder %s2164_s8, %s2157_s30 }
 0x128   : > { %p2161_p2 = pneg %p2160_p9  ;;  %p2167_p3 = por %p2166_p1, %p2165_p13 }
 0x12a   : > { %p2168_p10 = pnand %p2167_p3, %p2161_p2 }
 0x12c   : > { %2171 = shalt.err (!%p2168_p10)
}
 0x12d   : > { %1761 = dma.hbm_to_vmem [thread:$0]  (!%p2694_p5), %s2687_s16, 128, %s2690_s27, %s448_s5  }
 0x12e   : > { %s470_s6 = scalar_lea.vmem [#allocation6], %s2681_s25  ;;  %s467_s3 = scalar_lea.sflag [#allocation7], %s466_s11 }
 0x12f   : > { %s477_s7 = sshll.u32 %s470_s6, 4  ;;  %s2172_s28 = scalar_lea.hbm %s2701_s14, 128  ;;  %s478_s7 = int_to_ptr.vmem [resolvable:$true] %s477_s7 }
 0x130   : > { %p2173_p13 = scmp.ne.s32.totalorder %s2701_s14, %s2172_s28  ;;  %s2177_s2 = scalar_lea.hbm %s2924_s1, 256 }
 0x131   : > { %p2178_p11 = scmp.lt.u32.totalorder %s2701_s14, %s2924_s1  ;;  %p2179_p12 = scmp.lt.u32.totalorder %s2177_s2, %s2172_s28 }
 0x132   : > { %p2175_p2 = pnand %p2173_p13, %p2144_p7  ;;  %p2181_p8 = scmp.lt.u32.totalorder %s2172_s28, %s2701_s14 }
 0x133   : > { %p2180_p0 = por %p2179_p12, %p2178_p11 }
 0x134   : > { %p2176_p4 = pneg %p2175_p2 }
 0x135   : > { %p2182_p9 = por %p2181_p8, %p2180_p0 }
 0x137   : > { %p2183_p1 = pnand %p2182_p9, %p2176_p4 }
 0x139   : > { %2186 = shalt.err (!%p2183_p1)
}
 0x13a   : > { %s2187_s5 = scalar_lea.vmem %s478_s7, 128  ;;  %s2322_s25 = smov [#allocation6]  }
 0x13b   : > { %p2188_p3 = scmp.ne.s32.totalorder %s478_s7, %s2187_s5  ;;  %s2192_s16 = sshll.u32 %s2322_s25, 4  ;;  %s2193_s16 = int_to_ptr.vmem [resolvable:$false] %s2192_s16 }
 0x13c   : > { %s2194_s27 = scalar_lea.vmem %s2193_s16, 256  ;;  %p2195_p2 = scmp.lt.s32.totalorder %s478_s7, %s2193_s16 }
 0x13d   : > { %p2190_p10 = pnand %p2188_p3, %p2144_p7  ;;  %p2196_p6 = scmp.lt.s32.totalorder %s2194_s27, %s2187_s5 }
 0x13f   : > { %p2191_p13 = pneg %p2190_p10  ;;  %p2197_p11 = por %p2196_p6, %p2195_p2 }
 0x141   : > { %p2198_p12 = pnand %p2197_p11, %p2191_p13 }
 0x143   : > { %2201 = shalt.err (!%p2198_p12)
}
 0x144   : > { %1764 = dma.hbm_to_vmem [thread:$0]  (!%p2694_p5), %s2701_s14, 128, %s478_s7, %s467_s3  }
 0x145   : > { %s2967_s11 = sld [smem:[#allocation31_spill]] }
 0x14b   : > { %p2968_p4 = scmp.ne.s32.totalorder %s2967_s11, 0 }
 0x14c   : > { %s2754_s6 = sand.u32 (!%p2968_p4), 1, %s2292_s18   ;;  %p2969_p7 = scmp.ne.s32.totalorder (!%p2968_p4), %s2963_s13, 0 }
 0x14d   : > { %486 = sbr.rel (%p2968_p4) target bundleno = 2184 (0x888), region = 64  ;;  %s1547_s28 = sshll.u32 (!%p2968_p4), %s2754_s6, 3 }
 0x14e   : > { %s489_s4 = scalar_lea.sflag (!%p2968_p4), [#allocation4], %s2754_s6  ;;  %s492_s30 = scalar_lea.vmem (!%p2968_p4), [#allocation3], %s1547_s28 }
 0x154   : > { %2255 = dma.done.wait (%p2969_p7), %s489_s4, 128  }
 0x155   : > { %2257 = vsyncadd (%p2969_p7), %s489_s4, 4294967168  ;;  %s497_s29 = sand.u32 1, %s2427_s23   ;;  %s501_s7 = scalar_lea.vmem [#allocation6], %s1547_s28 }
 0x156   : > { %s498_s14 = scalar_lea.sflag [#allocation7], %s497_s29 }
 0x157   : > { %2259 = dma.done.wait (%p2969_p7), %s498_s14, 128  }
 0x158   : > { %2261 = vsyncadd (%p2969_p7), %s498_s14, 4294967168  ;;  %p2970_p6 = scmp.eq.s32.totalorder %s2427_s23, 0 }
 0x15a   : > { %2263 = dma.done.wait (%p2970_p6), [#allocation7], 16   ;;  %p2971_p5 = pmov %p2970_p6 }
 0x15c   : > { %2265 = vsyncadd (%p2971_p5), [#allocation7], 4294967280  ;;  %p2972_p0 = pmov %p2971_p5 }
 0x15e   : > { %2267 = dma.done.wait (%p2972_p0), [#allocation10], 272   ;;  %p2973_p8 = pmov %p2972_p0 }
 0x15f   : > { %p2974_p9 = pmov %p2972_p0 }
 0x160   : > { %2269 = vsyncadd (%p2973_p8), [#allocation10], 4294967024 }
 0x161   : > { %2271 = dma.done.wait (%p2974_p9), [#allocation13], 272   ;;  %p2975_p1 = pmov %p2972_p0 }
 0x162   : > { %p2976_p3 = pmov %p2972_p0 }
 0x163   : > { %2273 = vsyncadd (%p2975_p1), [#allocation13], 4294967024 }
 0x164   : > { %2275 = dma.done.wait (%p2976_p3), [#allocation16], 272   ;;  %p2977_p10 = pmov %p2972_p0 }
 0x165   : > { %p2978_p13 = pmov %p2972_p0 }
 0x166   : > { %2277 = vsyncadd (%p2977_p10), [#allocation16], 4294967024 }
 0x167   : > { %2279 = dma.done.wait (%p2978_p13), [#allocation19], 80   ;;  %p2979_p2 = pmov %p2972_p0 }
 0x168   : > { %vm585_vm0 = vcmask 261120   ;;  %v621_v0 = vld [vmem:[%s501_s7] sm:$0xff]  ;;  %v2787_v1 = vld [vmem:[%s492_s30] sm:$0xff]  ;;  %v2323_v16 = vmov 0.0   ;;  %vm2324_vm1 = vmmov 0   ;;  %vm783_vm6 = vcmask 64512  }
 0x169   : > { %2281 = vsyncadd (%p2979_p2), [#allocation19], 4294967216  ;;  %v622_v2 = vsel %vm585_vm0, %v621_v0, 0.0  ;;  %v586_v3 = vsel %vm585_vm0, %v2787_v1, 0.0  ;;  %v1860_v14 = vld [vmem:[#allocation14] sm:$0xff]   ;;  %v1861_v15 = vld [vmem:[#allocation11] sm:$0xff]   ;;  %1624 = vmatprep.subr.bf16.mxu1 %v2323_v16  ;;  %1616 = vmatprep.subr.bf16.mxu0 %v2323_v16 }
 0x16a   : > { %623 = vadd.xlane.f32.xlu0 %v622_v2  ;;  %1625 = vmatpush3.bf16.msra.mxu1 %v1860_v14  ;;  %v1862_v17 = vld [vmem:[#allocation14 + $0x8] sm:$0xff]   ;;  %v1863_v18 = vld [vmem:[#allocation11 + $0x8] sm:$0xff]   ;;  %v1565_v47 = vld [vmem:[#allocation15] ss:$0 sm:$0xff]  ;;  %s2325_s23 = smov 120   ;;  %s2326_s13 = smov 104  }
 0x16b   : > { %1617 = vmatpush3.bf16.msra.mxu0 %v1861_v15  ;;  %1626 = vmatprep.subr.bf16.mxu1 %v2323_v16  ;;  %v1559_v35 = vld [vmem:[#allocation8] ss:$0 sm:$0xff]  ;;  %v1560_v38 = vld [vmem:[#allocation9] ss:$0 sm:$0xff]  ;;  %v1561_v52 = vld [vmem:[#allocation12] ss:$0 sm:$0xff] }
 0x16c   : > { %1628 = vmatprep.mubr.msk.bf16.mxu1 %vm2324_vm1, %v2323_v16  ;;  %1618 = vmatprep.subr.bf16.mxu0 %v2323_v16  ;;  %s2327_s3 = smov 112   ;;  %s2328_s2 = smov 88   ;;  %vm848_vm7 = vcmask 1043456   ;;  %vm893_vm8 = vcmask 60416   ;;  %vm1013_vm9 = vcmask 126016   ;;  %vm1132_vm10 = vcmask 191616  }
 0x16d   : > { %1620 = vmatprep.mubr.msk.bf16.mxu0 %vm2324_vm1, %v2323_v16  ;;  %s2329_s26 = smov 80   ;;  %s2330_s8 = smov 96   ;;  %vm1251_vm11 = vcmask 257216   ;;  %vm1322_vm12 = vcmask 257024  }
 0x16e   : > { %587 = vadd.xlane.f32.xlu0 %v586_v3  ;;  %1627 = vmatpush3.bf16.msra.mxu1 %v1862_v17  ;;  %s2331_s5 = smov 72   ;;  %s2332_s25 = smov 8  }
 0x16f   : > { %1638 = vmatprep.subr.bf16.mxu1 %v2323_v16  ;;  %1619 = vmatpush3.bf16.msra.mxu0 %v1863_v18  ;;  %s2333_s16 = smov 16   ;;  %s2334_s27 = smov 24  }
 0x170   : > { %1632 = vmatprep.subr.bf16.mxu0 %v2323_v16  ;;  %s2980_s11 = sld [smem:[#allocation30_spill]]  ;;  %s1558_s28 = sshll.u32 %s2754_s6, 2 }
 0x171   : > { %s580_s30 = scalar_lea.vmem [#allocation21], %s1558_s28  ;;  %p2982_p12 = scmp.ne.s32.totalorder %s2964_s20, 0 }
 0x172   : > { %s1339_s29 = sshll.u32 %s580_s30, 4  ;;  %s2876_s29 = int_to_ptr.vmem [resolvable:$true] %s1339_s29 }
 0x176   : > { %s1585_s4 = sshll.u32 %s2980_s11, 6 }
 0x1f7   : > { %v624_v4 = vpop.xlane.xlu0 %623 }
 0x1f8   : > { %v625_v5 = vmul.f32 0.03125, %v624_v4 }
 0x1fa   : > { %v626_v6 = vsub.f32 %v621_v0, %v625_v5 }
 0x1fb   : > { %v588_v7 = vpop.xlane.xlu0 %587 }
 0x1fc   : > { %v590_v8 = vmul.f32 0.03125, %v588_v7  ;;  %v627_v9 = vmul.f32 %v626_v6, %v626_v6  ;;  %v641_v36 = vmul.f32 %v1559_v35, %v626_v6 }
 0x1fe   : > { %v591_v10 = vsub.f32 %v2787_v1, %v590_v8  ;;  %v628_v11 = vsel %vm585_vm0, %v627_v9, 0.0  ;;  %v779_v9 = vld [vmem:[#allocation20] sm:$0xf] }
 0x1ff   : > { %629 = vadd.xlane.f32.xlu1 %v628_v11 }
 0x200   : > { %v592_v12 = vmul.f32 %v591_v10, %v591_v10  ;;  %v612_v40 = vmul.f32 %v1559_v35, %v591_v10  ;;  %v780_v10 = vunpack.c.l.bf16 %v779_v9 }
 0x202   : > { %v593_v13 = vsel %vm585_vm0, %v592_v12, 0.0 }
 0x203   : > { %594 = vadd.xlane.f32.xlu1 %v593_v13 }
 0x28c   : > { %v630_v19 = vpop.xlane.xlu1 %629 }
 0x28d   : > { %v631_v20 = vmul.f32 0.032258064, %v630_v19 }
 0x28f   : > { %1866 = vrsqrt.f32 %v631_v20  ;;  %vm634_vm2 = vcmp.eq.f32.partialorder %v631_v20, inf  ;;  %v637_v25 = vand.u32 2147483648, %v631_v20  ;;  %vm636_vm3 = vcmp.eq.f32.partialorder %v631_v20, 0.0 }
 0x290   : > { %v595_v21 = vpop.xlane.xlu1 %594 }
 0x291   : > { %v596_v22 = vmul.f32 0.032258064, %v595_v21 }
 0x293   : > { %1868 = vrsqrt.f32 %v596_v22  ;;  %vm599_vm4 = vcmp.eq.f32.partialorder %v596_v22, inf  ;;  %v602_v31 = vand.u32 2147483648, %v596_v22  ;;  %vm601_vm5 = vcmp.eq.f32.partialorder %v596_v22, 0.0 }
 0x299   : > { %v1867_v23 = vpop.eup %1866 }
 0x29a   : > { %v633_v24 = vmul.f32 %v1867_v23, %v631_v20 }
 0x29c   : > { %v635_v26 = vsel %vm634_vm2, %v631_v20, %v633_v24 }
 0x29d   : > { %v1869_v27 = vpop.eup %1868  ;;  %v638_v28 = vsel %vm636_vm3, %v637_v25, %v635_v26 }
 0x29e   : > { %v639_v29 = vadd.f32 1e-06, %v638_v28  ;;  %v598_v30 = vmul.f32 %v1869_v27, %v596_v22 }
 0x2a0   : > { %v600_v32 = vsel %vm599_vm4, %v596_v22, %v598_v30  ;;  %1870 = vrcp.f32 %v639_v29 }
 0x2a1   : > { %v603_v33 = vsel %vm601_vm5, %v602_v31, %v600_v32 }
 0x2a2   : > { %v604_v34 = vadd.f32 1e-06, %v603_v33 }
 0x2a4   : > { %1872 = vrcp.f32 %v604_v34 }
 0x2aa   : > { %v1871_v37 = vpop.eup %1870 }
 0x2ab   : > { %v642_v39 = vmul.f32 %v1871_v37, %v641_v36 }
 0x2ad   : > { %v643_v41 = vadd.f32 %v1560_v38, %v642_v39 }
 0x2ae   : > { %v1873_v42 = vpop.eup %1872 }
 0x2af   : > { %v644_v43 = vpack.c.bf16 %v643_v41, %v643_v41  ;;  %v613_v44 = vmul.f32 %v1873_v42, %v612_v40 }
 0x2b1   : > { %1629 = vmatmul.mubr.msk.bf16.vlgmr.msra.gmra.mrb[0].mxu1 %vm585_vm0, %v644_v43  ;;  %v620_v45 = vadd.f32 %v1560_v38, %v613_v44 }
 0x2b2   : > { %1640 = vmatprep.mubr.msk.bf16.mxu1 %vm2324_vm1, %v2323_v16 }
 0x2b3   : > { %v645_v46 = vpack.c.bf16 %v620_v45, %v620_v45 }
 0x2b5   : > { %1621 = vmatmul.mubr.msk.bf16.vlgmr.msra.gmra.mrb[0].mxu0 %vm585_vm0, %v645_v46 }
 0x2b6   : > { %1634 = vmatprep.mubr.msk.bf16.mxu0 %vm2324_vm1, %v2323_v16 }
 0x384   : > { %v773_v48 = vpop.f32.mrb[0].mxu1 }
 0x385   : > { %v774_v49 = vadd.f32 %v1565_v47, %v773_v48  ;;  %v1630_v50 = vpop.f32.mrb[1].mxu1 }
 0x386   : > { %v776_v51 = vpop.f32.mrb[2].mxu1 }
 0x387   : > { %v2811_v53 = vpack.c.bf16 %v774_v49, %v774_v49  ;;  %v1631_v54 = vpop.f32.mrb[3].mxu1 }
 0x388   : > { %v706_v55 = vpop.f32.mrb[0].mxu0 }
 0x389   : > { %v707_v56 = vadd.f32 %v1561_v52, %v706_v55  ;;  %898 = vrot.lane.b32.xlu0 %v2811_v53, %s2325_s23  ;;  %v1622_v57 = vpop.f32.mrb[1].mxu0  ;;  %v788_v58 = vsel %vm783_vm6, %v2811_v53, 0 }
 0x38a   : > { %v709_v59 = vpop.f32.mrb[2].mxu0  ;;  %1633 = vmatpush3.bf16.xpose.msra.mxu0 %v788_v58 }
 0x38b   : > { %v712_v60 = vmul.f32 0.35355338, %v707_v56  ;;  %v1623_v61 = vpop.f32.mrb[3].mxu0  ;;  %1644 = vmatprep.subr.bf16.mxu0 %v2323_v16 }
 0x38d   : > { %v781_v62 = vpack.c.bf16 %v712_v60, %v712_v60  ;;  %1136 = vrot.lane.b32.xlu0 %v2811_v53, %s2326_s13 }
 0x38f   : > { %896 = vrot.lane.b32.xlu1 %v781_v62, %s2325_s23  ;;  %s2981_s23 = sld [smem:[#allocation39_spill]] }
 0x391   : > { %1635 = vmatmul.mubr.msk.bf16.vlgmr.msra.gmra.mrb[4].mxu0 %vm783_vm6, %v781_v62 }
 0x392   : > { %1646 = vmatprep.mubr.msk.bf16.mxu0 %vm2324_vm1, %v2323_v16 }
 0x393   : > { %1017 = vrot.lane.b32.xlu1 %v2811_v53, %s2327_s3 }
 0x397   : > { %1015 = vrot.lane.b32.xlu1 %v781_v62, %s2327_s3  ;;  %s1325_s3 = scalar_lea.sflag [#allocation5], %s2754_s6 }
 0x39b   : > { %1134 = vrot.lane.b32.xlu1 %v781_v62, %s2326_s13  ;;  %s2874_s13 = scalar_lea.hbm %s2981_s23, %s1585_s4 }
 0x3fb   : > { %v899_v63 = vpop.permute.xlu0 %898 }
 0x3fc   : > { %v904_v0 = vsel %vm783_vm6, %v899_v63, 0 }
 0x3fd   : > { %1645 = vmatpush3.bf16.xpose.msra.mxu0 %v904_v0 }
 0x3fe   : > { %1656 = vmatprep.subr.bf16.mxu0 %v2323_v16 }
 0x3ff   : > { %v1137_v5 = vpop.permute.xlu0 %1136 }
 0x400   : > { %v1142_v7 = vsel %vm783_vm6, %v1137_v5, 0 }
 0x401   : > { %v897_v2 = vpop.permute.xlu1 %896 }
 0x404   : > { %1647 = vmatmul.mubr.msk.bf16.vlgmr.msra.gmra.mrb[8].mxu0 %vm783_vm6, %v897_v2 }
 0x405   : > { %v1018_v3 = vpop.permute.xlu1 %1017  ;;  %1658 = vmatprep.mubr.msk.bf16.mxu0 %vm2324_vm1, %v2323_v16 }
 0x406   : > { %v1023_v4 = vsel %vm783_vm6, %v1018_v3, 0 }
 0x407   : > { %1657 = vmatpush3.bf16.xpose.msra.mxu0 %v1023_v4 }
 0x408   : > { %1668 = vmatprep.subr.bf16.mxu0 %v2323_v16 }
 0x409   : > { %v1016_v6 = vpop.permute.xlu1 %1015 }
 0x40d   : > { %v1135_v8 = vpop.permute.xlu1 %1134 }
 0x40e   : > { %1659 = vmatmul.mubr.msk.bf16.vlgmr.msra.gmra.mrb[12].mxu0 %vm783_vm6, %v1016_v6 }
 0x40f   : > { %1669 = vmatpush3.bf16.xpose.msra.mxu0 %v1142_v7  ;;  %1670 = vmatprep.mubr.msk.bf16.mxu0 %vm2324_vm1, %v2323_v16 }
 0x410   : > { %1680 = vmatprep.subr.bf16.mxu0 %v2323_v16 }
 0x416   : > { %1671 = vmatmul.mubr.msk.bf16.vlgmr.msra.gmra.mrb[16].mxu0 %vm783_vm6, %v1135_v8 }
 0x417   : > { %1684 = vmatprep.mubr.msk.bf16.mxu0 %vm2324_vm1, %v2323_v16 }
 0x464   : > { %v824_v11 = vpop.f32.mrb[4].mxu0 }
 0x465   : > { %v825_v12 = vadd.f32 %v824_v11, %v780_v10  ;;  %v1636_v13 = vpop.f32.mrb[5].mxu0 }
 0x466   : > { %v827_v14 = vpop.f32.mrb[6].mxu0 }
 0x467   : > { %v1637_v15 = vpop.f32.mrb[7].mxu0  ;;  %v830_v17 = vsel %vm783_vm6, %v825_v12, -inf }
 0x468   : > { %831 = vmax.xlane.f32.xlu0 %v830_v17 }
 0x4d7   : > { %v940_v18 = vpop.f32.mrb[8].mxu0 }
 0x4d8   : > { %v941_v19 = vadd.f32 %v940_v18, %v780_v10  ;;  %v1648_v20 = vpop.f32.mrb[9].mxu0 }
 0x4d9   : > { %v943_v21 = vpop.f32.mrb[10].mxu0 }
 0x4da   : > { %v1649_v22 = vpop.f32.mrb[11].mxu0  ;;  %v946_v23 = vsel %vm783_vm6, %v941_v19, -inf }
 0x4db   : > { %947 = vmax.xlane.f32.xlu1 %v946_v23 }
 0x4e1   : > { %v1059_v24 = vpop.f32.mrb[12].mxu0 }
 0x4e2   : > { %v1060_v25 = vadd.f32 %v1059_v24, %v780_v10  ;;  %v1660_v26 = vpop.f32.mrb[13].mxu0 }
 0x4e3   : > { %v1062_v27 = vpop.f32.mrb[14].mxu0 }
 0x4e4   : > { %v1661_v28 = vpop.f32.mrb[15].mxu0  ;;  %v1065_v29 = vsel %vm783_vm6, %v1060_v25, -inf }
 0x4e5   : > { %1066 = vmax.xlane.f32.xlu0 %v1065_v29 }
 0x4e9   : > { %v1178_v30 = vpop.f32.mrb[16].mxu0 }
 0x4ea   : > { %v1179_v31 = vadd.f32 %v1178_v30, %v780_v10  ;;  %v1672_v32 = vpop.f32.mrb[17].mxu0 }
 0x4eb   : > { %v1181_v33 = vpop.f32.mrb[18].mxu0 }
 0x4ec   : > { %v1673_v34 = vpop.f32.mrb[19].mxu0  ;;  %v1184_v35 = vsel %vm783_vm6, %v1179_v31, -inf  ;;  %v1864_v33 = vld [vmem:[#allocation17] sm:$0xff]  }
 0x4ed   : > { %1185 = vmax.xlane.f32.xlu0 %v1184_v35  ;;  %1681 = vmatpush3.bf16.msra.mxu0 %v1864_v33  ;;  %v1865_v34 = vld [vmem:[#allocation17 + $0x8] sm:$0xff]  }
 0x4ee   : > { %1682 = vmatprep.subr.bf16.mxu0 %v2323_v16 }
 0x4f1   : > { %1683 = vmatpush3.bf16.msra.mxu0 %v1865_v34 }
 0x4f5   : > { %v832_v36 = vpop.xlane.xlu0 %831 }
 0x4f6   : > { %v833_v37 = vsub.f32 %v825_v12, %v832_v36 }
 0x4f8   : > { %v834_v38 = vmul.f32 1.442695, %v833_v37 }
 0x4fa   : > { %1874 = vpow2.f32 %v834_v38 }
 0x504   : > { %v1875_v39 = vpop.eup %1874 }
 0x505   : > { %v836_v40 = vsel %vm783_vm6, %v1875_v39, 0.0 }
 0x506   : > { %837 = vadd.xlane.f32.xlu0 %v836_v40 }
 0x568   : > { %v948_v41 = vpop.xlane.xlu1 %947 }
 0x569   : > { %v949_v42 = vsub.f32 %v941_v19, %v948_v41 }
 0x56b   : > { %v950_v43 = vmul.f32 1.442695, %v949_v42 }
 0x56d   : > { %1876 = vpow2.f32 %v950_v43  ;;  %v1580_v43 = vld [vmem:[#allocation18] ss:$0 sm:$0xff] }
 0x572   : > { %v1067_v44 = vpop.xlane.xlu0 %1066 }
 0x573   : > { %v1068_v45 = vsub.f32 %v1060_v25, %v1067_v44 }
 0x575   : > { %v1069_v46 = vmul.f32 1.442695, %v1068_v45 }
 0x577   : > { %v1877_v47 = vpop.eup %1876  ;;  %1878 = vpow2.f32 %v1069_v46 }
 0x578   : > { %v952_v48 = vsel %vm783_vm6, %v1877_v47, 0.0 }
 0x579   : > { %953 = vadd.xlane.f32.xlu1 %v952_v48 }
 0x57a   : > { %v1186_v51 = vpop.xlane.xlu0 %1185 }
 0x57b   : > { %v1187_v52 = vsub.f32 %v1179_v31, %v1186_v51 }
 0x57d   : > { %v1188_v54 = vmul.f32 1.442695, %v1187_v52 }
 0x57f   : > { %1880 = vpow2.f32 %v1188_v54 }
 0x581   : > { %v1879_v49 = vpop.eup %1878 }
 0x582   : > { %v1071_v50 = vsel %vm783_vm6, %v1879_v49, 0.0 }
 0x583   : > { %1072 = vadd.xlane.f32.xlu0 %v1071_v50 }
 0x589   : > { %v1881_v55 = vpop.eup %1880 }
 0x58a   : > { %958 = vrot.lane.b32.xlu1 %v2811_v53, %s2328_s2  ;;  %v1190_v56 = vsel %vm783_vm6, %v1881_v55, 0.0  ;;  %s2202_s2 = scalar_lea.vmem %s2876_s29, 64 }
 0x58b   : > { %p2203_p11 = scmp.ne.s32.totalorder %s2876_s29, %s2202_s2 }
 0x58d   : > { %p2204_p4 = pnand %p2203_p11, %p2982_p12 }
 0x58e   : > { %1077 = vrot.lane.b32.xlu1 %v2811_v53, %s2329_s26  ;;  %s2335_s26 = smov [#allocation21]  }
 0x58f   : > { %p2205_p7 = pneg %p2204_p4 }
 0x593   : > { %v838_v57 = vpop.xlane.xlu0 %837 }
 0x594   : > { %1882 = vrcp.f32 %v838_v57 }
 0x599   : > { %843 = vrot.lane.b32.xlu0 %v2811_v53, %s2330_s8  ;;  %s2206_s8 = sshll.u32 %s2335_s26, 4  ;;  %s2207_s8 = int_to_ptr.vmem [resolvable:$false] %s2206_s8 }
 0x59a   : > { %p2209_p6 = scmp.lt.s32.totalorder %s2876_s29, %s2207_s8 }
 0x59e   : > { %v1883_v59 = vpop.eup %1882 }
 0x59f   : > { %v840_v61 = vmul.f32 %v1883_v59, %v1875_v39 }
 0x5a1   : > { %v841_v2 = vpack.c.bf16 %v840_v61, %v840_v61 }
 0x5b2   : > { %1191 = vadd.xlane.f32.xlu1 %v1190_v56 }
 0x5c3   : > { %1196 = vrot.lane.b32.xlu1 %v2811_v53, %s2331_s5  ;;  %s2208_s5 = scalar_lea.vmem %s2207_s8, 128 }
 0x5c4   : > { %p2210_p5 = scmp.lt.s32.totalorder %s2208_s5, %s2202_s2 }
 0x5c6   : > { %p2211_p0 = por %p2210_p5, %p2209_p6 }
 0x5c8   : > { %p2212_p8 = pnand %p2211_p0, %p2205_p7 }
 0x606   : > { %v954_v58 = vpop.xlane.xlu1 %953 }
 0x607   : > { %1884 = vrcp.f32 %v954_v58 }
 0x60a   : > { %v959_v0 = vpop.permute.xlu1 %958 }
 0x60b   : > { %v964_v53 = vsel %vm848_vm7, %v959_v0, 0 }
 0x60e   : > { %v1078_v5 = vpop.permute.xlu1 %1077 }
 0x60f   : > { %v1083_v8 = vsel %vm848_vm7, %v1078_v5, 0 }
 0x610   : > { %v1073_v60 = vpop.xlane.xlu0 %1072 }
 0x611   : > { %1886 = vrcp.f32 %v1073_v60  ;;  %v1885_v3 = vpop.eup %1884 }
 0x612   : > { %v956_v4 = vmul.f32 %v1885_v3, %v1877_v47 }
 0x614   : > { %v844_v62 = vpop.permute.xlu0 %843  ;;  %v957_v6 = vpack.c.bf16 %v956_v4, %v956_v4 }
 0x615   : > { %v850_v63 = vsel %vm848_vm7, %v844_v62, 0 }
 0x616   : > { %1639 = vmatpush3.bf16.msra.mxu1 %v850_v63 }
 0x617   : > { %1650 = vmatprep.subr.bf16.mxu1 %v2323_v16 }
 0x619   : > { %1641 = vmatmul.mubr.msk.bf16.vlgmr.msra.gmra.mrb[4].mxu1 %vm783_vm6, %v841_v2 }
 0x61a   : > { %1651 = vmatpush3.bf16.msra.mxu1 %v964_v53  ;;  %1652 = vmatprep.mubr.msk.bf16.mxu1 %vm2324_vm1, %v2323_v16 }
 0x61b   : > { %1662 = vmatprep.subr.bf16.mxu1 %v2323_v16  ;;  %v1887_v7 = vpop.eup %1886 }
 0x61c   : > { %v1075_v9 = vmul.f32 %v1887_v7, %v1879_v49 }
 0x61e   : > { %v1076_v10 = vpack.c.bf16 %v1075_v9, %v1075_v9 }
 0x621   : > { %1653 = vmatmul.mubr.msk.bf16.vlgmr.msra.gmra.mrb[8].mxu1 %vm783_vm6, %v957_v6 }
 0x622   : > { %1663 = vmatpush3.bf16.msra.mxu1 %v1083_v8  ;;  %1664 = vmatprep.mubr.msk.bf16.mxu1 %vm2324_vm1, %v2323_v16 }
 0x623   : > { %1674 = vmatprep.subr.bf16.mxu1 %v2323_v16 }
 0x629   : > { %1665 = vmatmul.mubr.msk.bf16.vlgmr.msra.gmra.mrb[12].mxu1 %vm783_vm6, %v1076_v10 }
 0x62a   : > { %1676 = vmatprep.mubr.msk.bf16.mxu1 %vm2324_vm1, %v2323_v16 }
 0x63f   : > { %v1192_v11 = vpop.xlane.xlu1 %1191 }
 0x640   : > { %1888 = vrcp.f32 %v1192_v11 }
 0x643   : > { %v1197_v12 = vpop.permute.xlu1 %1196 }
 0x644   : > { %v1202_v13 = vsel %vm848_vm7, %v1197_v12, 0 }
 0x645   : > { %1675 = vmatpush3.bf16.msra.mxu1 %v1202_v13 }
 0x64a   : > { %v1889_v14 = vpop.eup %1888 }
 0x64b   : > { %v1194_v15 = vmul.f32 %v1889_v14, %v1881_v55 }
 0x64d   : > { %v1195_v17 = vpack.c.bf16 %v1194_v15, %v1194_v15 }
 0x64f   : > { %1677 = vmatmul.mubr.msk.bf16.vlgmr.msra.gmra.mrb[16].mxu1 %vm783_vm6, %v1195_v17 }
 0x6ec   : > { %v886_v18 = vpop.f32.mrb[4].mxu1 }
 0x6ed   : > { %v892_v19 = vpack.c.bf16 %v886_v18, %v886_v18  ;;  %v1642_v20 = vpop.f32.mrb[5].mxu1 }
 0x6ee   : > { %v889_v21 = vpop.f32.mrb[6].mxu1 }
 0x6ef   : > { %894 = vst.msk [vmem:[#allocation2] sm:$0xf] %vm893_vm8, %v892_v19  ;;  %v1643_v22 = vpop.f32.mrb[7].mxu1 }
 0x6f4   : > { %v1000_v23 = vpop.f32.mrb[8].mxu1 }
 0x6f5   : > { %v1588_v24 = vpack.c.bf16 %v1000_v23, %v1000_v23  ;;  %v1654_v25 = vpop.f32.mrb[9].mxu1 }
 0x6f6   : > { %v1003_v26 = vpop.f32.mrb[10].mxu1 }
 0x6f7   : > { %1010 = vrot.lane.b32.xlu0 %v1588_v24, %s2332_s25  ;;  %v1655_v27 = vpop.f32.mrb[11].mxu1 }
 0x6fc   : > { %v1119_v28 = vpop.f32.mrb[12].mxu1 }
 0x6fd   : > { %v1589_v29 = vpack.c.bf16 %v1119_v28, %v1119_v28  ;;  %v1666_v30 = vpop.f32.mrb[13].mxu1 }
 0x6fe   : > { %v1122_v31 = vpop.f32.mrb[14].mxu1 }
 0x6ff   : > { %1129 = vrot.lane.b32.xlu1 %v1589_v29, %s2333_s16  ;;  %v1667_v32 = vpop.f32.mrb[15].mxu1 }
 0x722   : > { %v1238_v35 = vpop.f32.mrb[16].mxu1 }
 0x723   : > { %v1590_v36 = vpack.c.bf16 %v1238_v35, %v1238_v35  ;;  %v1678_v37 = vpop.f32.mrb[17].mxu1 }
 0x724   : > { %v1241_v38 = vpop.f32.mrb[18].mxu1 }
 0x725   : > { %1248 = vrot.lane.b32.xlu0 %v1590_v36, %s2334_s27  ;;  %v1679_v39 = vpop.f32.mrb[19].mxu1 }
 0x769   : > { %v1011_v40 = vpop.permute.xlu0 %1010 }
 0x76a   : > { %1014 = vst.msk [vmem:[#allocation2] sm:$0xf] %vm1013_vm9, %v1011_v40 }
 0x771   : > { %v1130_v41 = vpop.permute.xlu1 %1129 }
 0x772   : > { %1133 = vst.msk [vmem:[#allocation2] sm:$0xf] %vm1132_vm10, %v1130_v41 }
 0x797   : > { %v1249_v42 = vpop.permute.xlu0 %1248 }
 0x798   : > { %1252 = vst.msk [vmem:[#allocation2] sm:$0xf] %vm1251_vm11, %v1249_v42 }
 0x79f   : > { %v1253_v16 = vld [vmem:[#allocation2] sm:$0xf] }
 0x7a0   : > { %1685 = vmatmul.mubr.msk.bf16.vlgmr.msra.gmra.mrb[20].mxu0 %vm585_vm0, %v1253_v16 }
 0x873   : > { %v1314_v44 = vpop.f32.mrb[20].mxu0 }
 0x874   : > { %v1315_v45 = vadd.f32 %v1580_v43, %v1314_v44  ;;  %v1686_v46 = vpop.f32.mrb[21].mxu0 }
 0x875   : > { %v1317_v47 = vpop.f32.mrb[22].mxu0 }
 0x876   : > { %v1320_v48 = vadd.f32 %v1315_v45, %v2787_v1  ;;  %v1687_v49 = vpop.f32.mrb[23].mxu0 }
 0x878   : > { %v1321_v50 = vpack.c.bf16 %v1320_v48, %v1320_v48 }
 0x87a   : > { %1323 = vst.msk [vmem:[%s580_s30] sm:$0xf] %vm1322_vm12, %v1321_v50 }
 0x87b   : > { %2215 = shalt.err (!%p2212_p8)
}
 0x87c   : > { %s2216_s6 = scalar_lea.hbm %s2874_s13, 64  ;;  %s2220_s27 = scalar_lea.hbm %s2981_s23, 128 }
 0x87d   : > { %p2217_p9 = scmp.ne.s32.totalorder %s2874_s13, %s2216_s6  ;;  %p2221_p10 = scmp.lt.u32.totalorder %s2874_s13, %s2981_s23 }
 0x87e   : > { %p2222_p13 = scmp.lt.u32.totalorder %s2220_s27, %s2216_s6  ;;  %p2224_p11 = scmp.lt.u32.totalorder %s2216_s6, %s2874_s13 }
 0x87f   : > { %p2218_p1 = pnand %p2217_p9, %p2982_p12 }
 0x880   : > { %p2223_p2 = por %p2222_p13, %p2221_p10 }
 0x881   : > { %p2219_p3 = pneg %p2218_p1 }
 0x882   : > { %p2225_p4 = por %p2224_p11, %p2223_p2 }
 0x884   : > { %p2226_p7 = pnand %p2225_p4, %p2219_p3 }
 0x886   : > { %2229 = shalt.err (!%p2226_p7)
}
 0x887   : > { %1728 = dma.vmem_to_hbm [thread:$0]  (%p2982_p12), %s2876_s29, 64, %s2874_s13, %s1325_s3  }
 0x888 PF: > { %s1351_s4 = sand.u32 1, %s2288_s17   ;;  %p2983_p6 = scmp.ne.s32.totalorder %s2965_s12, 0 }
 0x889   : > { %p2984_p5 = scmp.ge.s32.totalorder %s2308_s22, 2  ;;  %s1352_s30 = scalar_lea.sflag [#allocation5], %s1351_s4 }
 0x88b   : > { %p1766_p0 = pnand %p2984_p5, %p2983_p6 }
 0x88d   : > { %2283 = dma.done.wait (!%p1766_p0), %s1352_s30, 64  }
 0x88e   : > { %2285 = vsyncadd (!%p1766_p0), %s1352_s30, 4294967232  ;;  %s34_s22 = sadd.s32 1, %s2308_s22   ;;  %s2985_s17 = smov %s2292_s18 }
 0x88f   : > { %p31_p8 = scmp.ge.s32.totalorder %s34_s22, 4   ;;  %s2986_s18 = smov %s2296_s19 }
 0x890   : > { %s2987_s19 = smov %s2674_s24  ;;  %s2988_s20 = smov %s2304_s21 }
 0x891   : > { %s2989_s21 = smov %s2991_s15  ;;  %33 = sbr.rel (!%p31_p8) target bundleno = 21 (0x15), region = 159 }
 0x898   :  { %1357 = vsyncpa [#allocation4], 1 }
 0x899   :  { %1359 = vsyncpa [#allocation4 + $0x1], 1 }
 0x89a   :  { %1360 = vsyncpa [#allocation7], 1 }
 0x89b   :  { %1362 = vsyncpa [#allocation7 + $0x1], 1 }
 0x89c   :  { %1363 = vsyncpa [#allocation10], 1 }
 0x89d   :  { %1364 = vsyncpa [#allocation13], 1 }
 0x89e   :  { %1365 = vsyncpa [#allocation16], 1 }
 0x89f   :  { %1366 = vsyncpa [#allocation19], 1 }
 0x8a0   :  { %1367 = vsyncpa [#allocation5], 1 }
 0x8a1   :  { %1369 = vsyncpa [#allocation5 + $0x1], 1 }

// kernel: decoder_forward.8
= control target key start
LH: loop header
LB: loop body
LE: loop exit
PB: predicated region body
PF: predicated region fallthrough
CT: control target
= control target key end

     0   :  { %s2955_s0 = inlined_call_operand.hbm [shape: bf16[2,8,32], index: 0, kind: input, shape index: {}]   ;;  %s2956_s1 = inlined_call_operand.hbm [shape: bf16[2,8,32], index: 1, kind: input, shape index: {}]   ;;  %s2957_s2 = inlined_call_operand.hbm [shape: f32[1,32], index: 2, kind: input, shape index: {}]   ;;  %s2958_s3 = inlined_call_operand.hbm [shape: f32[1,32], index: 3, kind: input, shape index: {}]   ;;  %s2959_s4 = inlined_call_operand.hbm [shape: bf16[32,32], index: 4, kind: input, shape index: {}]   ;;  %s2960_s5 = inlined_call_operand.hbm [shape: f32[1,32], index: 5, kind: input, shape index: {}]   ;;  %s2961_s6 = inlined_call_operand.hbm [shape: bf16[32,64], index: 6, kind: input, shape index: {}]   ;;  %s2962_s7 = inlined_call_operand.hbm [shape: f32[1,64], index: 7, kind: input, shape index: {}]   ;;  %s2963_s8 = inlined_call_operand.hbm [shape: bf16[32,32], index: 8, kind: input, shape index: {}]   ;;  %s2964_s9 = inlined_call_operand.hbm [shape: f32[1,32], index: 9, kind: input, shape index: {}]   ;;  %s2965_s10 = inlined_call_operand.hbm [shape: bf16[2,8,8], index: 10, kind: input, shape index: {}]   ;;  %s2966_s11 = inlined_call_operand.hbm [shape: bf16[2,8,32], index: 11, kind: output, shape index: {}]  }
   0x1   :  { %2992 = sst [smem:[#allocation42_spill]] %s2955_s0 }
   0x2   :  { %2993 = sst [smem:[#allocation43_spill]] %s2957_s2 }
   0x3   :  { %2994 = sst [smem:[#allocation44_spill]] %s2958_s3 }
   0x4   :  { %2995 = sst [smem:[#allocation45_spill]] %s2960_s5 }
   0x5   :  { %2996 = sst [smem:[#allocation46_spill]] %s2962_s7 }
   0x6   :  { %2997 = sst [smem:[#allocation47_spill]] %s2966_s11 }
   0x7   :  { %16 = vsyncpa [#allocation4], 0 }
   0x8   :  { %18 = vsyncpa [#allocation4 + $0x1], 0 }
   0x9   :  { %19 = vsyncpa [#allocation7], 0 }
   0xa   :  { %21 = vsyncpa [#allocation7 + $0x1], 0 }
   0xb   :  { %22 = vsyncpa [#allocation10], 0 }
   0xc   :  { %23 = vsyncpa [#allocation13], 0 }
   0xd   :  { %24 = vsyncpa [#allocation16], 0 }
   0xe   :  { %25 = vsyncpa [#allocation19], 0 }
   0xf   :  { %26 = vsyncpa [#allocation5], 0 }
  0x10   :  { %28 = vsyncpa [#allocation5 + $0x1], 0  ;;  %s2400_s17 = smov 0   ;;  %s2402_s18 = smov 0  }
  0x11   :  { %s2404_s19 = smov 0   ;;  %s2406_s20 = smov 0  }
  0x12   :  { %s2408_s21 = smov 0   ;;  %s2410_s22 = smov 0  }
  0x13 LB: > { %2998 = sst [smem:[#allocation31_spill]] %s2292_s17  ;;  %s2431_s23 = sadd.s32 4294967295, %s2312_s22   ;;  %s2312_s22 = sphi %s2410_s22, %s34_s22   ;;  %s2308_s21 = sphi %s2408_s21, %s3058_s21   ;;  %s2304_s20 = sphi %s2406_s20, %s3057_s20   ;;  %s2300_s19 = sphi %s2404_s19, %s3056_s19   ;;  %s2296_s18 = sphi %s2402_s18, %s3055_s18   ;;  %s2292_s17 = sphi %s2400_s17, %s3054_s17  }
  0x14   : > { %2999 = sst [smem:[#allocation32_spill]] %s2296_s18  ;;  %p1537_p0 = scmp.ge.s32.totalorder %s2312_s22, 1 }
  0x15   : > { %3000 = sst [smem:[#allocation33_spill]] %s2300_s19  ;;  %p2968_p1 = scmp.eq.s32.totalorder %s2431_s23, 0 }
  0x16   : > { %3001 = sst [smem:[#allocation34_spill]] %s2304_s20  ;;  %p329_p2 = scmp.lt.s32.totalorder %s2312_s22, 3 }
  0x17   : > { %3002 = sst [smem:[#allocation35_spill]] %s2308_s21  ;;  %s2314_s25 = smov [#allocation8]  }
  0x18   : > { %p2436_p3 = pnand %p1537_p0, %p329_p2  ;;  %s342_s26 = sshll.u32 %s2314_s25, 4  ;;  %s343_s26 = int_to_ptr.vmem [resolvable:$true] %s342_s26 }
  0x19   : > { %s2315_s27 = smov [#allocation9]   ;;  %s2316_s30 = smov [#allocation12]  }
  0x1a   : > { %s3003_s24 = scalar_select %p2436_p3, 1, 0 }
  0x1b   : > { %p1735_p5 = pneg %p2436_p3  ;;  %s353_s28 = sshll.u32 %s2315_s27, 4  ;;  %s2449_s28 = int_to_ptr.vmem [resolvable:$true] %s353_s28 }
  0x1c   : > { %3004 = sst [smem:[#allocation36_spill]] %s3003_s24  ;;  %s377_s12 = sshll.u32 %s2316_s30, 4  ;;  %s2451_s12 = int_to_ptr.vmem [resolvable:$true] %s377_s12 }
  0x1d   : > { %p2445_p6 = pnand %p1735_p5, %p2968_p1  ;;  %s3006_s2 = sld [smem:[#allocation43_spill]] }
  0x1f   : > { %s3005_s29 = scalar_select %p2445_p6, 1, 0 }
  0x20   : > { %p2461_p8 = pneg %p2445_p6 }
  0x22   : > { %s3007_s27 = scalar_select %p2461_p8, 1, 0 }
  0x23   : > { %s1888_s15 = scalar_lea.hbm %s3006_s2, 16 }
  0x24   : > { %p1889_p7 = scmp.ne.s32.totalorder %s3006_s2, %s1888_s15  ;;  %p1895_p11 = scmp.lt.u32.totalorder %s1888_s15, %s3006_s2 }
  0x26   : > { %p1891_p9 = pnand %p2461_p8, %p1889_p7 }
  0x28   : > { %p1892_p10 = pneg %p1891_p9 }
  0x2a   : > { %p1897_p12 = pnand %p1895_p11, %p1892_p10 }
  0x2c   : > { %1900 = shalt.err (!%p1897_p12)
}
  0x2d   : > { %s1901_s13 = scalar_lea.vmem %s343_s26, 16  ;;  %s1908_s14 = scalar_lea.vmem %s343_s26, 32 }
  0x2e   : > { %p1902_p13 = scmp.ne.s32.totalorder %s343_s26, %s1901_s13  ;;  %p1909_p5 = scmp.lt.s32.totalorder %s343_s26, %s343_s26 }
  0x2f   : > { %p1910_p4 = scmp.lt.s32.totalorder %s1908_s14, %s1901_s13 }
  0x30   : > { %p1904_p0 = pnand %p1902_p13, %p2461_p8 }
  0x31   : > { %p1911_p1 = por %p1910_p4, %p1909_p5 }
  0x32   : > { %p1905_p2 = pneg %p1904_p0 }
  0x34   : > { %p1912_p3 = pnand %p1911_p1, %p1905_p2 }
  0x36   : > { %1915 = shalt.err (!%p1912_p3)
}
  0x37   : > { %1738 = dma.hbm_to_vmem [thread:$0]  (!%p2445_p6), %s3006_s2, 16, %s343_s26, [#allocation7]  }
  0x38   : > { %s3008_s3 = sld [smem:[#allocation44_spill]] }
  0x3e   : > { %s1916_s30 = scalar_lea.hbm %s3008_s3, 16 }
  0x3f   : > { %p1917_p7 = scmp.ne.s32.totalorder %s3008_s3, %s1916_s30  ;;  %p1923_p1 = scmp.lt.u32.totalorder %s1916_s30, %s3008_s3 }
  0x41   : > { %p1919_p9 = pnand %p1917_p7, %p2461_p8 }
  0x43   : > { %p1920_p4 = pneg %p1919_p9 }
  0x45   : > { %p1925_p3 = pnand %p1923_p1, %p1920_p4 }
  0x47   : > { %1928 = shalt.err (!%p1925_p3)
}
  0x48   : > { %s1929_s26 = scalar_lea.vmem %s2449_s28, 16  ;;  %s1936_s20 = scalar_lea.vmem %s2449_s28, 32 }
  0x49   : > { %p1930_p10 = scmp.ne.s32.totalorder %s2449_s28, %s1929_s26  ;;  %p1937_p13 = scmp.lt.s32.totalorder %s2449_s28, %s2449_s28 }
  0x4a   : > { %p1938_p0 = scmp.lt.s32.totalorder %s1936_s20, %s1929_s26 }
  0x4b   : > { %p1932_p11 = pnand %p1930_p10, %p2461_p8 }
  0x4c   : > { %p1939_p2 = por %p1938_p0, %p1937_p13 }
  0x4d   : > { %p1933_p12 = pneg %p1932_p11 }
  0x4f   : > { %p1940_p5 = pnand %p1939_p2, %p1933_p12 }
  0x51   : > { %1943 = shalt.err (!%p1940_p5)
}
  0x52   : > { %1741 = dma.hbm_to_vmem [thread:$0]  (!%p2445_p6), %s3008_s3, 16, %s2449_s28, [#allocation10]  }
  0x53   : > { %s3009_s5 = sld [smem:[#allocation45_spill]] }
  0x59   : > { %s1944_s15 = scalar_lea.hbm %s3009_s5, 16 }
  0x5a   : > { %p1945_p7 = scmp.ne.s32.totalorder %s3009_s5, %s1944_s15  ;;  %p1951_p1 = scmp.lt.u32.totalorder %s1944_s15, %s3009_s5 }
  0x5c   : > { %p1947_p9 = pnand %p1945_p7, %p2461_p8 }
  0x5e   : > { %p1948_p4 = pneg %p1947_p9 }
  0x60   : > { %p1953_p3 = pnand %p1951_p1, %p1948_p4 }
  0x62   : > { %1956 = shalt.err (!%p1953_p3)
}
  0x63   : > { %s1957_s28 = scalar_lea.vmem %s2451_s12, 16  ;;  %s1964_s20 = scalar_lea.vmem %s2451_s12, 32 }
  0x64   : > { %p1958_p10 = scmp.ne.s32.totalorder %s2451_s12, %s1957_s28  ;;  %p1965_p13 = scmp.lt.s32.totalorder %s2451_s12, %s2451_s12 }
  0x65   : > { %p1966_p0 = scmp.lt.s32.totalorder %s1964_s20, %s1957_s28 }
  0x66   : > { %p1960_p11 = pnand %p1958_p10, %p2461_p8 }
  0x67   : > { %p1967_p2 = por %p1966_p0, %p1965_p13 }
  0x68   : > { %p1961_p12 = pneg %p1960_p11 }
  0x6a   : > { %p1968_p5 = pnand %p1967_p2, %p1961_p12 }
  0x6c   : > { %1971 = shalt.err (!%p1968_p5)
}
  0x6d   : > { %1747 = dma.hbm_to_vmem [thread:$0]  (!%p2445_p6), %s3009_s5, 16, %s2451_s12, [#allocation13]  }
  0x6e   : > { %s2317_s25 = smov [#allocation15]   ;;  %s3010_s7 = sld [smem:[#allocation46_spill]] }
  0x6f   : > { %s401_s11 = sshll.u32 %s2317_s25, 4  ;;  %s402_s11 = int_to_ptr.vmem [resolvable:$true] %s401_s11 }
  0x74   : > { %s1972_s13 = scalar_lea.hbm %s3010_s7, 16 }
  0x75   : > { %p1973_p7 = scmp.ne.s32.totalorder %s3010_s7, %s1972_s13  ;;  %p1979_p1 = scmp.lt.u32.totalorder %s1972_s13, %s3010_s7 }
  0x77   : > { %p1975_p9 = pnand %p1973_p7, %p2461_p8 }
  0x79   : > { %p1976_p4 = pneg %p1975_p9 }
  0x7b   : > { %p1981_p3 = pnand %p1979_p1, %p1976_p4 }
  0x7d   : > { %1984 = shalt.err (!%p1981_p3)
}
  0x7e   : > { %s1985_s12 = scalar_lea.vmem %s402_s11, 16  ;;  %s1992_s24 = scalar_lea.vmem %s402_s11, 32 }
  0x7f   : > { %p1986_p10 = scmp.ne.s32.totalorder %s402_s11, %s1985_s12  ;;  %p1993_p13 = scmp.lt.s32.totalorder %s402_s11, %s402_s11 }
  0x80   : > { %p1994_p0 = scmp.lt.s32.totalorder %s1992_s24, %s1985_s12 }
  0x81   : > { %p1988_p11 = pnand %p1986_p10, %p2461_p8 }
  0x82   : > { %p1995_p2 = por %p1994_p0, %p1993_p13 }
  0x83   : > { %p1989_p12 = pneg %p1988_p11 }
  0x85   : > { %p1996_p5 = pnand %p1995_p2, %p1989_p12 }
  0x87   : > { %1999 = shalt.err (!%p1996_p5)
}
  0x88   : > { %1753 = dma.hbm_to_vmem [thread:$0]  (!%p2445_p6), %s3010_s7, 16, %s402_s11, [#allocation16]  }
  0x89   : > { %s1536_s15 = sadd.s32 4294967294, %s2312_s22   ;;  %s46_s30 = sadd.s32 1, %s2308_s21 }
  0x8a   : > { %p48_p7 = scmp.ge.s32.totalorder %s46_s30, 2  ;;  %s55_s13 = sadd.s32 1, %s2300_s19 }
  0x8b   : > { %p62_p9 = scmp.ne.s32.totalorder %s2300_s19, %s2296_s18  ;;  %p63_p4 = scmp.eq.s32.totalorder %s2312_s22, 0 }
  0x8c   : > { %s3060_s30 = smov (%p48_p7, %s46_s30), 0  ;;  %p68_p3 = scmp.ne.s32.totalorder %s2296_s18, %s2292_s17 }
  0x8d   : > { %3011 = sst [smem:[#allocation37_spill]] %s3060_s30  ;;  %p2551_p1 = por %p63_p4, %p62_p9 }
  0x8e   : > { %s50_s11 = ssub.s32 %s2308_s21, %s3060_s30  ;;  %p316_p10 = scmp.eq.s32.totalorder %s2431_s23, 1 }
  0x8f   : > { %p53_p11 = scmp.eq.s32.totalorder %s50_s11, 0  ;;  %p3013_p12 = scmp.eq.s32.totalorder %s2431_s23, 0 }
  0x90   : > { %p2566_p0 = por %p316_p10, %p62_p9  ;;  %p322_p2 = scmp.eq.s32.totalorder %s1536_s15, 1 }
  0x91   : > { %p2562_p13 = por %p3013_p12, %p68_p3  ;;  %p1782_p7 = scmp.lt.s32.totalorder %s2312_s22, 2 }
  0x92   : > { %s3016_s28 = scalar_select %p2566_p0, 1, 0 }
  0x93   : > { %s3014_s26 = scalar_select %p2562_p13, 1, 0 }
  0x94   : > { %3017 = sst [smem:[#allocation39_spill]] %s3016_s28  ;;  %p2573_p5 = por %p322_p2, %p68_p3 }
  0x95   : > { %3015 = sst [smem:[#allocation38_spill]] %s3014_s26  ;;  %s438_s16 = sand.u32 1, %s2300_s19  }
  0x96   : > { %s2571_s20 = scalar_select %p53_p11, %s2300_s19, %s55_s13  }
  0x97   : > { %s3019_s12 = scalar_select %p2573_p5, 1, 0 }
  0x98   : > { %3018 = sst [smem:[#allocation40_spill]] %s2571_s20  ;;  %s2580_s25 = sshll.u32 %s438_s16, 2 }
  0x99   : > { %3020 = sst [smem:[#allocation41_spill]] %s3019_s12  ;;  %s2583_s11 = sshll.u32 %s2308_s21, 6 }
  0x9a   : > { %s3021_s0 = sld [smem:[#allocation42_spill]]  ;;  %s440_s15 = scalar_lea.vmem [#allocation3], %s2580_s25 }
  0x9b   : > { %s448_s13 = sshll.u32 %s440_s15, 4  ;;  %p2596_p9 = pnand %p1782_p7, %p2551_p1  ;;  %s2592_s13 = int_to_ptr.vmem [resolvable:$true] %s448_s13 }
  0x9c   : > { %s2318_s24 = smov [#allocation11]   ;;  %s3023_s2 = sand.u32 1, %s2312_s22  }
  0x9d   : > { %s3022_s16 = scalar_select %p2596_p9, 1, 0 }
  0x9e   : > { %s2600_s7 = sshll.u32 %s2318_s24, 4  ;;  %s2604_s3 = scalar_lea.sflag [#allocation4], %s3023_s2  ;;  %s364_s7 = int_to_ptr.vmem [resolvable:$true] %s2600_s7 }
  0x9f   : > { %p2610_p3 = pneg %p2596_p9 }
  0xa0   : > { %s2589_s5 = scalar_lea.hbm %s3021_s0, %s2583_s11  ;;  %s2005_s20 = scalar_lea.hbm %s3021_s0, 128 }
  0xa1   : > { %s2000_s30 = scalar_lea.hbm %s2589_s5, 64  ;;  %p2006_p11 = scmp.lt.u32.totalorder %s2589_s5, %s3021_s0 }
  0xa2   : > { %p2001_p4 = scmp.ne.s32.totalorder %s2589_s5, %s2000_s30  ;;  %p2007_p12 = scmp.lt.u32.totalorder %s2005_s20, %s2000_s30 }
  0xa3   : > { %s3024_s21 = scalar_select %p2610_p3, 1, 0 }
  0xa4   : > { %p2003_p1 = pnand %p2610_p3, %p2001_p4  ;;  %p2008_p2 = por %p2007_p12, %p2006_p11 }
  0xa5   : > { %p2009_p7 = scmp.lt.u32.totalorder %s2000_s30, %s2589_s5 }
  0xa6   : > { %p2004_p10 = pneg %p2003_p1 }
  0xa7   : > { %p2010_p5 = por %p2009_p7, %p2008_p2 }
  0xa9   : > { %p2011_p0 = pnand %p2010_p5, %p2004_p10 }
  0xab   : > { %2014 = shalt.err (!%p2011_p0)
}
  0xac   : > { %s2015_s2 = scalar_lea.vmem %s2592_s13, 64  ;;  %s2319_s14 = smov [#allocation3]  }
  0xad   : > { %p2016_p4 = scmp.ne.s32.totalorder %s2592_s13, %s2015_s2  ;;  %s2020_s15 = sshll.u32 %s2319_s14, 4  ;;  %s2021_s15 = int_to_ptr.vmem [resolvable:$false] %s2020_s15 }
  0xae   : > { %s2022_s19 = scalar_lea.vmem %s2021_s15, 128  ;;  %p2023_p6 = scmp.lt.s32.totalorder %s2592_s13, %s2021_s15 }
  0xaf   : > { %p2018_p1 = pnand %p2016_p4, %p2610_p3  ;;  %p2024_p8 = scmp.lt.s32.totalorder %s2022_s19, %s2015_s2 }
  0xb1   : > { %p2019_p13 = pneg %p2018_p1  ;;  %p2025_p11 = por %p2024_p8, %p2023_p6 }
  0xb3   : > { %p2026_p12 = pnand %p2025_p11, %p2019_p13 }
  0xb5   : > { %2029 = shalt.err (!%p2026_p12)
}
  0xb6   : > { %1763 = dma.hbm_to_vmem [thread:$0]  (!%p2596_p9), %s2589_s5, 64, %s2592_s13, %s2604_s3  }
  0xb7   : > { %s2030_s24 = scalar_lea.hbm %s2959_s4, 256  ;;  %p3025_p6 = scmp.ne.s32.totalorder %s3007_s27, 0 }
  0xb8   : > { %p2031_p0 = scmp.ne.s32.totalorder %s2959_s4, %s2030_s24  ;;  %p2037_p5 = scmp.lt.u32.totalorder %s2030_s24, %s2959_s4 }
  0xba   : > { %p2033_p8 = pnand %p2031_p0, %p3025_p6 }
  0xbc   : > { %p2034_p13 = pneg %p2033_p8 }
  0xbe   : > { %p2039_p10 = pnand %p2037_p5, %p2034_p13 }
  0xc0   : > { %2042 = shalt.err (!%p2039_p10)
}
  0xc1   : > { %s2043_s19 = scalar_lea.vmem %s364_s7, 256  ;;  %p2051_p1 = scmp.lt.s32.totalorder %s364_s7, %s364_s7 }
  0xc2   : > { %p2044_p2 = scmp.ne.s32.totalorder %s364_s7, %s2043_s19  ;;  %p2052_p11 = scmp.lt.s32.totalorder %s2043_s19, %s2043_s19 }
  0xc4   : > { %p2046_p7 = pnand %p2044_p2, %p3025_p6  ;;  %p2053_p12 = por %p2052_p11, %p2051_p1 }
  0xc6   : > { %p2047_p4 = pneg %p2046_p7 }
  0xc8   : > { %p2054_p9 = pnand %p2053_p12, %p2047_p4 }
  0xca   : > { %2057 = shalt.err (!%p2054_p9)
}
  0xcb   : > { %s2320_s0 = smov 64   ;;  %s2321_s5 = smov 4  }
  0xcc   : > { %p3026_p0 = scmp.ne.s32.totalorder %s3005_s29, 0  ;;  %s2322_s20 = smov [#allocation14]  }
  0xcd   : > { %s387_s24 = sshll.u32 %s2322_s20, 4  ;;  %s2323_s14 = smov [#allocation17]   ;;  %s388_s24 = int_to_ptr.vmem [resolvable:$true] %s387_s24 }
  0xce   : > { %1744 = dma.hbm_to_vmem [thread:$0]  (!%p3026_p0), %s2959_s4, 256, %s364_s7, [#allocation10], %s2320_s0, %s2320_s0, %s2321_s5  }
  0xcf   : > { %s411_s2 = sshll.u32 %s2323_s14, 4  ;;  %s2058_s12 = scalar_lea.hbm %s2961_s6, 256  ;;  %s412_s2 = int_to_ptr.vmem [resolvable:$true] %s411_s2 }
  0xd0   : > { %p2059_p9 = scmp.ne.s32.totalorder %s2961_s6, %s2058_s12  ;;  %p2065_p5 = scmp.lt.u32.totalorder %s2058_s12, %s2961_s6 }
  0xd2   : > { %p2061_p8 = pnand %p2059_p9, %p3025_p6 }
  0xd4   : > { %p2062_p13 = pneg %p2061_p8 }
  0xd6   : > { %p2067_p10 = pnand %p2065_p5, %p2062_p13 }
  0xd8   : > { %2070 = shalt.err (!%p2067_p10)
}
  0xd9   : > { %s2071_s7 = scalar_lea.vmem %s388_s24, 256  ;;  %p2079_p1 = scmp.lt.s32.totalorder %s388_s24, %s388_s24 }
  0xda   : > { %p2072_p2 = scmp.ne.s32.totalorder %s388_s24, %s2071_s7  ;;  %p2080_p11 = scmp.lt.s32.totalorder %s2071_s7, %s2071_s7 }
  0xdc   : > { %p2074_p7 = pnand %p2072_p2, %p3025_p6  ;;  %p2081_p12 = por %p2080_p11, %p2079_p1 }
  0xde   : > { %p2075_p4 = pneg %p2074_p7 }
  0xe0   : > { %p2082_p3 = pnand %p2081_p12, %p2075_p4 }
  0xe2   : > { %2085 = shalt.err (!%p2082_p3)
}
  0xe3   : > { %1750 = dma.hbm_to_vmem [thread:$0]  (!%p3026_p0), %s2961_s6, 256, %s388_s24, [#allocation13], %s2320_s0, %s2320_s0, %s2321_s5  }
  0xe4   : > { %s2086_s12 = scalar_lea.hbm %s2963_s8, 256 }
  0xe5   : > { %p2087_p9 = scmp.ne.s32.totalorder %s2963_s8, %s2086_s12  ;;  %p2093_p13 = scmp.lt.u32.totalorder %s2086_s12, %s2963_s8 }
  0xe7   : > { %p2089_p3 = pnand %p2087_p9, %p3025_p6 }
  0xe9   : > { %p2090_p8 = pneg %p2089_p3 }
  0xeb   : > { %p2095_p5 = pnand %p2093_p13, %p2090_p8 }
  0xed   : > { %2098 = shalt.err (!%p2095_p5)
}
  0xee   : > { %s2099_s15 = scalar_lea.vmem %s412_s2, 256  ;;  %p2107_p4 = scmp.lt.s32.totalorder %s412_s2, %s412_s2 }
  0xef   : > { %p2100_p10 = scmp.ne.s32.totalorder %s412_s2, %s2099_s15  ;;  %p2108_p1 = scmp.lt.s32.totalorder %s2099_s15, %s2099_s15 }
  0xf1   : > { %p2102_p2 = pnand %p2100_p10, %p3025_p6  ;;  %p2109_p11 = por %p2108_p1, %p2107_p4 }
  0xf3   : > { %p2103_p7 = pneg %p2102_p2 }
  0xf5   : > { %p2110_p12 = pnand %p2109_p11, %p2103_p7 }
  0xf7   : > { %2113 = shalt.err (!%p2110_p12)
}
  0xf8   : > { %1756 = dma.hbm_to_vmem [thread:$0]  (!%p3026_p0), %s2963_s8, 256, %s412_s2, [#allocation16], %s2320_s0, %s2320_s0, %s2321_s5  }
  0xf9   : > { %s2324_s7 = smov [#allocation18]   ;;  %s2702_s28 = scalar_lea.hbm %s2956_s1, %s2583_s11 }
  0xfa   : > { %s425_s17 = sshll.u32 %s2324_s7, 4  ;;  %s2114_s30 = scalar_lea.hbm %s2964_s9, 16  ;;  %s426_s17 = int_to_ptr.vmem [resolvable:$true] %s425_s17 }
  0xfb   : > { %p2115_p9 = scmp.ne.s32.totalorder %s2964_s9, %s2114_s30  ;;  %p2121_p13 = scmp.lt.u32.totalorder %s2114_s30, %s2964_s9 }
  0xfd   : > { %p2117_p3 = pnand %p2115_p9, %p3025_p6 }
  0xff   : > { %p2118_p8 = pneg %p2117_p3 }
 0x101   : > { %p2123_p5 = pnand %p2121_p13, %p2118_p8 }
 0x103   : > { %2126 = shalt.err (!%p2123_p5)
}
 0x104   : > { %s2127_s2 = scalar_lea.vmem %s426_s17, 16  ;;  %s2134_s15 = scalar_lea.vmem %s426_s17, 32 }
 0x105   : > { %p2128_p10 = scmp.ne.s32.totalorder %s426_s17, %s2127_s2  ;;  %p2135_p4 = scmp.lt.s32.totalorder %s426_s17, %s426_s17 }
 0x106   : > { %p2136_p1 = scmp.lt.s32.totalorder %s2134_s15, %s2127_s2 }
 0x107   : > { %p2130_p2 = pnand %p2128_p10, %p3025_p6 }
 0x108   : > { %p2137_p11 = por %p2136_p1, %p2135_p4 }
 0x109   : > { %p2131_p7 = pneg %p2130_p2 }
 0x10b   : > { %p2138_p12 = pnand %p2137_p11, %p2131_p7 }
 0x10d   : > { %2141 = shalt.err (!%p2138_p12)
}
 0x10e   : > { %1759 = dma.hbm_to_vmem [thread:$0]  (!%p3026_p0), %s2964_s9, 16, %s426_s17, [#allocation19]  }
 0x10f   : > { %s459_s27 = scalar_lea.vmem [#allocation6], %s2580_s25  ;;  %s2729_s29 = scalar_lea.hbm %s2965_s10, %s2583_s11 }
 0x110   : > { %s466_s7 = sshll.u32 %s459_s27, 4  ;;  %s3027_s12 = sand.u32 1, %s2312_s22   ;;  %s2723_s7 = int_to_ptr.vmem [resolvable:$true] %s466_s7 }
 0x111   : > { %s456_s13 = scalar_lea.sflag [#allocation7], %s3027_s12  ;;  %s2142_s30 = scalar_lea.hbm %s2702_s28, 64 }
 0x112   : > { %p2143_p6 = scmp.ne.s32.totalorder %s2702_s28, %s2142_s30  ;;  %p3028_p9 = scmp.ne.s32.totalorder %s3024_s21, 0 }
 0x113   : > { %s2147_s17 = scalar_lea.hbm %s2956_s1, 128  ;;  %p2148_p0 = scmp.lt.u32.totalorder %s2702_s28, %s2956_s1 }
 0x114   : > { %p2145_p3 = pnand %p2143_p6, %p3028_p9  ;;  %p2149_p13 = scmp.lt.u32.totalorder %s2147_s17, %s2142_s30 }
 0x115   : > { %p2151_p10 = scmp.lt.u32.totalorder %s2142_s30, %s2702_s28 }
 0x116   : > { %p2146_p8 = pneg %p2145_p3  ;;  %p2150_p5 = por %p2149_p13, %p2148_p0 }
 0x118   : > { %p2152_p2 = por %p2151_p10, %p2150_p5 }
 0x11a   : > { %p2153_p7 = pnand %p2152_p2, %p2146_p8 }
 0x11c   : > { %2156 = shalt.err (!%p2153_p7)
}
 0x11d   : > { %s2157_s11 = scalar_lea.vmem %s2723_s7, 64  ;;  %s2325_s2 = smov [#allocation6]  }
 0x11e   : > { %p2158_p4 = scmp.ne.s32.totalorder %s2723_s7, %s2157_s11  ;;  %s2162_s15 = sshll.u32 %s2325_s2, 4  ;;  %s2163_s15 = int_to_ptr.vmem [resolvable:$false] %s2162_s15 }
 0x11f   : > { %s2164_s24 = scalar_lea.vmem %s2163_s15, 128  ;;  %p2165_p12 = scmp.lt.s32.totalorder %s2723_s7, %s2163_s15 }
 0x120   : > { %p2160_p1 = pnand %p2158_p4, %p3028_p9  ;;  %p2166_p6 = scmp.lt.s32.totalorder %s2164_s24, %s2157_s11 }
 0x122   : > { %p2161_p11 = pneg %p2160_p1  ;;  %p2167_p3 = por %p2166_p6, %p2165_p12 }
 0x124   : > { %p2168_p0 = pnand %p2167_p3, %p2161_p11 }
 0x126   : > { %2171 = shalt.err (!%p2168_p0)
}
 0x127   : > { %p3029_p8 = scmp.ne.s32.totalorder %s3022_s16, 0  ;;  %s477_s19 = scalar_lea.vmem [#allocation20], %s2580_s25 }
 0x128   : > { %s485_s27 = sshll.u32 %s477_s19, 4  ;;  %s2172_s18 = scalar_lea.hbm %s2729_s29, 64  ;;  %s486_s27 = int_to_ptr.vmem [resolvable:$true] %s485_s27 }
 0x129   : > { %1766 = dma.hbm_to_vmem [thread:$0]  (!%p3029_p8), %s2702_s28, 64, %s2723_s7, %s456_s13  }
 0x12a   : > { %p2173_p13 = scmp.ne.s32.totalorder %s2729_s29, %s2172_s18  ;;  %s2177_s30 = scalar_lea.hbm %s2965_s10, 128 }
 0x12b   : > { %p2178_p2 = scmp.lt.u32.totalorder %s2729_s29, %s2965_s10  ;;  %p2179_p7 = scmp.lt.u32.totalorder %s2177_s30, %s2172_s18 }
 0x12c   : > { %p2175_p5 = pnand %p2173_p13, %p3028_p9  ;;  %p2181_p1 = scmp.lt.u32.totalorder %s2172_s18, %s2729_s29 }
 0x12d   : > { %p2180_p4 = por %p2179_p7, %p2178_p2 }
 0x12e   : > { %p2176_p10 = pneg %p2175_p5 }
 0x12f   : > { %p2182_p11 = por %p2181_p1, %p2180_p4 }
 0x131   : > { %p2183_p12 = pnand %p2182_p11, %p2176_p10 }
 0x133   : > { %2186 = shalt.err (!%p2183_p12)
}
 0x134   : > { %s2187_s25 = scalar_lea.vmem %s486_s27, 64  ;;  %s2326_s28 = smov [#allocation20]  }
 0x135   : > { %p2188_p6 = scmp.ne.s32.totalorder %s486_s27, %s2187_s25  ;;  %s2192_s7 = sshll.u32 %s2326_s28, 4  ;;  %s2193_s7 = int_to_ptr.vmem [resolvable:$false] %s2192_s7 }
 0x136   : > { %s2194_s13 = scalar_lea.vmem %s2193_s7, 128  ;;  %p2195_p13 = scmp.lt.s32.totalorder %s486_s27, %s2193_s7 }
 0x137   : > { %p2190_p3 = pnand %p2188_p6, %p3028_p9  ;;  %p2196_p5 = scmp.lt.s32.totalorder %s2194_s13, %s2187_s25 }
 0x139   : > { %p2191_p0 = pneg %p2190_p3  ;;  %p2197_p8 = por %p2196_p5, %p2195_p13 }
 0x13b   : > { %p2198_p2 = pnand %p2197_p8, %p2191_p0 }
 0x13d   : > { %2201 = shalt.err (!%p2198_p2)
}
 0x13e   : > { %p3030_p7 = scmp.ne.s32.totalorder %s3022_s16, 0  ;;  %s3031_s17 = sld [smem:[#allocation36_spill]] }
 0x140   : > { %1769 = dma.hbm_to_vmem [thread:$0]  (!%p3030_p7), %s2729_s29, 64, %s486_s27, %s2604_s3  }
 0x144   : > { %p3032_p10 = scmp.ne.s32.totalorder %s3031_s17, 0 }
 0x145   : > { %s3033_s21 = sld [smem:[#allocation32_spill]] (!%p3032_p10)  ;;  %s496_s5 = sand.u32 (!%p3032_p10), 1, %s2431_s23  }
 0x146   : > { %494 = sbr.rel (%p3032_p10) target bundleno = 2173 (0x87d), region = 64  ;;  %s3034_s0 = sld [smem:[#allocation38_spill]] (!%p3032_p10) }
 0x147   : > { %s497_s15 = scalar_lea.sflag (!%p3032_p10), [#allocation4], %s496_s5 }
 0x14b   : > { %s498_s11 = sand.u32 (!%p3032_p10), 1, %s3033_s21  }
 0x14c   : > { %s2779_s2 = sshll.u32 (!%p3032_p10), %s498_s11, 2  ;;  %p3035_p9 = scmp.ne.s32.totalorder (!%p3032_p10), %s3034_s0, 0 }
 0x14d   : > { %s500_s24 = scalar_lea.vmem [#allocation3], %s2779_s2 }
 0x14e   : > { %2255 = dma.done.wait (%p3035_p9), %s497_s15, 64  }
 0x14f   : > { %2257 = vsyncadd (%p3035_p9), %s497_s15, 4294967232  ;;  %s506_s16 = scalar_lea.sflag [#allocation7], %s496_s5  ;;  %s509_s3 = scalar_lea.vmem [#allocation6], %s2779_s2 }
 0x150   : > { %2259 = dma.done.wait (%p3035_p9), %s506_s16, 64  }
 0x151   : > { %2261 = vsyncadd (%p3035_p9), %s506_s16, 4294967232  ;;  %p3036_p8 = scmp.eq.s32.totalorder %s2431_s23, 0 }
 0x153   : > { %2263 = dma.done.wait (%p3036_p8), [#allocation7], 16   ;;  %p3037_p4 = pmov %p3036_p8 }
 0x155   : > { %2265 = vsyncadd (%p3037_p4), [#allocation7], 4294967280  ;;  %p3038_p1 = pmov %p3037_p4 }
 0x157   : > { %2267 = dma.done.wait (%p3038_p1), [#allocation10], 272   ;;  %p3039_p11 = pmov %p3038_p1 }
 0x158   : > { %p3040_p12 = pmov %p3038_p1 }
 0x159   : > { %2269 = vsyncadd (%p3039_p11), [#allocation10], 4294967024 }
 0x15a   : > { %2271 = dma.done.wait (%p3040_p12), [#allocation13], 272   ;;  %p3041_p6 = pmov %p3038_p1 }
 0x15b   : > { %p3042_p3 = pmov %p3038_p1 }
 0x15c   : > { %2273 = vsyncadd (%p3041_p6), [#allocation13], 4294967024 }
 0x15d   : > { %2275 = dma.done.wait (%p3042_p3), [#allocation16], 272   ;;  %p3043_p0 = pmov %p3038_p1 }
 0x15f   : > { %2277 = vsyncadd (%p3043_p0), [#allocation16], 4294967024  ;;  %p3044_p13 = pmov %p3043_p0 }
 0x160   : > { %p3045_p5 = pmov %p3043_p0 }
 0x161   : > { %2279 = dma.done.wait (%p3044_p13), [#allocation19], 16  }
 0x162   : > { %2281 = vsyncadd (%p3045_p5), [#allocation19], 4294967280  ;;  %s550_s29 = scalar_lea.vmem [#allocation20], %s2779_s2 }
 0x163   : > { %2283 = dma.done.wait (%p3035_p9), %s497_s15, 64  }
 0x164   : > { %2285 = vsyncadd (%p3035_p9), %s497_s15, 4294967232  ;;  %v600_v0 = vld [vmem:[%s500_s24] sm:$0xf]  ;;  %vm604_vm0 = vcmask 261120   ;;  %v2327_v9 = vmov 0.0   ;;  %vm2328_vm1 = vmmov 0  }
 0x165   : > { %v2816_v1 = vunpack.c.l.bf16 %v600_v0  ;;  %v1862_v8 = vld [vmem:[#allocation14] sm:$0xff]   ;;  %1631 = vmatprep.subr.bf16.mxu1 %v2327_v9  ;;  %1635 = vmatprep.mubr.msk.bf16.mxu1 %vm2328_vm1, %v2327_v9  ;;  %v1864_v10 = vld [vmem:[#allocation11] sm:$0xff]   ;;  %v1865_v12 = vld [vmem:[#allocation11 + $0x8] sm:$0xff]   ;;  %s2329_s23 = smov 120   ;;  %s2330_s19 = smov 112   ;;  %vm779_vm4 = vcmask 64512  }
 0x166   : > { %1632 = vmatpush3.bf16.msra.mxu1 %v1862_v8  ;;  %v1863_v11 = vld [vmem:[#allocation14 + $0x8] sm:$0xff]   ;;  %1623 = vmatprep.subr.bf16.mxu0 %v2327_v9  ;;  %v1572_v29 = vld [vmem:[#allocation15] ss:$0 sm:$0xff]  ;;  %v1568_v37 = vld [vmem:[#allocation12] ss:$0 sm:$0xff]  ;;  %s2331_s27 = smov 104  }
 0x167   : > { %v605_v2 = vsel %vm604_vm0, %v2816_v1, 0.0  ;;  %1633 = vmatprep.subr.bf16.mxu1 %v2327_v9  ;;  %1624 = vmatpush3.bf16.msra.mxu0 %v1864_v10  ;;  %v640_v13 = vld [vmem:[%s509_s3] sm:$0xf]  ;;  %v1566_v22 = vld [vmem:[#allocation8] ss:$0 sm:$0xff]  ;;  %s2332_s18 = smov 88  }
 0x168   : > { %606 = vadd.xlane.f32.xlu0 %v605_v2  ;;  %1625 = vmatprep.subr.bf16.mxu0 %v2327_v9  ;;  %v1567_v25 = vld [vmem:[#allocation9] ss:$0 sm:$0xff]  ;;  %v775_v54 = vld [vmem:[%s550_s29] sm:$0xf]  ;;  %s2333_s26 = smov 96   ;;  %s2334_s12 = smov 72  }
 0x169   : > { %1627 = vmatprep.mubr.msk.bf16.mxu0 %vm2328_vm1, %v2327_v9  ;;  %v776_v55 = vunpack.c.l.bf16 %v775_v54  ;;  %s2335_s30 = smov 80   ;;  %vm844_vm5 = vcmask 1043456   ;;  %vm889_vm6 = vcmask 60416   ;;  %s2336_s20 = smov 8   ;;  %vm1009_vm7 = vcmask 126016  }
 0x16a   : > { %1634 = vmatpush3.bf16.msra.mxu1 %v1863_v11  ;;  %s2337_s14 = smov 16   ;;  %s2338_s25 = smov 24   ;;  %vm1128_vm8 = vcmask 191616   ;;  %vm1247_vm9 = vcmask 257216   ;;  %vm1318_vm10 = vcmask 257024  }
 0x16b   : > { %1626 = vmatpush3.bf16.msra.mxu0 %v1865_v12  ;;  %1645 = vmatprep.subr.bf16.mxu1 %v2327_v9  ;;  %s3046_s28 = sld [smem:[#allocation34_spill]]  ;;  %s3047_s7 = sld [smem:[#allocation39_spill]] }
 0x16c   : > { %1639 = vmatprep.subr.bf16.mxu0 %v2327_v9  ;;  %s598_s17 = scalar_lea.vmem [#allocation21], %s2779_s2  ;;  %s3048_s24 = sld [smem:[#allocation47_spill]] }
 0x16d   : > { %1636 = vmatmul.mubr.msk.bf16.vlgmr.msra.gmra.mrb[0].mxu1 %vm604_vm0, %v640_v13  ;;  %s1335_s0 = sshll.u32 %s598_s17, 4  ;;  %s1321_s3 = scalar_lea.sflag [#allocation5], %s498_s11  ;;  %s2907_s0 = int_to_ptr.vmem [resolvable:$true] %s1335_s0 }
 0x16e   : > { %1647 = vmatprep.mubr.msk.bf16.mxu1 %vm2328_vm1, %v2327_v9  ;;  %s2202_s2 = scalar_lea.vmem %s2907_s0, 64  ;;  %s2339_s29 = smov [#allocation21]  }
 0x16f   : > { %p2203_p2 = scmp.ne.s32.totalorder %s2907_s0, %s2202_s2 }
 0x171   : > { %s1592_s13 = sshll.u32 %s3046_s28, 6  ;;  %p3049_p7 = scmp.ne.s32.totalorder %s3047_s7, 0 }
 0x172   : > { %s2905_s16 = scalar_lea.hbm %s3048_s24, %s1592_s13 }
 0x173   : > { %p2204_p10 = pnand %p2203_p2, %p3049_p7 }
 0x175   : > { %p2205_p9 = pneg %p2204_p10 }
 0x1f5   : > { %v607_v3 = vpop.xlane.xlu0 %606 }
 0x1f6   : > { %v609_v4 = vmul.f32 0.03125, %v607_v3 }
 0x1f8   : > { %v610_v5 = vsub.f32 %v2816_v1, %v609_v4 }
 0x1fa   : > { %v611_v6 = vmul.f32 %v610_v5, %v610_v5  ;;  %v631_v23 = vmul.f32 %v1566_v22, %v610_v5 }
 0x1fc   : > { %v612_v7 = vsel %vm604_vm0, %v611_v6, 0.0 }
 0x1fd   : > { %613 = vadd.xlane.f32.xlu0 %v612_v7 }
 0x240   : > { %v769_v30 = vpop.f32.mrb[0].mxu1 }
 0x241   : > { %v770_v31 = vadd.f32 %v1572_v29, %v769_v30  ;;  %v1637_v32 = vpop.f32.mrb[1].mxu1 }
 0x242   : > { %v772_v33 = vpop.f32.mrb[2].mxu1 }
 0x243   : > { %v2840_v34 = vpack.c.bf16 %v770_v31, %v770_v31  ;;  %v1638_v35 = vpop.f32.mrb[3].mxu1 }
 0x245   : > { %894 = vrot.lane.b32.xlu1 %v2840_v34, %s2329_s23  ;;  %1013 = vrot.lane.b32.xlu0 %v2840_v34, %s2330_s19  ;;  %v784_v36 = vsel %vm779_vm4, %v2840_v34, 0 }
 0x28a   : > { %v614_v14 = vpop.xlane.xlu0 %613 }
 0x28b   : > { %v615_v15 = vmul.f32 0.032258064, %v614_v14 }
 0x28d   : > { %1868 = vrsqrt.f32 %v615_v15  ;;  %vm618_vm2 = vcmp.eq.f32.partialorder %v615_v15, inf  ;;  %v621_v18 = vand.u32 2147483648, %v615_v15  ;;  %vm620_vm3 = vcmp.eq.f32.partialorder %v615_v15, 0.0 }
 0x297   : > { %v1869_v16 = vpop.eup %1868 }
 0x298   : > { %v617_v17 = vmul.f32 %v1869_v16, %v615_v15 }
 0x29a   : > { %v619_v19 = vsel %vm618_vm2, %v615_v15, %v617_v17 }
 0x29b   : > { %v622_v20 = vsel %vm620_vm3, %v621_v18, %v619_v19 }
 0x29c   : > { %v623_v21 = vadd.f32 1e-06, %v622_v20 }
 0x29e   : > { %1870 = vrcp.f32 %v623_v21 }
 0x2a8   : > { %v1871_v24 = vpop.eup %1870 }
 0x2a9   : > { %v632_v26 = vmul.f32 %v1871_v24, %v631_v23 }
 0x2ab   : > { %v639_v27 = vadd.f32 %v1567_v25, %v632_v26 }
 0x2ad   : > { %v641_v28 = vpack.c.bf16 %v639_v27, %v639_v27 }
 0x2af   : > { %1628 = vmatmul.mubr.msk.bf16.vlgmr.msra.gmra.mrb[0].mxu0 %vm604_vm0, %v641_v28 }
 0x2b0   : > { %1641 = vmatprep.mubr.msk.bf16.mxu0 %vm2328_vm1, %v2327_v9  ;;  %1640 = vmatpush3.bf16.xpose.msra.mxu0 %v784_v36 }
 0x2b1   : > { %1651 = vmatprep.subr.bf16.mxu0 %v2327_v9 }
 0x2b7   : > { %v895_v42 = vpop.permute.xlu1 %894  ;;  %v1014_v47 = vpop.permute.xlu0 %1013 }
 0x2b8   : > { %v900_v46 = vsel %vm779_vm4, %v895_v42, 0  ;;  %v1019_v49 = vsel %vm779_vm4, %v1014_v47, 0 }
 0x382   : > { %v702_v38 = vpop.f32.mrb[0].mxu0 }
 0x383   : > { %v703_v39 = vadd.f32 %v1568_v37, %v702_v38  ;;  %v1629_v40 = vpop.f32.mrb[1].mxu0 }
 0x384   : > { %v705_v41 = vpop.f32.mrb[2].mxu0 }
 0x385   : > { %v708_v43 = vmul.f32 0.35355338, %v703_v39  ;;  %v1630_v44 = vpop.f32.mrb[3].mxu0 }
 0x387   : > { %v777_v45 = vpack.c.bf16 %v708_v43, %v708_v43 }
 0x389   : > { %892 = vrot.lane.b32.xlu1 %v777_v45, %s2329_s23  ;;  %1642 = vmatmul.mubr.msk.bf16.vlgmr.msra.gmra.mrb[4].mxu0 %vm779_vm4, %v777_v45  ;;  %s2206_s23 = sshll.u32 %s2339_s29, 4  ;;  %s2207_s23 = int_to_ptr.vmem [resolvable:$false] %s2206_s23 }
 0x38a   : > { %1652 = vmatpush3.bf16.xpose.msra.mxu0 %v900_v46  ;;  %1653 = vmatprep.mubr.msk.bf16.mxu0 %vm2328_vm1, %v2327_v9  ;;  %p2209_p8 = scmp.lt.s32.totalorder %s2907_s0, %s2207_s23 }
 0x38b   : > { %1663 = vmatprep.subr.bf16.mxu0 %v2327_v9 }
 0x38d   : > { %1011 = vrot.lane.b32.xlu1 %v777_v45, %s2330_s19  ;;  %s2208_s19 = scalar_lea.vmem %s2207_s23, 128 }
 0x38e   : > { %p2210_p4 = scmp.lt.s32.totalorder %s2208_s19, %s2202_s2 }
 0x390   : > { %p2211_p1 = por %p2210_p4, %p2209_p8 }
 0x391   : > { %1132 = vrot.lane.b32.xlu1 %v2840_v34, %s2331_s27 }
 0x392   : > { %p2212_p11 = pnand %p2211_p1, %p2205_p9 }
 0x395   : > { %1130 = vrot.lane.b32.xlu1 %v777_v45, %s2331_s27 }
 0x3fb   : > { %v893_v48 = vpop.permute.xlu1 %892 }
 0x3fc   : > { %1654 = vmatmul.mubr.msk.bf16.vlgmr.msra.gmra.mrb[8].mxu0 %vm779_vm4, %v893_v48 }
 0x3fd   : > { %1664 = vmatpush3.bf16.xpose.msra.mxu0 %v1019_v49  ;;  %1665 = vmatprep.mubr.msk.bf16.mxu0 %vm2328_vm1, %v2327_v9 }
 0x3fe   : > { %1675 = vmatprep.subr.bf16.mxu0 %v2327_v9 }
 0x3ff   : > { %v1012_v50 = vpop.permute.xlu1 %1011 }
 0x403   : > { %v1133_v51 = vpop.permute.xlu1 %1132 }
 0x404   : > { %v1138_v52 = vsel %vm779_vm4, %v1133_v51, 0  ;;  %1666 = vmatmul.mubr.msk.bf16.vlgmr.msra.gmra.mrb[12].mxu0 %vm779_vm4, %v1012_v50 }
 0x405   : > { %1676 = vmatpush3.bf16.xpose.msra.mxu0 %v1138_v52  ;;  %1677 = vmatprep.mubr.msk.bf16.mxu0 %vm2328_vm1, %v2327_v9 }
 0x406   : > { %1687 = vmatprep.subr.bf16.mxu0 %v2327_v9 }
 0x407   : > { %v1131_v53 = vpop.permute.xlu1 %1130 }
 0x40c   : > { %1678 = vmatmul.mubr.msk.bf16.vlgmr.msra.gmra.mrb[16].mxu0 %vm779_vm4, %v1131_v53 }
 0x40d   : > { %1691 = vmatprep.mubr.msk.bf16.mxu0 %vm2328_vm1, %v2327_v9 }
 0x45c   : > { %v820_v56 = vpop.f32.mrb[4].mxu0 }
 0x45d   : > { %v821_v57 = vadd.f32 %v820_v56, %v776_v55  ;;  %v1643_v58 = vpop.f32.mrb[5].mxu0 }
 0x45e   : > { %v823_v59 = vpop.f32.mrb[6].mxu0 }
 0x45f   : > { %v1644_v60 = vpop.f32.mrb[7].mxu0  ;;  %v826_v61 = vsel %vm779_vm4, %v821_v57, -inf }
 0x460   : > { %827 = vmax.xlane.f32.xlu1 %v826_v61 }
 0x4cf   : > { %v936_v62 = vpop.f32.mrb[8].mxu0 }
 0x4d0   : > { %v937_v63 = vadd.f32 %v936_v62, %v776_v55  ;;  %v1655_v0 = vpop.f32.mrb[9].mxu0 }
 0x4d1   : > { %v939_v2 = vpop.f32.mrb[10].mxu0 }
 0x4d2   : > { %v1656_v3 = vpop.f32.mrb[11].mxu0  ;;  %v942_v4 = vsel %vm779_vm4, %v937_v63, -inf }
 0x4d3   : > { %943 = vmax.xlane.f32.xlu0 %v942_v4 }
 0x4d7   : > { %v1055_v5 = vpop.f32.mrb[12].mxu0 }
 0x4d8   : > { %v1056_v6 = vadd.f32 %v1055_v5, %v776_v55  ;;  %v1667_v7 = vpop.f32.mrb[13].mxu0 }
 0x4d9   : > { %v1058_v8 = vpop.f32.mrb[14].mxu0 }
 0x4da   : > { %v1668_v10 = vpop.f32.mrb[15].mxu0  ;;  %v1061_v11 = vsel %vm779_vm4, %v1056_v6, -inf }
 0x4db   : > { %1062 = vmax.xlane.f32.xlu1 %v1061_v11  ;;  %v1866_v10 = vld [vmem:[#allocation17] sm:$0xff]  }
 0x4dc   : > { %1688 = vmatpush3.bf16.msra.mxu0 %v1866_v10 }
 0x4dd   : > { %1689 = vmatprep.subr.bf16.mxu0 %v2327_v9 }
 0x4df   : > { %v1174_v12 = vpop.f32.mrb[16].mxu0 }
 0x4e0   : > { %v1175_v13 = vadd.f32 %v1174_v12, %v776_v55  ;;  %v1679_v14 = vpop.f32.mrb[17].mxu0  ;;  %v1867_v12 = vld [vmem:[#allocation17 + $0x8] sm:$0xff]  }
 0x4e1   : > { %v1177_v15 = vpop.f32.mrb[18].mxu0  ;;  %1690 = vmatpush3.bf16.msra.mxu0 %v1867_v12 }
 0x4e2   : > { %v1680_v16 = vpop.f32.mrb[19].mxu0  ;;  %v1180_v17 = vsel %vm779_vm4, %v1175_v13, -inf }
 0x4e3   : > { %1181 = vmax.xlane.f32.xlu1 %v1180_v17 }
 0x4ed   : > { %v828_v18 = vpop.xlane.xlu1 %827 }
 0x4ee   : > { %v829_v19 = vsub.f32 %v821_v57, %v828_v18 }
 0x4f0   : > { %v830_v20 = vmul.f32 1.442695, %v829_v19 }
 0x4f2   : > { %1872 = vpow2.f32 %v830_v20 }
 0x4fc   : > { %v1873_v21 = vpop.eup %1872 }
 0x4fd   : > { %v832_v22 = vsel %vm779_vm4, %v1873_v21, 0.0 }
 0x4fe   : > { %833 = vadd.xlane.f32.xlu0 %v832_v22 }
 0x560   : > { %v944_v23 = vpop.xlane.xlu0 %943 }
 0x561   : > { %v945_v24 = vsub.f32 %v937_v63, %v944_v23 }
 0x563   : > { %v946_v25 = vmul.f32 1.442695, %v945_v24 }
 0x565   : > { %1874 = vpow2.f32 %v946_v25  ;;  %v1587_v25 = vld [vmem:[#allocation18] ss:$0 sm:$0xff] }
 0x568   : > { %v1063_v26 = vpop.xlane.xlu1 %1062 }
 0x569   : > { %v1064_v27 = vsub.f32 %v1056_v6, %v1063_v26 }
 0x56b   : > { %v1065_v28 = vmul.f32 1.442695, %v1064_v27 }
 0x56d   : > { %1876 = vpow2.f32 %v1065_v28 }
 0x56f   : > { %v1875_v29 = vpop.eup %1874 }
 0x570   : > { %v948_v30 = vsel %vm779_vm4, %v1875_v29, 0.0  ;;  %v1182_v33 = vpop.xlane.xlu1 %1181 }
 0x571   : > { %949 = vadd.xlane.f32.xlu1 %v948_v30  ;;  %v1183_v35 = vsub.f32 %v1175_v13, %v1182_v33 }
 0x573   : > { %v1184_v36 = vmul.f32 1.442695, %v1183_v35 }
 0x575   : > { %1878 = vpow2.f32 %v1184_v36 }
 0x577   : > { %v1877_v31 = vpop.eup %1876 }
 0x578   : > { %v1067_v32 = vsel %vm779_vm4, %v1877_v31, 0.0 }
 0x579   : > { %1068 = vadd.xlane.f32.xlu0 %v1067_v32 }
 0x57f   : > { %v1879_v37 = vpop.eup %1878 }
 0x580   : > { %v1186_v38 = vsel %vm779_vm4, %v1879_v37, 0.0 }
 0x582   : > { %954 = vrot.lane.b32.xlu1 %v2840_v34, %s2332_s18 }
 0x58b   : > { %v834_v39 = vpop.xlane.xlu0 %833 }
 0x58c   : > { %1880 = vrcp.f32 %v834_v39 }
 0x58f   : > { %839 = vrot.lane.b32.xlu0 %v2840_v34, %s2333_s26 }
 0x593   : > { %1192 = vrot.lane.b32.xlu0 %v2840_v34, %s2334_s12 }
 0x596   : > { %v1881_v41 = vpop.eup %1880 }
 0x597   : > { %v836_v43 = vmul.f32 %v1881_v41, %v1873_v21 }
 0x599   : > { %v837_v47 = vpack.c.bf16 %v836_v43, %v836_v43 }
 0x5a6   : > { %1187 = vadd.xlane.f32.xlu1 %v1186_v38 }
 0x5b7   : > { %1073 = vrot.lane.b32.xlu1 %v2840_v34, %s2335_s30 }
 0x5fe   : > { %v950_v40 = vpop.xlane.xlu1 %949 }
 0x5ff   : > { %1882 = vrcp.f32 %v950_v40 }
 0x602   : > { %v955_v46 = vpop.permute.xlu1 %954 }
 0x603   : > { %v960_v49 = vsel %vm844_vm5, %v955_v46, 0 }
 0x606   : > { %v1069_v42 = vpop.xlane.xlu0 %1068 }
 0x607   : > { %1884 = vrcp.f32 %v1069_v42 }
 0x609   : > { %v1883_v48 = vpop.eup %1882 }
 0x60a   : > { %v840_v44 = vpop.permute.xlu0 %839  ;;  %v952_v34 = vmul.f32 %v1883_v48, %v1875_v29 }
 0x60b   : > { %v846_v45 = vsel %vm844_vm5, %v840_v44, 0 }
 0x60c   : > { %1646 = vmatpush3.bf16.msra.mxu1 %v846_v45  ;;  %v953_v50 = vpack.c.bf16 %v952_v34, %v952_v34 }
 0x60d   : > { %1657 = vmatprep.subr.bf16.mxu1 %v2327_v9 }
 0x60e   : > { %v1193_v56 = vpop.permute.xlu0 %1192 }
 0x60f   : > { %1648 = vmatmul.mubr.msk.bf16.vlgmr.msra.gmra.mrb[4].mxu1 %vm779_vm4, %v837_v47  ;;  %v1198_v58 = vsel %vm844_vm5, %v1193_v56, 0 }
 0x610   : > { %1658 = vmatpush3.bf16.msra.mxu1 %v960_v49  ;;  %1659 = vmatprep.mubr.msk.bf16.mxu1 %vm2328_vm1, %v2327_v9 }
 0x611   : > { %1669 = vmatprep.subr.bf16.mxu1 %v2327_v9  ;;  %v1885_v51 = vpop.eup %1884 }
 0x612   : > { %v1071_v53 = vmul.f32 %v1885_v51, %v1877_v31 }
 0x614   : > { %v1072_v57 = vpack.c.bf16 %v1071_v53, %v1071_v53 }
 0x617   : > { %1660 = vmatmul.mubr.msk.bf16.vlgmr.msra.gmra.mrb[8].mxu1 %vm779_vm4, %v953_v50 }
 0x618   : > { %1671 = vmatprep.mubr.msk.bf16.mxu1 %vm2328_vm1, %v2327_v9 }
 0x633   : > { %v1188_v52 = vpop.xlane.xlu1 %1187 }
 0x634   : > { %1886 = vrcp.f32 %v1188_v52 }
 0x637   : > { %v1074_v54 = vpop.permute.xlu1 %1073 }
 0x638   : > { %v1079_v55 = vsel %vm844_vm5, %v1074_v54, 0 }
 0x639   : > { %1670 = vmatpush3.bf16.msra.mxu1 %v1079_v55 }
 0x63a   : > { %1681 = vmatprep.subr.bf16.mxu1 %v2327_v9 }
 0x63c   : > { %1672 = vmatmul.mubr.msk.bf16.vlgmr.msra.gmra.mrb[12].mxu1 %vm779_vm4, %v1072_v57 }
 0x63d   : > { %1682 = vmatpush3.bf16.msra.mxu1 %v1198_v58  ;;  %1683 = vmatprep.mubr.msk.bf16.mxu1 %vm2328_vm1, %v2327_v9 }
 0x63e   : > { %v1887_v59 = vpop.eup %1886 }
 0x63f   : > { %v1190_v60 = vmul.f32 %v1887_v59, %v1879_v37 }
 0x641   : > { %v1191_v61 = vpack.c.bf16 %v1190_v60, %v1190_v60 }
 0x644   : > { %1684 = vmatmul.mubr.msk.bf16.vlgmr.msra.gmra.mrb[16].mxu1 %vm779_vm4, %v1191_v61 }
 0x6e2   : > { %v882_v62 = vpop.f32.mrb[4].mxu1 }
 0x6e3   : > { %v888_v63 = vpack.c.bf16 %v882_v62, %v882_v62  ;;  %v1649_v0 = vpop.f32.mrb[5].mxu1 }
 0x6e4   : > { %v885_v2 = vpop.f32.mrb[6].mxu1 }
 0x6e5   : > { %890 = vst.msk [vmem:[#allocation2] sm:$0xf] %vm889_vm6, %v888_v63  ;;  %v1650_v3 = vpop.f32.mrb[7].mxu1 }
 0x6ea   : > { %v996_v4 = vpop.f32.mrb[8].mxu1 }
 0x6eb   : > { %v1595_v5 = vpack.c.bf16 %v996_v4, %v996_v4  ;;  %v1661_v6 = vpop.f32.mrb[9].mxu1 }
 0x6ec   : > { %v999_v7 = vpop.f32.mrb[10].mxu1 }
 0x6ed   : > { %1006 = vrot.lane.b32.xlu1 %v1595_v5, %s2336_s20  ;;  %v1662_v8 = vpop.f32.mrb[11].mxu1 }
 0x70f   : > { %v1115_v11 = vpop.f32.mrb[12].mxu1 }
 0x710   : > { %v1596_v13 = vpack.c.bf16 %v1115_v11, %v1115_v11  ;;  %v1673_v14 = vpop.f32.mrb[13].mxu1 }
 0x711   : > { %v1118_v15 = vpop.f32.mrb[14].mxu1 }
 0x712   : > { %1125 = vrot.lane.b32.xlu0 %v1596_v13, %s2337_s14  ;;  %v1674_v16 = vpop.f32.mrb[15].mxu1 }
 0x717   : > { %v1234_v17 = vpop.f32.mrb[16].mxu1 }
 0x718   : > { %v1597_v18 = vpack.c.bf16 %v1234_v17, %v1234_v17  ;;  %v1685_v19 = vpop.f32.mrb[17].mxu1 }
 0x719   : > { %v1237_v20 = vpop.f32.mrb[18].mxu1 }
 0x71a   : > { %1244 = vrot.lane.b32.xlu1 %v1597_v18, %s2338_s25  ;;  %v1686_v21 = vpop.f32.mrb[19].mxu1 }
 0x75f   : > { %v1007_v22 = vpop.permute.xlu1 %1006 }
 0x760   : > { %1010 = vst.msk [vmem:[#allocation2] sm:$0xf] %vm1009_vm7, %v1007_v22 }
 0x784   : > { %v1126_v23 = vpop.permute.xlu0 %1125 }
 0x785   : > { %1129 = vst.msk [vmem:[#allocation2] sm:$0xf] %vm1128_vm8, %v1126_v23 }
 0x78c   : > { %v1245_v9 = vpop.permute.xlu1 %1244 }
 0x78d   : > { %1248 = vst.msk [vmem:[#allocation2] sm:$0xf] %vm1247_vm9, %v1245_v9 }
 0x794   : > { %v1249_v24 = vld [vmem:[#allocation2] sm:$0xf] }
 0x795   : > { %1692 = vmatmul.mubr.msk.bf16.vlgmr.msra.gmra.mrb[20].mxu0 %vm604_vm0, %v1249_v24 }
 0x868   : > { %v1310_v26 = vpop.f32.mrb[20].mxu0 }
 0x869   : > { %v1311_v27 = vadd.f32 %v1587_v25, %v1310_v26  ;;  %v1693_v28 = vpop.f32.mrb[21].mxu0 }
 0x86a   : > { %v1313_v29 = vpop.f32.mrb[22].mxu0 }
 0x86b   : > { %v1316_v30 = vadd.f32 %v1311_v27, %v2816_v1  ;;  %v1694_v31 = vpop.f32.mrb[23].mxu0 }
 0x86d   : > { %v1317_v32 = vpack.c.bf16 %v1316_v30, %v1316_v30 }
 0x86f   : > { %1319 = vst.msk [vmem:[%s598_s17] sm:$0xf] %vm1318_vm10, %v1317_v32 }
 0x870   : > { %2215 = shalt.err (!%p2212_p11)
}
 0x871   : > { %s2216_s21 = scalar_lea.hbm %s2905_s16, 64  ;;  %s2220_s18 = scalar_lea.hbm %s3048_s24, 128 }
 0x872   : > { %p2217_p12 = scmp.ne.s32.totalorder %s2905_s16, %s2216_s21  ;;  %p2221_p0 = scmp.lt.u32.totalorder %s2905_s16, %s3048_s24 }
 0x873   : > { %p2222_p13 = scmp.lt.u32.totalorder %s2220_s18, %s2216_s21  ;;  %p2224_p2 = scmp.lt.u32.totalorder %s2216_s21, %s2905_s16 }
 0x874   : > { %p2218_p6 = pnand %p2217_p12, %p3049_p7 }
 0x875   : > { %p2223_p5 = por %p2222_p13, %p2221_p0 }
 0x876   : > { %p2219_p3 = pneg %p2218_p6 }
 0x877   : > { %p2225_p10 = por %p2224_p2, %p2223_p5 }
 0x879   : > { %p2226_p9 = pnand %p2225_p10, %p2219_p3 }
 0x87b   : > { %2229 = shalt.err (!%p2226_p9)
}
 0x87c   : > { %1733 = dma.vmem_to_hbm [thread:$0]  (%p3049_p7), %s2907_s0, 64, %s2905_s16, %s1321_s3  }
 0x87d PF: > { %s3050_s30 = sld [smem:[#allocation31_spill]]  ;;  %s3051_s20 = sld [smem:[#allocation41_spill]] }
 0x87e   : > { %p3053_p4 = scmp.ge.s32.totalorder %s2312_s22, 2 }
 0x883   : > { %s1347_s14 = sand.u32 1, %s3050_s30   ;;  %p3052_p8 = scmp.ne.s32.totalorder %s3051_s20, 0 }
 0x884   : > { %s1348_s25 = scalar_lea.sflag [#allocation5], %s1347_s14 }
 0x885   : > { %p1771_p1 = pnand %p3053_p4, %p3052_p8 }
 0x887   : > { %2287 = dma.done.wait (!%p1771_p1), %s1348_s25, 64  }
 0x888   : > { %2289 = vsyncadd (!%p1771_p1), %s1348_s25, 4294967232  ;;  %s34_s22 = sadd.s32 1, %s2312_s22   ;;  %s3054_s17 = sld [smem:[#allocation32_spill]] }
 0x889   : > { %p31_p11 = scmp.ge.s32.totalorder %s34_s22, 4   ;;  %s3055_s18 = sld [smem:[#allocation33_spill]] }
 0x88a   : > { %s3056_s19 = sld [smem:[#allocation40_spill]]  ;;  %s3057_s20 = sld [smem:[#allocation35_spill]] }
 0x88b   : > { %s3058_s21 = sld [smem:[#allocation37_spill]]  ;;  %33 = sbr.rel (!%p31_p11) target bundleno = 19 (0x13), region = 165 }
 0x892   :  { %1353 = vsyncpa [#allocation4], 1 }
 0x893   :  { %1355 = vsyncpa [#allocation4 + $0x1], 1 }
 0x894   :  { %1356 = vsyncpa [#allocation7], 1 }
 0x895   :  { %1358 = vsyncpa [#allocation7 + $0x1], 1 }
 0x896   :  { %1359 = vsyncpa [#allocation10], 1 }
 0x897   :  { %1360 = vsyncpa [#allocation13], 1 }
 0x898   :  { %1361 = vsyncpa [#allocation16], 1 }
 0x899   :  { %1362 = vsyncpa [#allocation19], 1 }
 0x89a   :  { %1363 = vsyncpa [#allocation5], 1 }
 0x89b   :  { %1365 = vsyncpa [#allocation5 + $0x1], 1 }

// kernel: decoder_forward.10
= control target key start
LH: loop header
LB: loop body
LE: loop exit
PB: predicated region body
PF: predicated region fallthrough
CT: control target
= control target key end

     0   :  { %s2929_s0 = inlined_call_operand.hbm [shape: bf16[2,8,32], index: 0, kind: input, shape index: {}, may-alias: {0,1}]   ;;  %s2930_s1 = inlined_call_operand.hbm [shape: bf16[2,8,32], index: 1, kind: input, shape index: {}, may-alias: {0,1}]   ;;  %s2931_s2 = inlined_call_operand.hbm [shape: f32[1,32], index: 2, kind: input, shape index: {}]   ;;  %s2932_s3 = inlined_call_operand.hbm [shape: f32[1,32], index: 3, kind: input, shape index: {}]   ;;  %s2933_s4 = inlined_call_operand.hbm [shape: bf16[32,32], index: 4, kind: input, shape index: {}]   ;;  %s2934_s5 = inlined_call_operand.hbm [shape: f32[1,32], index: 5, kind: input, shape index: {}]   ;;  %s2935_s6 = inlined_call_operand.hbm [shape: bf16[32,64], index: 6, kind: input, shape index: {}]   ;;  %s2936_s7 = inlined_call_operand.hbm [shape: f32[1,64], index: 7, kind: input, shape index: {}]   ;;  %s2937_s8 = inlined_call_operand.hbm [shape: bf16[32,32], index: 8, kind: input, shape index: {}]   ;;  %s2938_s9 = inlined_call_operand.hbm [shape: f32[1,32], index: 9, kind: input, shape index: {}]   ;;  %s2939_s10 = inlined_call_operand.hbm [shape: bf16[1,8,8], index: 10, kind: input, shape index: {}]   ;;  %s2940_s11 = inlined_call_operand.hbm [shape: bf16[2,8,32], index: 11, kind: output, shape index: {}]  }
   0x1   :  { %2947 = sst [smem:[#allocation32_spill]] %s2931_s2 }
   0x2   :  { %2948 = sst [smem:[#allocation33_spill]] %s2932_s3 }
   0x3   :  { %2949 = sst [smem:[#allocation34_spill]] %s2933_s4 }
   0x4   :  { %2950 = sst [smem:[#allocation35_spill]] %s2934_s5 }
   0x5   :  { %2951 = sst [smem:[#allocation36_spill]] %s2935_s6 }
   0x6   :  { %2952 = sst [smem:[#allocation37_spill]] %s2936_s7 }
   0x7   :  { %2953 = sst [smem:[#allocation38_spill]] %s2937_s8 }
   0x8   :  { %2954 = sst [smem:[#allocation39_spill]] %s2940_s11 }
   0x9   :  { %16 = vsyncpa [#allocation4], 0 }
   0xa   :  { %18 = vsyncpa [#allocation4 + $0x1], 0 }
   0xb   :  { %19 = vsyncpa [#allocation7], 0 }
   0xc   :  { %21 = vsyncpa [#allocation7 + $0x1], 0 }
   0xd   :  { %22 = vsyncpa [#allocation10], 0 }
   0xe   :  { %23 = vsyncpa [#allocation13], 0 }
   0xf   :  { %24 = vsyncpa [#allocation16], 0 }
  0x10   :  { %25 = vsyncpa [#allocation19], 0 }
  0x11   :  { %26 = vsyncpa [#allocation5], 0 }
  0x12   :  { %28 = vsyncpa [#allocation5 + $0x1], 0  ;;  %s2398_s17 = smov 0   ;;  %s2400_s18 = smov 0  }
  0x13   :  { %s2402_s19 = smov 0   ;;  %s2404_s20 = smov 0  }
  0x14   :  { %s2406_s21 = smov 0   ;;  %s2408_s22 = smov 0  }
  0x15 LB: > { %2955 = sst [smem:[#allocation30_spill]] %s2302_s20  ;;  %s2429_s23 = sadd.s32 4294967295, %s2310_s22   ;;  %s2310_s22 = sphi %s2408_s22, %s34_s22   ;;  %s2306_s21 = sphi %s2406_s21, %s2995_s21   ;;  %s2302_s20 = sphi %s2404_s20, %s2994_s20   ;;  %s2298_s19 = sphi %s2402_s19, %s2993_s19   ;;  %s2294_s18 = sphi %s2400_s18, %s2992_s18   ;;  %s2290_s17 = sphi %s2398_s17, %s2991_s17  }
  0x16   : > { %p1533_p0 = scmp.ge.s32.totalorder %s2310_s22, 1  ;;  %p2942_p1 = scmp.eq.s32.totalorder %s2429_s23, 0 }
  0x17   : > { %p327_p2 = scmp.lt.s32.totalorder %s2310_s22, 3  ;;  %s2312_s25 = smov [#allocation8]  }
  0x18   : > { %s340_s26 = sshll.u32 %s2312_s25, 4  ;;  %s2313_s27 = smov [#allocation9]   ;;  %s341_s26 = int_to_ptr.vmem [resolvable:$true] %s340_s26 }
  0x19   : > { %p2434_p3 = pnand %p1533_p0, %p327_p2  ;;  %s351_s28 = sshll.u32 %s2313_s27, 4  ;;  %s2447_s28 = int_to_ptr.vmem [resolvable:$true] %s351_s28 }
  0x1a   : > { %s2314_s30 = smov [#allocation12]   ;;  %s2959_s2 = sld [smem:[#allocation32_spill]] }
  0x1b   : > { %s2956_s24 = scalar_select %p2434_p3, 1, 0 }
  0x1c   : > { %p1732_p5 = pneg %p2434_p3  ;;  %s375_s12 = sshll.u32 %s2314_s30, 4  ;;  %s2449_s12 = int_to_ptr.vmem [resolvable:$true] %s375_s12 }
  0x1d   : > { %2957 = sst [smem:[#allocation31_spill]] %s2956_s24 }
  0x1e   : > { %p2443_p6 = pnand %p1732_p5, %p2942_p1 }
  0x20   : > { %s1892_s15 = scalar_lea.hbm %s2959_s2, 16  ;;  %p2459_p8 = pneg %p2443_p6 }
  0x21   : > { %p1893_p7 = scmp.ne.s32.totalorder %s2959_s2, %s1892_s15  ;;  %p1899_p11 = scmp.lt.u32.totalorder %s1892_s15, %s2959_s2 }
  0x23   : > { %p1895_p9 = pnand %p2459_p8, %p1893_p7 }
  0x25   : > { %p1896_p10 = pneg %p1895_p9 }
  0x27   : > { %p1901_p12 = pnand %p1899_p11, %p1896_p10 }
  0x29   : > { %1904 = shalt.err (!%p1901_p12)
}
  0x2a   : > { %s1905_s13 = scalar_lea.vmem %s341_s26, 16  ;;  %s1912_s14 = scalar_lea.vmem %s341_s26, 32 }
  0x2b   : > { %p1906_p13 = scmp.ne.s32.totalorder %s341_s26, %s1905_s13  ;;  %p1913_p5 = scmp.lt.s32.totalorder %s341_s26, %s341_s26 }
  0x2c   : > { %p1914_p4 = scmp.lt.s32.totalorder %s1912_s14, %s1905_s13 }
  0x2d   : > { %p1908_p0 = pnand %p1906_p13, %p2459_p8 }
  0x2e   : > { %p1915_p1 = por %p1914_p4, %p1913_p5 }
  0x2f   : > { %p1909_p2 = pneg %p1908_p0 }
  0x31   : > { %p1916_p3 = pnand %p1915_p1, %p1909_p2 }
  0x33   : > { %1919 = shalt.err (!%p1916_p3)
}
  0x34   : > { %1735 = dma.hbm_to_vmem [thread:$0]  (!%p2443_p6), %s2959_s2, 16, %s341_s26, [#allocation7]  }
  0x35   : > { %s2961_s3 = sld [smem:[#allocation33_spill]] }
  0x3b   : > { %s1920_s30 = scalar_lea.hbm %s2961_s3, 16 }
  0x3c   : > { %p1921_p7 = scmp.ne.s32.totalorder %s2961_s3, %s1920_s30  ;;  %p1927_p1 = scmp.lt.u32.totalorder %s1920_s30, %s2961_s3 }
  0x3e   : > { %p1923_p9 = pnand %p1921_p7, %p2459_p8 }
  0x40   : > { %p1924_p4 = pneg %p1923_p9 }
  0x42   : > { %p1929_p3 = pnand %p1927_p1, %p1924_p4 }
  0x44   : > { %1932 = shalt.err (!%p1929_p3)
}
  0x45   : > { %s1933_s26 = scalar_lea.vmem %s2447_s28, 16  ;;  %s1940_s20 = scalar_lea.vmem %s2447_s28, 32 }
  0x46   : > { %p1934_p10 = scmp.ne.s32.totalorder %s2447_s28, %s1933_s26  ;;  %p1941_p13 = scmp.lt.s32.totalorder %s2447_s28, %s2447_s28 }
  0x47   : > { %p1942_p0 = scmp.lt.s32.totalorder %s1940_s20, %s1933_s26 }
  0x48   : > { %p1936_p11 = pnand %p1934_p10, %p2459_p8 }
  0x49   : > { %p1943_p2 = por %p1942_p0, %p1941_p13 }
  0x4a   : > { %p1937_p12 = pneg %p1936_p11 }
  0x4c   : > { %p1944_p5 = pnand %p1943_p2, %p1937_p12 }
  0x4e   : > { %1947 = shalt.err (!%p1944_p5)
}
  0x4f   : > { %1738 = dma.hbm_to_vmem [thread:$0]  (!%p2443_p6), %s2961_s3, 16, %s2447_s28, [#allocation10]  }
  0x50   : > { %s2962_s5 = sld [smem:[#allocation35_spill]] }
  0x56   : > { %s1948_s15 = scalar_lea.hbm %s2962_s5, 16 }
  0x57   : > { %p1949_p7 = scmp.ne.s32.totalorder %s2962_s5, %s1948_s15  ;;  %p1955_p1 = scmp.lt.u32.totalorder %s1948_s15, %s2962_s5 }
  0x59   : > { %p1951_p9 = pnand %p1949_p7, %p2459_p8 }
  0x5b   : > { %p1952_p4 = pneg %p1951_p9 }
  0x5d   : > { %p1957_p3 = pnand %p1955_p1, %p1952_p4 }
  0x5f   : > { %1960 = shalt.err (!%p1957_p3)
}
  0x60   : > { %s1961_s28 = scalar_lea.vmem %s2449_s12, 16  ;;  %s1968_s20 = scalar_lea.vmem %s2449_s12, 32 }
  0x61   : > { %p1962_p10 = scmp.ne.s32.totalorder %s2449_s12, %s1961_s28  ;;  %p1969_p13 = scmp.lt.s32.totalorder %s2449_s12, %s2449_s12 }
  0x62   : > { %p1970_p0 = scmp.lt.s32.totalorder %s1968_s20, %s1961_s28 }
  0x63   : > { %p1964_p11 = pnand %p1962_p10, %p2459_p8 }
  0x64   : > { %p1971_p2 = por %p1970_p0, %p1969_p13 }
  0x65   : > { %p1965_p12 = pneg %p1964_p11 }
  0x67   : > { %p1972_p5 = pnand %p1971_p2, %p1965_p12 }
  0x69   : > { %1975 = shalt.err (!%p1972_p5)
}
  0x6a   : > { %1744 = dma.hbm_to_vmem [thread:$0]  (!%p2443_p6), %s2962_s5, 16, %s2449_s12, [#allocation13]  }
  0x6b   : > { %s2315_s25 = smov [#allocation15]   ;;  %s2316_s15 = smov [#allocation18]  }
  0x6c   : > { %s399_s11 = sshll.u32 %s2315_s25, 4  ;;  %s423_s30 = sshll.u32 %s2316_s15, 4  ;;  %s400_s11 = int_to_ptr.vmem [resolvable:$true] %s399_s11  ;;  %s424_s30 = int_to_ptr.vmem [resolvable:$true] %s423_s30 }
  0x6d   : > { %s2963_s7 = sld [smem:[#allocation37_spill]] }
  0x73   : > { %s1976_s26 = scalar_lea.hbm %s2963_s7, 16 }
  0x74   : > { %p1977_p7 = scmp.ne.s32.totalorder %s2963_s7, %s1976_s26  ;;  %p1983_p1 = scmp.lt.u32.totalorder %s1976_s26, %s2963_s7 }
  0x76   : > { %p1979_p9 = pnand %p1977_p7, %p2459_p8 }
  0x78   : > { %p1980_p4 = pneg %p1979_p9 }
  0x7a   : > { %p1985_p3 = pnand %p1983_p1, %p1980_p4 }
  0x7c   : > { %1988 = shalt.err (!%p1985_p3)
}
  0x7d   : > { %s1989_s12 = scalar_lea.vmem %s400_s11, 16  ;;  %s1996_s16 = scalar_lea.vmem %s400_s11, 32 }
  0x7e   : > { %p1990_p10 = scmp.ne.s32.totalorder %s400_s11, %s1989_s12  ;;  %p1997_p13 = scmp.lt.s32.totalorder %s400_s11, %s400_s11 }
  0x7f   : > { %p1998_p0 = scmp.lt.s32.totalorder %s1996_s16, %s1989_s12 }
  0x80   : > { %p1992_p11 = pnand %p1990_p10, %p2459_p8 }
  0x81   : > { %p1999_p2 = por %p1998_p0, %p1997_p13 }
  0x82   : > { %p1993_p12 = pneg %p1992_p11 }
  0x84   : > { %p2000_p5 = pnand %p1999_p2, %p1993_p12 }
  0x86   : > { %2003 = shalt.err (!%p2000_p5)
}
  0x87   : > { %1750 = dma.hbm_to_vmem [thread:$0]  (!%p2443_p6), %s2963_s7, 16, %s400_s11, [#allocation16]  }
  0x88   : > { %s2004_s14 = scalar_lea.hbm %s2938_s9, 16 }
  0x89   : > { %p2005_p7 = scmp.ne.s32.totalorder %s2938_s9, %s2004_s14  ;;  %p2011_p1 = scmp.lt.u32.totalorder %s2004_s14, %s2938_s9 }
  0x8b   : > { %p2007_p9 = pnand %p2005_p7, %p2459_p8 }
  0x8d   : > { %p2008_p4 = pneg %p2007_p9 }
  0x8f   : > { %p2013_p3 = pnand %p2011_p1, %p2008_p4 }
  0x91   : > { %2016 = shalt.err (!%p2013_p3)
}
  0x92   : > { %s2017_s12 = scalar_lea.vmem %s424_s30, 16  ;;  %s2024_s11 = scalar_lea.vmem %s424_s30, 32 }
  0x93   : > { %p2018_p10 = scmp.ne.s32.totalorder %s424_s30, %s2017_s12  ;;  %p2025_p13 = scmp.lt.s32.totalorder %s424_s30, %s424_s30 }
  0x94   : > { %p2026_p0 = scmp.lt.s32.totalorder %s2024_s11, %s2017_s12 }
  0x95   : > { %p2020_p11 = pnand %p2018_p10, %p2459_p8 }
  0x96   : > { %p2027_p2 = por %p2026_p0, %p2025_p13 }
  0x97   : > { %p2021_p12 = pneg %p2020_p11 }
  0x99   : > { %p2028_p5 = pnand %p2027_p2, %p2021_p12 }
  0x9b   : > { %2031 = shalt.err (!%p2028_p5)
}
  0x9c   : > { %1756 = dma.hbm_to_vmem [thread:$0]  (!%p2443_p6), %s2938_s9, 16, %s424_s30, [#allocation19]  }
  0x9d   : > { %s2317_s15 = smov [#allocation11]   ;;  %s2964_s4 = sld [smem:[#allocation34_spill]] }
  0x9e   : > { %s361_s2 = sshll.u32 %s2317_s15, 4  ;;  %s362_s2 = int_to_ptr.vmem [resolvable:$true] %s361_s2 }
  0xa3   : > { %s2032_s26 = scalar_lea.hbm %s2964_s4, 256 }
  0xa4   : > { %p2033_p7 = scmp.ne.s32.totalorder %s2964_s4, %s2032_s26  ;;  %p2039_p1 = scmp.lt.u32.totalorder %s2032_s26, %s2964_s4 }
  0xa6   : > { %p2035_p9 = pnand %p2033_p7, %p2459_p8 }
  0xa8   : > { %p2036_p4 = pneg %p2035_p9 }
  0xaa   : > { %p2041_p3 = pnand %p2039_p1, %p2036_p4 }
  0xac   : > { %2044 = shalt.err (!%p2041_p3)
}
  0xad   : > { %s2045_s30 = scalar_lea.vmem %s362_s2, 256  ;;  %p2053_p13 = scmp.lt.s32.totalorder %s362_s2, %s362_s2 }
  0xae   : > { %p2046_p10 = scmp.ne.s32.totalorder %s362_s2, %s2045_s30  ;;  %p2054_p0 = scmp.lt.s32.totalorder %s2045_s30, %s2045_s30 }
  0xb0   : > { %p2048_p11 = pnand %p2046_p10, %p2459_p8  ;;  %p2055_p2 = por %p2054_p0, %p2053_p13 }
  0xb2   : > { %p2049_p12 = pneg %p2048_p11 }
  0xb4   : > { %p2056_p5 = pnand %p2055_p2, %p2049_p12 }
  0xb6   : > { %2059 = shalt.err (!%p2056_p5)
}
  0xb7   : > { %s2318_s11 = smov 64   ;;  %s2319_s16 = smov 4  }
  0xb8   : > { %1741 = dma.hbm_to_vmem [thread:$0]  (!%p2443_p6), %s2964_s4, 256, %s362_s2, [#allocation10], %s2318_s11, %s2318_s11, %s2319_s16  }
  0xb9   : > { %s2320_s13 = smov [#allocation14]   ;;  %s2321_s26 = smov [#allocation17]  }
  0xba   : > { %s385_s14 = sshll.u32 %s2320_s13, 4  ;;  %s409_s28 = sshll.u32 %s2321_s26, 4  ;;  %s386_s14 = int_to_ptr.vmem [resolvable:$true] %s385_s14  ;;  %s2580_s28 = int_to_ptr.vmem [resolvable:$true] %s409_s28 }
  0xbb   : > { %s2965_s6 = sld [smem:[#allocation36_spill]] }
  0xc1   : > { %s2060_s12 = scalar_lea.hbm %s2965_s6, 256 }
  0xc2   : > { %p2061_p7 = scmp.ne.s32.totalorder %s2965_s6, %s2060_s12  ;;  %p2067_p1 = scmp.lt.u32.totalorder %s2060_s12, %s2965_s6 }
  0xc4   : > { %p2063_p9 = pnand %p2061_p7, %p2459_p8 }
  0xc6   : > { %p2064_p4 = pneg %p2063_p9 }
  0xc8   : > { %p2069_p3 = pnand %p2067_p1, %p2064_p4 }
  0xca   : > { %2072 = shalt.err (!%p2069_p3)
}
  0xcb   : > { %s2073_s15 = scalar_lea.vmem %s386_s14, 256  ;;  %p2081_p13 = scmp.lt.s32.totalorder %s386_s14, %s386_s14 }
  0xcc   : > { %p2074_p10 = scmp.ne.s32.totalorder %s386_s14, %s2073_s15  ;;  %p2082_p0 = scmp.lt.s32.totalorder %s2073_s15, %s2073_s15 }
  0xce   : > { %p2076_p11 = pnand %p2074_p10, %p2459_p8  ;;  %p2083_p2 = por %p2082_p0, %p2081_p13 }
  0xd0   : > { %p2077_p12 = pneg %p2076_p11 }
  0xd2   : > { %p2084_p5 = pnand %p2083_p2, %p2077_p12 }
  0xd4   : > { %2087 = shalt.err (!%p2084_p5)
}
  0xd5   : > { %1747 = dma.hbm_to_vmem [thread:$0]  (!%p2443_p6), %s2965_s6, 256, %s386_s14, [#allocation13], %s2318_s11, %s2318_s11, %s2319_s16  }
  0xd6   : > { %s2966_s8 = sld [smem:[#allocation38_spill]] }
  0xdc   : > { %s2088_s24 = scalar_lea.hbm %s2966_s8, 256 }
  0xdd   : > { %p2089_p7 = scmp.ne.s32.totalorder %s2966_s8, %s2088_s24  ;;  %p2095_p1 = scmp.lt.u32.totalorder %s2088_s24, %s2966_s8 }
  0xdf   : > { %p2091_p9 = pnand %p2089_p7, %p2459_p8 }
  0xe1   : > { %p2092_p4 = pneg %p2091_p9 }
  0xe3   : > { %p2097_p3 = pnand %p2095_p1, %p2092_p4 }
  0xe5   : > { %2100 = shalt.err (!%p2097_p3)
}
  0xe6   : > { %s2101_s14 = scalar_lea.vmem %s2580_s28, 256  ;;  %p2109_p13 = scmp.lt.s32.totalorder %s2580_s28, %s2580_s28 }
  0xe7   : > { %p2102_p10 = scmp.ne.s32.totalorder %s2580_s28, %s2101_s14  ;;  %p2110_p0 = scmp.lt.s32.totalorder %s2101_s14, %s2101_s14 }
  0xe9   : > { %p2104_p11 = pnand %p2102_p10, %p2459_p8  ;;  %p2111_p2 = por %p2110_p0, %p2109_p13 }
  0xeb   : > { %p2105_p12 = pneg %p2104_p11 }
  0xed   : > { %p2112_p5 = pnand %p2111_p2, %p2105_p12 }
  0xef   : > { %2115 = shalt.err (!%p2112_p5)
}
  0xf0   : > { %1753 = dma.hbm_to_vmem [thread:$0]  (!%p2443_p6), %s2966_s8, 256, %s2580_s28, [#allocation16], %s2318_s11, %s2318_s11, %s2319_s16  }
  0xf1   : > { %s2322_s13 = smov [#allocation20]   ;;  %s2116_s12 = scalar_lea.hbm %s2939_s10, 64 }
  0xf2   : > { %s436_s26 = sshll.u32 %s2322_s13, 4  ;;  %p2117_p7 = scmp.ne.s32.totalorder %s2939_s10, %s2116_s12  ;;  %s437_s26 = int_to_ptr.vmem [resolvable:$true] %s436_s26 }
  0xf3   : > { %p2123_p1 = scmp.lt.u32.totalorder %s2116_s12, %s2939_s10 }
  0xf4   : > { %p2119_p9 = pnand %p2117_p7, %p2459_p8 }
  0xf6   : > { %p2120_p4 = pneg %p2119_p9 }
  0xf8   : > { %p2125_p3 = pnand %p2123_p1, %p2120_p4 }
  0xfa   : > { %2128 = shalt.err (!%p2125_p3)
}
  0xfb   : > { %s2129_s11 = scalar_lea.vmem %s437_s26, 64  ;;  %p2137_p13 = scmp.lt.s32.totalorder %s437_s26, %s437_s26 }
  0xfc   : > { %p2130_p10 = scmp.ne.s32.totalorder %s437_s26, %s2129_s11  ;;  %p2138_p0 = scmp.lt.s32.totalorder %s2129_s11, %s2129_s11 }
  0xfe   : > { %p2132_p11 = pnand %p2130_p10, %p2459_p8  ;;  %p2139_p2 = por %p2138_p0, %p2137_p13 }
 0x100   : > { %p2133_p12 = pneg %p2132_p11 }
 0x102   : > { %p2140_p5 = pnand %p2139_p2, %p2133_p12 }
 0x104   : > { %2143 = shalt.err (!%p2140_p5)
}
 0x105   : > { %1759 = dma.hbm_to_vmem [thread:$0]  (!%p2443_p6), %s2939_s10, 64, %s437_s26, [#allocation19]  }
 0x106   : > { %s1532_s27 = sadd.s32 4294967294, %s2310_s22   ;;  %s46_s15 = sadd.s32 1, %s2306_s21 }
 0x107   : > { %s55_s29 = sadd.s32 1, %s2298_s19  ;;  %p48_p8 = scmp.ge.s32.totalorder %s46_s15, 2 }
 0x108   : > { %p62_p7 = scmp.ne.s32.totalorder %s2298_s19, %s2294_s18  ;;  %p63_p9 = scmp.eq.s32.totalorder %s2310_s22, 0 }
 0x109   : > { %p68_p4 = scmp.ne.s32.totalorder %s2294_s18, %s2290_s17  ;;  %s2997_s15 = smov (%p48_p8, %s46_s15), 0 }
 0x10a   : > { %p2657_p1 = por %p63_p9, %p62_p7  ;;  %p2968_p3 = scmp.eq.s32.totalorder %s2429_s23, 0 }
 0x10b   : > { %s50_s26 = ssub.s32 %s2306_s21, %s2997_s15  ;;  %p314_p10 = scmp.eq.s32.totalorder %s2429_s23, 1 }
 0x10c   : > { %p2663_p6 = por %p2968_p3, %p68_p4  ;;  %p53_p11 = scmp.eq.s32.totalorder %s50_s26, 0 }
 0x10d   : > { %p320_p12 = scmp.eq.s32.totalorder %s1532_s27, 1  ;;  %p2670_p13 = por %p314_p10, %p62_p7 }
 0x10e   : > { %s2969_s13 = scalar_select %p2663_p6, 1, 0 }
 0x10f   : > { %s2970_s20 = scalar_select %p2670_p13, 1, 0 }
 0x110   : > { %p1780_p0 = scmp.lt.s32.totalorder %s2310_s22, 2  ;;  %p2678_p2 = por %p320_p12, %p68_p4 }
 0x111   : > { %s2676_s24 = scalar_select %p53_p11, %s2298_s19, %s55_s29  }
 0x112   : > { %s2971_s12 = scalar_select %p2678_p2, 1, 0 }
 0x113   : > { %s447_s30 = sand.u32 1, %s2298_s19   ;;  %s1545_s2 = sshll.u32 %s2306_s21, 6 }
 0x114   : > { %s2683_s25 = sshll.u32 %s447_s30, 2  ;;  %s2689_s16 = scalar_lea.hbm %s2929_s0, %s1545_s2 }
 0x115   : > { %s451_s28 = scalar_lea.vmem [#allocation3], %s2683_s25  ;;  %p2696_p5 = pnand %p1780_p0, %p2657_p1 }
 0x116   : > { %s459_s27 = sshll.u32 %s451_s28, 4  ;;  %s2703_s14 = scalar_lea.hbm %s2930_s1, %s1545_s2  ;;  %s2692_s27 = int_to_ptr.vmem [resolvable:$true] %s459_s27 }
 0x117   : > { %s466_s11 = sand.u32 1, %s2310_s22   ;;  %s448_s5 = scalar_lea.sflag [#allocation4], %s447_s30 }
 0x118   : > { %s2144_s6 = scalar_lea.hbm %s2689_s16, 64  ;;  %p2146_p7 = pneg %p2696_p5 }
 0x119   : > { %p2145_p8 = scmp.ne.s32.totalorder %s2689_s16, %s2144_s6  ;;  %s2149_s7 = scalar_lea.hbm %s2929_s0, 128 }
 0x11a   : > { %p2150_p1 = scmp.lt.u32.totalorder %s2689_s16, %s2929_s0  ;;  %p2151_p3 = scmp.lt.u32.totalorder %s2149_s7, %s2144_s6 }
 0x11b   : > { %p2147_p9 = pnand %p2146_p7, %p2145_p8  ;;  %p2153_p11 = scmp.lt.u32.totalorder %s2144_s6, %s2689_s16 }
 0x11c   : > { %p2152_p10 = por %p2151_p3, %p2150_p1 }
 0x11d   : > { %p2148_p4 = pneg %p2147_p9 }
 0x11e   : > { %p2154_p12 = por %p2153_p11, %p2152_p10 }
 0x120   : > { %p2155_p0 = pnand %p2154_p12, %p2148_p4 }
 0x122   : > { %2158 = shalt.err (!%p2155_p0)
}
 0x123   : > { %s2159_s30 = scalar_lea.vmem %s2692_s27, 64  ;;  %s2323_s2 = smov [#allocation3]  }
 0x124   : > { %p2160_p8 = scmp.ne.s32.totalorder %s2692_s27, %s2159_s30  ;;  %s2164_s26 = sshll.u32 %s2323_s2, 4  ;;  %s2165_s26 = int_to_ptr.vmem [resolvable:$false] %s2164_s26 }
 0x125   : > { %s2166_s8 = scalar_lea.vmem %s2165_s26, 128  ;;  %p2167_p13 = scmp.lt.s32.totalorder %s2692_s27, %s2165_s26 }
 0x126   : > { %p2162_p9 = pnand %p2160_p8, %p2146_p7  ;;  %p2168_p1 = scmp.lt.s32.totalorder %s2166_s8, %s2159_s30 }
 0x128   : > { %p2163_p2 = pneg %p2162_p9  ;;  %p2169_p3 = por %p2168_p1, %p2167_p13 }
 0x12a   : > { %p2170_p10 = pnand %p2169_p3, %p2163_p2 }
 0x12c   : > { %2173 = shalt.err (!%p2170_p10)
}
 0x12d   : > { %1763 = dma.hbm_to_vmem [thread:$0]  (!%p2696_p5), %s2689_s16, 64, %s2692_s27, %s448_s5  }
 0x12e   : > { %s470_s6 = scalar_lea.vmem [#allocation6], %s2683_s25  ;;  %s467_s3 = scalar_lea.sflag [#allocation7], %s466_s11 }
 0x12f   : > { %s477_s7 = sshll.u32 %s470_s6, 4  ;;  %s2174_s28 = scalar_lea.hbm %s2703_s14, 64  ;;  %s478_s7 = int_to_ptr.vmem [resolvable:$true] %s477_s7 }
 0x130   : > { %p2175_p13 = scmp.ne.s32.totalorder %s2703_s14, %s2174_s28  ;;  %s2179_s2 = scalar_lea.hbm %s2930_s1, 128 }
 0x131   : > { %p2180_p11 = scmp.lt.u32.totalorder %s2703_s14, %s2930_s1  ;;  %p2181_p12 = scmp.lt.u32.totalorder %s2179_s2, %s2174_s28 }
 0x132   : > { %p2177_p2 = pnand %p2175_p13, %p2146_p7  ;;  %p2183_p8 = scmp.lt.u32.totalorder %s2174_s28, %s2703_s14 }
 0x133   : > { %p2182_p0 = por %p2181_p12, %p2180_p11 }
 0x134   : > { %p2178_p4 = pneg %p2177_p2 }
 0x135   : > { %p2184_p9 = por %p2183_p8, %p2182_p0 }
 0x137   : > { %p2185_p1 = pnand %p2184_p9, %p2178_p4 }
 0x139   : > { %2188 = shalt.err (!%p2185_p1)
}
 0x13a   : > { %s2189_s5 = scalar_lea.vmem %s478_s7, 64  ;;  %s2324_s25 = smov [#allocation6]  }
 0x13b   : > { %p2190_p3 = scmp.ne.s32.totalorder %s478_s7, %s2189_s5  ;;  %s2194_s16 = sshll.u32 %s2324_s25, 4  ;;  %s2195_s16 = int_to_ptr.vmem [resolvable:$false] %s2194_s16 }
 0x13c   : > { %s2196_s27 = scalar_lea.vmem %s2195_s16, 128  ;;  %p2197_p2 = scmp.lt.s32.totalorder %s478_s7, %s2195_s16 }
 0x13d   : > { %p2192_p10 = pnand %p2190_p3, %p2146_p7  ;;  %p2198_p6 = scmp.lt.s32.totalorder %s2196_s27, %s2189_s5 }
 0x13f   : > { %p2193_p13 = pneg %p2192_p10  ;;  %p2199_p11 = por %p2198_p6, %p2197_p2 }
 0x141   : > { %p2200_p12 = pnand %p2199_p11, %p2193_p13 }
 0x143   : > { %2203 = shalt.err (!%p2200_p12)
}
 0x144   : > { %1766 = dma.hbm_to_vmem [thread:$0]  (!%p2696_p5), %s2703_s14, 64, %s478_s7, %s467_s3  }
 0x145   : > { %s2973_s11 = sld [smem:[#allocation31_spill]] }
 0x14b   : > { %p2974_p4 = scmp.ne.s32.totalorder %s2973_s11, 0 }
 0x14c   : > { %s2756_s6 = sand.u32 (!%p2974_p4), 1, %s2294_s18   ;;  %p2975_p6 = scmp.ne.s32.totalorder (!%p2974_p4), %s2969_s13, 0 }
 0x14d   : > { %486 = sbr.rel (%p2974_p4) target bundleno = 2185 (0x889), region = 64  ;;  %s2759_s28 = sshll.u32 (!%p2974_p4), %s2756_s6, 2 }
 0x14e   : > { %s489_s4 = scalar_lea.sflag (!%p2974_p4), [#allocation4], %s2756_s6  ;;  %s492_s30 = scalar_lea.vmem (!%p2974_p4), [#allocation3], %s2759_s28 }
 0x154   : > { %2257 = dma.done.wait (%p2975_p6), %s489_s4, 64  }
 0x155   : > { %2259 = vsyncadd (%p2975_p6), %s489_s4, 4294967232  ;;  %s497_s29 = sand.u32 1, %s2429_s23   ;;  %s501_s7 = scalar_lea.vmem [#allocation6], %s2759_s28 }
 0x156   : > { %s498_s14 = scalar_lea.sflag [#allocation7], %s497_s29 }
 0x157   : > { %2261 = dma.done.wait (%p2975_p6), %s498_s14, 64  }
 0x158   : > { %2263 = vsyncadd (%p2975_p6), %s498_s14, 4294967232  ;;  %p2976_p5 = scmp.eq.s32.totalorder %s2429_s23, 0 }
 0x15a   : > { %2265 = dma.done.wait (%p2976_p5), [#allocation7], 16   ;;  %p2977_p7 = pmov %p2976_p5 }
 0x15b   : > { %p2978_p0 = pmov %p2976_p5 }
 0x15c   : > { %2267 = vsyncadd (%p2977_p7), [#allocation7], 4294967280 }
 0x15d   : > { %2269 = dma.done.wait (%p2978_p0), [#allocation10], 272   ;;  %p2979_p8 = pmov %p2978_p0 }
 0x15e   : > { %p2980_p9 = pmov %p2978_p0 }
 0x15f   : > { %2271 = vsyncadd (%p2979_p8), [#allocation10], 4294967024 }
 0x160   : > { %2273 = dma.done.wait (%p2980_p9), [#allocation13], 272   ;;  %p2981_p1 = pmov %p2978_p0 }
 0x161   : > { %p2982_p3 = pmov %p2978_p0 }
 0x162   : > { %2275 = vsyncadd (%p2981_p1), [#allocation13], 4294967024 }
 0x163   : > { %2277 = dma.done.wait (%p2982_p3), [#allocation16], 272   ;;  %p2983_p10 = pmov %p2978_p0 }
 0x164   : > { %p2984_p13 = pmov %p2978_p0 }
 0x165   : > { %2279 = vsyncadd (%p2983_p10), [#allocation16], 4294967024 }
 0x166   : > { %2281 = dma.done.wait (%p2984_p13), [#allocation19], 80   ;;  %p2985_p2 = pmov %p2978_p0 }
 0x167   : > { %vm586_vm0 = vcmask 261120   ;;  %v622_v0 = vld [vmem:[%s501_s7] sm:$0xf]  ;;  %v582_v1 = vld [vmem:[%s492_s30] sm:$0xf]  ;;  %v1863_v17 = vld [vmem:[#allocation11] sm:$0xff]  }
 0x168   : > { %2283 = vsyncadd (%p2985_p2), [#allocation19], 4294967216  ;;  %v623_v2 = vunpack.c.l.bf16 %v622_v0  ;;  %v2793_v3 = vunpack.c.l.bf16 %v582_v1  ;;  %v1862_v16 = vld [vmem:[#allocation14] sm:$0xff]   ;;  %v2325_v18 = vmov 0.0   ;;  %v1864_v19 = vld [vmem:[#allocation14 + $0x8] sm:$0xff]   ;;  %vm2326_vm1 = vmmov 0  }
 0x169   : > { %1626 = vmatprep.subr.bf16.mxu1 %v2325_v18  ;;  %1618 = vmatprep.subr.bf16.mxu0 %v2325_v18  ;;  %v1865_v20 = vld [vmem:[#allocation11 + $0x8] sm:$0xff]   ;;  %v1561_v37 = vld [vmem:[#allocation8] ss:$0 sm:$0xff]  ;;  %v1562_v40 = vld [vmem:[#allocation9] ss:$0 sm:$0xff]  ;;  %vm785_vm6 = vcmask 64512  }
 0x16a   : > { %v624_v4 = vsel %vm586_vm0, %v623_v2, 0.0  ;;  %v587_v5 = vsel %vm586_vm0, %v2793_v3, 0.0  ;;  %1627 = vmatpush3.bf16.msra.mxu1 %v1862_v16  ;;  %1619 = vmatpush3.bf16.msra.mxu0 %v1863_v17  ;;  %v1567_v49 = vld [vmem:[#allocation15] ss:$0 sm:$0xff]  ;;  %v1563_v54 = vld [vmem:[#allocation12] ss:$0 sm:$0xff] }
 0x16b   : > { %625 = vadd.xlane.f32.xlu0 %v624_v4  ;;  %1628 = vmatprep.subr.bf16.mxu1 %v2325_v18  ;;  %s2327_s23 = smov 120   ;;  %s2328_s13 = smov 104   ;;  %vm850_vm7 = vcmask 1043456   ;;  %vm895_vm8 = vcmask 60416   ;;  %vm1015_vm9 = vcmask 126016   ;;  %vm1134_vm10 = vcmask 191616  }
 0x16c   : > { %1630 = vmatprep.mubr.msk.bf16.mxu1 %vm2326_vm1, %v2325_v18  ;;  %1620 = vmatprep.subr.bf16.mxu0 %v2325_v18  ;;  %s2329_s3 = smov 112   ;;  %s2330_s2 = smov 88   ;;  %vm1253_vm11 = vcmask 257216   ;;  %vm1324_vm12 = vcmask 257024  }
 0x16d   : > { %1622 = vmatprep.mubr.msk.bf16.mxu0 %vm2326_vm1, %v2325_v18  ;;  %s2331_s26 = smov 80   ;;  %s2332_s8 = smov 96  }
 0x16e   : > { %1629 = vmatpush3.bf16.msra.mxu1 %v1864_v19  ;;  %1621 = vmatpush3.bf16.msra.mxu0 %v1865_v20  ;;  %s2333_s5 = smov 72   ;;  %s2334_s25 = smov 8  }
 0x16f   : > { %588 = vadd.xlane.f32.xlu0 %v587_v5  ;;  %1640 = vmatprep.subr.bf16.mxu1 %v2325_v18  ;;  %s2335_s16 = smov 16   ;;  %s2336_s27 = smov 24  }
 0x170   : > { %1634 = vmatprep.subr.bf16.mxu0 %v2325_v18  ;;  %s2986_s11 = sld [smem:[#allocation30_spill]]  ;;  %s580_s30 = scalar_lea.vmem [#allocation21], %s2759_s28 }
 0x171   : > { %s1341_s29 = sshll.u32 %s580_s30, 4  ;;  %p2988_p12 = scmp.ne.s32.totalorder %s2970_s20, 0  ;;  %s2882_s29 = int_to_ptr.vmem [resolvable:$true] %s1341_s29 }
 0x172   : > { %s2337_s28 = smov [#allocation21]  }
 0x176   : > { %s1587_s4 = sshll.u32 %s2986_s11, 6 }
 0x1f8   : > { %v626_v6 = vpop.xlane.xlu0 %625 }
 0x1f9   : > { %v627_v7 = vmul.f32 0.03125, %v626_v6 }
 0x1fb   : > { %v628_v8 = vsub.f32 %v623_v2, %v627_v7 }
 0x1fc   : > { %v589_v9 = vpop.xlane.xlu0 %588 }
 0x1fd   : > { %v591_v10 = vmul.f32 0.03125, %v589_v9  ;;  %v629_v11 = vmul.f32 %v628_v8, %v628_v8  ;;  %v643_v38 = vmul.f32 %v1561_v37, %v628_v8 }
 0x1ff   : > { %v592_v12 = vsub.f32 %v2793_v3, %v591_v10  ;;  %v630_v13 = vsel %vm586_vm0, %v629_v11, 0.0  ;;  %v781_v11 = vld [vmem:[#allocation20] sm:$0xf] }
 0x200   : > { %631 = vadd.xlane.f32.xlu1 %v630_v13 }
 0x201   : > { %v593_v14 = vmul.f32 %v592_v12, %v592_v12  ;;  %v613_v42 = vmul.f32 %v1561_v37, %v592_v12  ;;  %v782_v12 = vunpack.c.l.bf16 %v781_v11 }
 0x203   : > { %v594_v15 = vsel %vm586_vm0, %v593_v14, 0.0 }
 0x204   : > { %595 = vadd.xlane.f32.xlu1 %v594_v15 }
 0x28d   : > { %v632_v21 = vpop.xlane.xlu1 %631 }
 0x28e   : > { %v633_v22 = vmul.f32 0.032258064, %v632_v21 }
 0x290   : > { %1868 = vrsqrt.f32 %v633_v22  ;;  %vm636_vm2 = vcmp.eq.f32.partialorder %v633_v22, inf  ;;  %v639_v27 = vand.u32 2147483648, %v633_v22  ;;  %vm638_vm3 = vcmp.eq.f32.partialorder %v633_v22, 0.0 }
 0x291   : > { %v596_v23 = vpop.xlane.xlu1 %595 }
 0x292   : > { %v597_v24 = vmul.f32 0.032258064, %v596_v23 }
 0x294   : > { %1870 = vrsqrt.f32 %v597_v24  ;;  %vm600_vm4 = vcmp.eq.f32.partialorder %v597_v24, inf  ;;  %v603_v33 = vand.u32 2147483648, %v597_v24  ;;  %vm602_vm5 = vcmp.eq.f32.partialorder %v597_v24, 0.0 }
 0x29a   : > { %v1869_v25 = vpop.eup %1868 }
 0x29b   : > { %v635_v26 = vmul.f32 %v1869_v25, %v633_v22 }
 0x29d   : > { %v637_v28 = vsel %vm636_vm2, %v633_v22, %v635_v26 }
 0x29e   : > { %v1871_v29 = vpop.eup %1870  ;;  %v640_v30 = vsel %vm638_vm3, %v639_v27, %v637_v28 }
 0x29f   : > { %v641_v31 = vadd.f32 1e-06, %v640_v30  ;;  %v599_v32 = vmul.f32 %v1871_v29, %v597_v24 }
 0x2a1   : > { %v601_v34 = vsel %vm600_vm4, %v597_v24, %v599_v32  ;;  %1872 = vrcp.f32 %v641_v31 }
 0x2a2   : > { %v604_v35 = vsel %vm602_vm5, %v603_v33, %v601_v34 }
 0x2a3   : > { %v605_v36 = vadd.f32 1e-06, %v604_v35 }
 0x2a5   : > { %1874 = vrcp.f32 %v605_v36 }
 0x2ab   : > { %v1873_v39 = vpop.eup %1872 }
 0x2ac   : > { %v644_v41 = vmul.f32 %v1873_v39, %v643_v38 }
 0x2ae   : > { %v645_v43 = vadd.f32 %v1562_v40, %v644_v41 }
 0x2af   : > { %v1875_v44 = vpop.eup %1874 }
 0x2b0   : > { %v646_v45 = vpack.c.bf16 %v645_v43, %v645_v43  ;;  %v614_v46 = vmul.f32 %v1875_v44, %v613_v42 }
 0x2b2   : > { %1631 = vmatmul.mubr.msk.bf16.vlgmr.msra.gmra.mrb[0].mxu1 %vm586_vm0, %v646_v45  ;;  %v621_v47 = vadd.f32 %v1562_v40, %v614_v46 }
 0x2b3   : > { %1642 = vmatprep.mubr.msk.bf16.mxu1 %vm2326_vm1, %v2325_v18 }
 0x2b4   : > { %v647_v48 = vpack.c.bf16 %v621_v47, %v621_v47 }
 0x2b6   : > { %1623 = vmatmul.mubr.msk.bf16.vlgmr.msra.gmra.mrb[0].mxu0 %vm586_vm0, %v647_v48 }
 0x2b7   : > { %1636 = vmatprep.mubr.msk.bf16.mxu0 %vm2326_vm1, %v2325_v18 }
 0x385   : > { %v775_v50 = vpop.f32.mrb[0].mxu1 }
 0x386   : > { %v776_v51 = vadd.f32 %v1567_v49, %v775_v50  ;;  %v1632_v52 = vpop.f32.mrb[1].mxu1 }
 0x387   : > { %v778_v53 = vpop.f32.mrb[2].mxu1 }
 0x388   : > { %v2817_v55 = vpack.c.bf16 %v776_v51, %v776_v51  ;;  %v1633_v56 = vpop.f32.mrb[3].mxu1 }
 0x389   : > { %v708_v57 = vpop.f32.mrb[0].mxu0 }
 0x38a   : > { %v709_v58 = vadd.f32 %v1563_v54, %v708_v57  ;;  %900 = vrot.lane.b32.xlu0 %v2817_v55, %s2327_s23  ;;  %v1624_v59 = vpop.f32.mrb[1].mxu0  ;;  %v790_v60 = vsel %vm785_vm6, %v2817_v55, 0 }
 0x38b   : > { %v711_v61 = vpop.f32.mrb[2].mxu0  ;;  %1635 = vmatpush3.bf16.xpose.msra.mxu0 %v790_v60 }
 0x38c   : > { %v714_v62 = vmul.f32 0.35355338, %v709_v58  ;;  %v1625_v63 = vpop.f32.mrb[3].mxu0  ;;  %1646 = vmatprep.subr.bf16.mxu0 %v2325_v18 }
 0x38e   : > { %v783_v0 = vpack.c.bf16 %v714_v62, %v714_v62  ;;  %1138 = vrot.lane.b32.xlu0 %v2817_v55, %s2328_s13 }
 0x390   : > { %898 = vrot.lane.b32.xlu1 %v783_v0, %s2327_s23  ;;  %s2987_s23 = sld [smem:[#allocation39_spill]] }
 0x392   : > { %1637 = vmatmul.mubr.msk.bf16.vlgmr.msra.gmra.mrb[4].mxu0 %vm785_vm6, %v783_v0 }
 0x393   : > { %1648 = vmatprep.mubr.msk.bf16.mxu0 %vm2326_vm1, %v2325_v18 }
 0x394   : > { %1019 = vrot.lane.b32.xlu1 %v2817_v55, %s2329_s3 }
 0x398   : > { %1017 = vrot.lane.b32.xlu1 %v783_v0, %s2329_s3  ;;  %s1327_s3 = scalar_lea.sflag [#allocation5], %s2756_s6 }
 0x39c   : > { %1136 = vrot.lane.b32.xlu1 %v783_v0, %s2328_s13  ;;  %s2880_s13 = scalar_lea.hbm %s2987_s23, %s1587_s4 }
 0x3fc   : > { %v901_v1 = vpop.permute.xlu0 %900 }
 0x3fd   : > { %v906_v2 = vsel %vm785_vm6, %v901_v1, 0 }
 0x3fe   : > { %1647 = vmatpush3.bf16.xpose.msra.mxu0 %v906_v2 }
 0x3ff   : > { %1658 = vmatprep.subr.bf16.mxu0 %v2325_v18 }
 0x400   : > { %v1139_v7 = vpop.permute.xlu0 %1138 }
 0x401   : > { %v1144_v9 = vsel %vm785_vm6, %v1139_v7, 0 }
 0x402   : > { %v899_v4 = vpop.permute.xlu1 %898 }
 0x405   : > { %1649 = vmatmul.mubr.msk.bf16.vlgmr.msra.gmra.mrb[8].mxu0 %vm785_vm6, %v899_v4 }
 0x406   : > { %v1020_v5 = vpop.permute.xlu1 %1019  ;;  %1660 = vmatprep.mubr.msk.bf16.mxu0 %vm2326_vm1, %v2325_v18 }
 0x407   : > { %v1025_v6 = vsel %vm785_vm6, %v1020_v5, 0 }
 0x408   : > { %1659 = vmatpush3.bf16.xpose.msra.mxu0 %v1025_v6 }
 0x409   : > { %1670 = vmatprep.subr.bf16.mxu0 %v2325_v18 }
 0x40a   : > { %v1018_v8 = vpop.permute.xlu1 %1017 }
 0x40e   : > { %v1137_v10 = vpop.permute.xlu1 %1136 }
 0x40f   : > { %1661 = vmatmul.mubr.msk.bf16.vlgmr.msra.gmra.mrb[12].mxu0 %vm785_vm6, %v1018_v8 }
 0x410   : > { %1671 = vmatpush3.bf16.xpose.msra.mxu0 %v1144_v9  ;;  %1672 = vmatprep.mubr.msk.bf16.mxu0 %vm2326_vm1, %v2325_v18 }
 0x411   : > { %1682 = vmatprep.subr.bf16.mxu0 %v2325_v18 }
 0x417   : > { %1673 = vmatmul.mubr.msk.bf16.vlgmr.msra.gmra.mrb[16].mxu0 %vm785_vm6, %v1137_v10 }
 0x418   : > { %1686 = vmatprep.mubr.msk.bf16.mxu0 %vm2326_vm1, %v2325_v18 }
 0x465   : > { %v826_v13 = vpop.f32.mrb[4].mxu0 }
 0x466   : > { %v827_v14 = vadd.f32 %v826_v13, %v782_v12  ;;  %v1638_v15 = vpop.f32.mrb[5].mxu0 }
 0x467   : > { %v829_v16 = vpop.f32.mrb[6].mxu0 }
 0x468   : > { %v1639_v17 = vpop.f32.mrb[7].mxu0  ;;  %v832_v19 = vsel %vm785_vm6, %v827_v14, -inf }
 0x469   : > { %833 = vmax.xlane.f32.xlu0 %v832_v19 }
 0x4d8   : > { %v942_v20 = vpop.f32.mrb[8].mxu0 }
 0x4d9   : > { %v943_v21 = vadd.f32 %v942_v20, %v782_v12  ;;  %v1650_v22 = vpop.f32.mrb[9].mxu0 }
 0x4da   : > { %v945_v23 = vpop.f32.mrb[10].mxu0 }
 0x4db   : > { %v1651_v24 = vpop.f32.mrb[11].mxu0  ;;  %v948_v25 = vsel %vm785_vm6, %v943_v21, -inf }
 0x4dc   : > { %949 = vmax.xlane.f32.xlu1 %v948_v25 }
 0x4e2   : > { %v1061_v26 = vpop.f32.mrb[12].mxu0 }
 0x4e3   : > { %v1062_v27 = vadd.f32 %v1061_v26, %v782_v12  ;;  %v1662_v28 = vpop.f32.mrb[13].mxu0 }
 0x4e4   : > { %v1064_v29 = vpop.f32.mrb[14].mxu0 }
 0x4e5   : > { %v1663_v30 = vpop.f32.mrb[15].mxu0  ;;  %v1067_v31 = vsel %vm785_vm6, %v1062_v27, -inf }
 0x4e6   : > { %1068 = vmax.xlane.f32.xlu0 %v1067_v31 }
 0x4ea   : > { %v1180_v32 = vpop.f32.mrb[16].mxu0 }
 0x4eb   : > { %v1181_v33 = vadd.f32 %v1180_v32, %v782_v12  ;;  %v1674_v34 = vpop.f32.mrb[17].mxu0 }
 0x4ec   : > { %v1183_v35 = vpop.f32.mrb[18].mxu0 }
 0x4ed   : > { %v1675_v36 = vpop.f32.mrb[19].mxu0  ;;  %v1186_v37 = vsel %vm785_vm6, %v1181_v33, -inf  ;;  %v1866_v35 = vld [vmem:[#allocation17] sm:$0xff]  }
 0x4ee   : > { %1187 = vmax.xlane.f32.xlu0 %v1186_v37  ;;  %1683 = vmatpush3.bf16.msra.mxu0 %v1866_v35  ;;  %v1867_v36 = vld [vmem:[#allocation17 + $0x8] sm:$0xff]  }
 0x4ef   : > { %1684 = vmatprep.subr.bf16.mxu0 %v2325_v18 }
 0x4f2   : > { %1685 = vmatpush3.bf16.msra.mxu0 %v1867_v36 }
 0x4f6   : > { %v834_v38 = vpop.xlane.xlu0 %833 }
 0x4f7   : > { %v835_v39 = vsub.f32 %v827_v14, %v834_v38 }
 0x4f9   : > { %v836_v40 = vmul.f32 1.442695, %v835_v39 }
 0x4fb   : > { %1876 = vpow2.f32 %v836_v40 }
 0x505   : > { %v1877_v41 = vpop.eup %1876 }
 0x506   : > { %v838_v42 = vsel %vm785_vm6, %v1877_v41, 0.0 }
 0x507   : > { %839 = vadd.xlane.f32.xlu0 %v838_v42 }
 0x569   : > { %v950_v43 = vpop.xlane.xlu1 %949 }
 0x56a   : > { %v951_v44 = vsub.f32 %v943_v21, %v950_v43 }
 0x56c   : > { %v952_v45 = vmul.f32 1.442695, %v951_v44 }
 0x56e   : > { %1878 = vpow2.f32 %v952_v45  ;;  %v1582_v45 = vld [vmem:[#allocation18] ss:$0 sm:$0xff] }
 0x573   : > { %v1069_v46 = vpop.xlane.xlu0 %1068 }
 0x574   : > { %v1070_v47 = vsub.f32 %v1062_v27, %v1069_v46 }
 0x576   : > { %v1071_v48 = vmul.f32 1.442695, %v1070_v47 }
 0x578   : > { %v1879_v49 = vpop.eup %1878  ;;  %1880 = vpow2.f32 %v1071_v48 }
 0x579   : > { %v954_v50 = vsel %vm785_vm6, %v1879_v49, 0.0 }
 0x57a   : > { %955 = vadd.xlane.f32.xlu1 %v954_v50 }
 0x57b   : > { %v1188_v53 = vpop.xlane.xlu0 %1187 }
 0x57c   : > { %v1189_v54 = vsub.f32 %v1181_v33, %v1188_v53 }
 0x57e   : > { %v1190_v56 = vmul.f32 1.442695, %v1189_v54 }
 0x580   : > { %1882 = vpow2.f32 %v1190_v56 }
 0x582   : > { %v1881_v51 = vpop.eup %1880 }
 0x583   : > { %v1073_v52 = vsel %vm785_vm6, %v1881_v51, 0.0 }
 0x584   : > { %1074 = vadd.xlane.f32.xlu0 %v1073_v52 }
 0x58a   : > { %v1883_v57 = vpop.eup %1882 }
 0x58b   : > { %960 = vrot.lane.b32.xlu1 %v2817_v55, %s2330_s2  ;;  %v1192_v58 = vsel %vm785_vm6, %v1883_v57, 0.0  ;;  %s2204_s2 = scalar_lea.vmem %s2882_s29, 64 }
 0x58c   : > { %p2205_p11 = scmp.ne.s32.totalorder %s2882_s29, %s2204_s2 }
 0x58e   : > { %p2206_p4 = pnand %p2205_p11, %p2988_p12 }
 0x58f   : > { %1079 = vrot.lane.b32.xlu1 %v2817_v55, %s2331_s26  ;;  %s2208_s26 = sshll.u32 %s2337_s28, 4  ;;  %s2209_s26 = int_to_ptr.vmem [resolvable:$false] %s2208_s26 }
 0x590   : > { %p2207_p6 = pneg %p2206_p4  ;;  %p2211_p5 = scmp.lt.s32.totalorder %s2882_s29, %s2209_s26 }
 0x594   : > { %v840_v59 = vpop.xlane.xlu0 %839 }
 0x595   : > { %1884 = vrcp.f32 %v840_v59 }
 0x59a   : > { %845 = vrot.lane.b32.xlu0 %v2817_v55, %s2332_s8  ;;  %s2210_s8 = scalar_lea.vmem %s2209_s26, 128 }
 0x59b   : > { %p2212_p7 = scmp.lt.s32.totalorder %s2210_s8, %s2204_s2 }
 0x59d   : > { %p2213_p0 = por %p2212_p7, %p2211_p5 }
 0x59f   : > { %v1885_v61 = vpop.eup %1884  ;;  %p2214_p8 = pnand %p2213_p0, %p2207_p6 }
 0x5a0   : > { %v842_v63 = vmul.f32 %v1885_v61, %v1877_v41 }
 0x5a2   : > { %v843_v4 = vpack.c.bf16 %v842_v63, %v842_v63 }
 0x5b3   : > { %1193 = vadd.xlane.f32.xlu1 %v1192_v58 }
 0x5c4   : > { %1198 = vrot.lane.b32.xlu1 %v2817_v55, %s2333_s5 }
 0x607   : > { %v956_v60 = vpop.xlane.xlu1 %955 }
 0x608   : > { %1886 = vrcp.f32 %v956_v60 }
 0x60b   : > { %v961_v2 = vpop.permute.xlu1 %960 }
 0x60c   : > { %v966_v55 = vsel %vm850_vm7, %v961_v2, 0 }
 0x60f   : > { %v1080_v7 = vpop.permute.xlu1 %1079 }
 0x610   : > { %v1085_v10 = vsel %vm850_vm7, %v1080_v7, 0 }
 0x611   : > { %v1075_v62 = vpop.xlane.xlu0 %1074 }
 0x612   : > { %1888 = vrcp.f32 %v1075_v62  ;;  %v1887_v5 = vpop.eup %1886 }
 0x613   : > { %v958_v6 = vmul.f32 %v1887_v5, %v1879_v49 }
 0x615   : > { %v846_v0 = vpop.permute.xlu0 %845  ;;  %v959_v8 = vpack.c.bf16 %v958_v6, %v958_v6 }
 0x616   : > { %v852_v1 = vsel %vm850_vm7, %v846_v0, 0 }
 0x617   : > { %1641 = vmatpush3.bf16.msra.mxu1 %v852_v1 }
 0x618   : > { %1652 = vmatprep.subr.bf16.mxu1 %v2325_v18 }
 0x61a   : > { %1643 = vmatmul.mubr.msk.bf16.vlgmr.msra.gmra.mrb[4].mxu1 %vm785_vm6, %v843_v4 }
 0x61b   : > { %1653 = vmatpush3.bf16.msra.mxu1 %v966_v55  ;;  %1654 = vmatprep.mubr.msk.bf16.mxu1 %vm2326_vm1, %v2325_v18 }
 0x61c   : > { %1664 = vmatprep.subr.bf16.mxu1 %v2325_v18  ;;  %v1889_v9 = vpop.eup %1888 }
 0x61d   : > { %v1077_v11 = vmul.f32 %v1889_v9, %v1881_v51 }
 0x61f   : > { %v1078_v12 = vpack.c.bf16 %v1077_v11, %v1077_v11 }
 0x622   : > { %1655 = vmatmul.mubr.msk.bf16.vlgmr.msra.gmra.mrb[8].mxu1 %vm785_vm6, %v959_v8 }
 0x623   : > { %1665 = vmatpush3.bf16.msra.mxu1 %v1085_v10  ;;  %1666 = vmatprep.mubr.msk.bf16.mxu1 %vm2326_vm1, %v2325_v18 }
 0x624   : > { %1676 = vmatprep.subr.bf16.mxu1 %v2325_v18 }
 0x62a   : > { %1667 = vmatmul.mubr.msk.bf16.vlgmr.msra.gmra.mrb[12].mxu1 %vm785_vm6, %v1078_v12 }
 0x62b   : > { %1678 = vmatprep.mubr.msk.bf16.mxu1 %vm2326_vm1, %v2325_v18 }
 0x640   : > { %v1194_v13 = vpop.xlane.xlu1 %1193 }
 0x641   : > { %1890 = vrcp.f32 %v1194_v13 }
 0x644   : > { %v1199_v14 = vpop.permute.xlu1 %1198 }
 0x645   : > { %v1204_v15 = vsel %vm850_vm7, %v1199_v14, 0 }
 0x646   : > { %1677 = vmatpush3.bf16.msra.mxu1 %v1204_v15 }
 0x64b   : > { %v1891_v16 = vpop.eup %1890 }
 0x64c   : > { %v1196_v17 = vmul.f32 %v1891_v16, %v1883_v57 }
 0x64e   : > { %v1197_v19 = vpack.c.bf16 %v1196_v17, %v1196_v17 }
 0x650   : > { %1679 = vmatmul.mubr.msk.bf16.vlgmr.msra.gmra.mrb[16].mxu1 %vm785_vm6, %v1197_v19 }
 0x6ed   : > { %v888_v20 = vpop.f32.mrb[4].mxu1 }
 0x6ee   : > { %v894_v21 = vpack.c.bf16 %v888_v20, %v888_v20  ;;  %v1644_v22 = vpop.f32.mrb[5].mxu1 }
 0x6ef   : > { %v891_v23 = vpop.f32.mrb[6].mxu1 }
 0x6f0   : > { %896 = vst.msk [vmem:[#allocation2] sm:$0xf] %vm895_vm8, %v894_v21  ;;  %v1645_v24 = vpop.f32.mrb[7].mxu1 }
 0x6f5   : > { %v1002_v25 = vpop.f32.mrb[8].mxu1 }
 0x6f6   : > { %v1590_v26 = vpack.c.bf16 %v1002_v25, %v1002_v25  ;;  %v1656_v27 = vpop.f32.mrb[9].mxu1 }
 0x6f7   : > { %v1005_v28 = vpop.f32.mrb[10].mxu1 }
 0x6f8   : > { %1012 = vrot.lane.b32.xlu0 %v1590_v26, %s2334_s25  ;;  %v1657_v29 = vpop.f32.mrb[11].mxu1 }
 0x6fd   : > { %v1121_v30 = vpop.f32.mrb[12].mxu1 }
 0x6fe   : > { %v1591_v31 = vpack.c.bf16 %v1121_v30, %v1121_v30  ;;  %v1668_v32 = vpop.f32.mrb[13].mxu1 }
 0x6ff   : > { %v1124_v33 = vpop.f32.mrb[14].mxu1 }
 0x700   : > { %1131 = vrot.lane.b32.xlu1 %v1591_v31, %s2335_s16  ;;  %v1669_v34 = vpop.f32.mrb[15].mxu1 }
 0x723   : > { %v1240_v37 = vpop.f32.mrb[16].mxu1 }
 0x724   : > { %v1592_v38 = vpack.c.bf16 %v1240_v37, %v1240_v37  ;;  %v1680_v39 = vpop.f32.mrb[17].mxu1 }
 0x725   : > { %v1243_v40 = vpop.f32.mrb[18].mxu1 }
 0x726   : > { %1250 = vrot.lane.b32.xlu0 %v1592_v38, %s2336_s27  ;;  %v1681_v41 = vpop.f32.mrb[19].mxu1 }
 0x76a   : > { %v1013_v42 = vpop.permute.xlu0 %1012 }
 0x76b   : > { %1016 = vst.msk [vmem:[#allocation2] sm:$0xf] %vm1015_vm9, %v1013_v42 }
 0x772   : > { %v1132_v43 = vpop.permute.xlu1 %1131 }
 0x773   : > { %1135 = vst.msk [vmem:[#allocation2] sm:$0xf] %vm1134_vm10, %v1132_v43 }
 0x798   : > { %v1251_v44 = vpop.permute.xlu0 %1250 }
 0x799   : > { %1254 = vst.msk [vmem:[#allocation2] sm:$0xf] %vm1253_vm11, %v1251_v44 }
 0x7a0   : > { %v1255_v18 = vld [vmem:[#allocation2] sm:$0xf] }
 0x7a1   : > { %1687 = vmatmul.mubr.msk.bf16.vlgmr.msra.gmra.mrb[20].mxu0 %vm586_vm0, %v1255_v18 }
 0x874   : > { %v1316_v46 = vpop.f32.mrb[20].mxu0 }
 0x875   : > { %v1317_v47 = vadd.f32 %v1582_v45, %v1316_v46  ;;  %v1688_v48 = vpop.f32.mrb[21].mxu0 }
 0x876   : > { %v1319_v49 = vpop.f32.mrb[22].mxu0 }
 0x877   : > { %v1322_v50 = vadd.f32 %v1317_v47, %v2793_v3  ;;  %v1689_v51 = vpop.f32.mrb[23].mxu0 }
 0x879   : > { %v1323_v52 = vpack.c.bf16 %v1322_v50, %v1322_v50 }
 0x87b   : > { %1325 = vst.msk [vmem:[%s580_s30] sm:$0xf] %vm1324_vm12, %v1323_v52 }
 0x87c   : > { %2217 = shalt.err (!%p2214_p8)
}
 0x87d   : > { %s2218_s6 = scalar_lea.hbm %s2880_s13, 64  ;;  %s2222_s16 = scalar_lea.hbm %s2987_s23, 128 }
 0x87e   : > { %p2219_p9 = scmp.ne.s32.totalorder %s2880_s13, %s2218_s6  ;;  %p2223_p10 = scmp.lt.u32.totalorder %s2880_s13, %s2987_s23 }
 0x87f   : > { %p2224_p13 = scmp.lt.u32.totalorder %s2222_s16, %s2218_s6  ;;  %p2226_p11 = scmp.lt.u32.totalorder %s2218_s6, %s2880_s13 }
 0x880   : > { %p2220_p1 = pnand %p2219_p9, %p2988_p12 }
 0x881   : > { %p2225_p2 = por %p2224_p13, %p2223_p10 }
 0x882   : > { %p2221_p3 = pneg %p2220_p1 }
 0x883   : > { %p2227_p4 = por %p2226_p11, %p2225_p2 }
 0x885   : > { %p2228_p6 = pnand %p2227_p4, %p2221_p3 }
 0x887   : > { %2231 = shalt.err (!%p2228_p6)
}
 0x888   : > { %1730 = dma.vmem_to_hbm [thread:$0]  (%p2988_p12), %s2882_s29, 64, %s2880_s13, %s1327_s3  }
 0x889 PF: > { %s1353_s4 = sand.u32 1, %s2290_s17   ;;  %p2989_p5 = scmp.ne.s32.totalorder %s2971_s12, 0 }
 0x88a   : > { %p2990_p7 = scmp.ge.s32.totalorder %s2310_s22, 2  ;;  %s1354_s30 = scalar_lea.sflag [#allocation5], %s1353_s4 }
 0x88c   : > { %p1768_p0 = pnand %p2990_p7, %p2989_p5 }
 0x88e   : > { %2285 = dma.done.wait (!%p1768_p0), %s1354_s30, 64  }
 0x88f   : > { %2287 = vsyncadd (!%p1768_p0), %s1354_s30, 4294967232  ;;  %s34_s22 = sadd.s32 1, %s2310_s22   ;;  %s2991_s17 = smov %s2294_s18 }
 0x890   : > { %p31_p8 = scmp.ge.s32.totalorder %s34_s22, 4   ;;  %s2992_s18 = smov %s2298_s19 }
 0x891   : > { %s2993_s19 = smov %s2676_s24  ;;  %s2994_s20 = smov %s2306_s21 }
 0x892   : > { %s2995_s21 = smov %s2997_s15  ;;  %33 = sbr.rel (!%p31_p8) target bundleno = 21 (0x15), region = 159 }
 0x899   :  { %1359 = vsyncpa [#allocation4], 1 }
 0x89a   :  { %1361 = vsyncpa [#allocation4 + $0x1], 1 }
 0x89b   :  { %1362 = vsyncpa [#allocation7], 1 }
 0x89c   :  { %1364 = vsyncpa [#allocation7 + $0x1], 1 }
 0x89d   :  { %1365 = vsyncpa [#allocation10], 1 }
 0x89e   :  { %1366 = vsyncpa [#allocation13], 1 }
 0x89f   :  { %1367 = vsyncpa [#allocation16], 1 }
 0x8a0   :  { %1368 = vsyncpa [#allocation19], 1 }
 0x8a1   :  { %1369 = vsyncpa [#allocation5], 1 }
 0x8a2   :  { %1371 = vsyncpa [#allocation5 + $0x1], 1 }

// kernel: decoder_forward.13
= control target key start
LH: loop header
LB: loop body
LE: loop exit
PB: predicated region body
PF: predicated region fallthrough
CT: control target
= control target key end

     0   :  { %8 = vsyncpa [#allocation3], 0  ;;  %s856_s0 = inlined_call_operand.hbm [shape: bf16[16,32], index: 0, kind: input, shape index: {}]   ;;  %s857_s1 = inlined_call_operand.hbm [shape: f32[1,32], index: 1, kind: input, shape index: {}]   ;;  %s858_s2 = inlined_call_operand.hbm [shape: f32[1,32], index: 2, kind: input, shape index: {}]   ;;  %s859_s3 = inlined_call_operand.hbm [shape: f32[16,32], index: 3, kind: output, shape index: {}]  }
   0x1   :  { %10 = vsyncpa [#allocation3 + $0x1], 0 }
   0x2   :  { %11 = vsyncpa [#allocation6], 0 }
   0x3   :  { %12 = vsyncpa [#allocation4], 0 }
   0x4   :  { %14 = vsyncpa [#allocation4 + $0x1], 0  ;;  %s626_s12 = smov 0   ;;  %s628_s13 = smov 0  }
   0x5   :  { %s630_s14 = smov 0   ;;  %s632_s15 = smov 0  }
   0x6 LB: > { %s647_s16 = sadd.s32 4294967295, %s600_s15   ;;  %s355_s17 = sadd.s32 4294967294, %s600_s15   ;;  %s600_s15 = sphi %s632_s15, %s879_s15   ;;  %s596_s14 = sphi %s630_s14, %s878_s14   ;;  %s592_s13 = sphi %s628_s13, %s877_s13   ;;  %s588_s12 = sphi %s626_s12, %s876_s12  }
   0x7   : > { %p40_p0 = scmp.ne.s32.totalorder %s592_s13, %s588_s12  ;;  %p860_p1 = scmp.eq.s32.totalorder %s647_s16, 0 }
   0x8   : > { %p112_p3 = scmp.eq.s32.totalorder %s355_s17, 1  ;;  %p356_p5 = scmp.ge.s32.totalorder %s600_s15, 1 }
   0x9   : > { %p656_p4 = por %p860_p1, %p40_p0  ;;  %p119_p7 = scmp.lt.s32.totalorder %s600_s15, 3 }
   0xa   : > { %p661_p6 = por %p112_p3, %p40_p0  ;;  %s602_s21 = smov [#allocation5]  }
   0xb   : > { %s863_s18 = scalar_select %p656_p4, 1, 0 }
   0xc   : > { %s864_s19 = scalar_select %p661_p6, 1, 0 }
   0xd   : > { %p666_p8 = pnand %p356_p5, %p119_p7  ;;  %s132_s22 = sshll.u32 %s602_s21, 4  ;;  %s133_s22 = int_to_ptr.vmem [resolvable:$true] %s132_s22 }
   0xe   : > { %s603_s23 = smov [#allocation7]   ;;  %s682_s26 = sadd.s32 1, %s600_s15  }
   0xf   : > { %s865_s20 = scalar_select %p666_p8, 1, 0 }
  0x10   : > { %p385_p10 = pneg %p666_p8  ;;  %s143_s24 = sshll.u32 %s603_s23, 4  ;;  %s679_s24 = int_to_ptr.vmem [resolvable:$true] %s143_s24 }
  0x11   : > { %s24_s27 = ssub.s32 %s600_s15, %s682_s26  ;;  %s444_s30 = scalar_lea.hbm %s857_s1, 16 }
  0x12   : > { %p675_p11 = pnand %p385_p10, %p860_p1  ;;  %p445_p12 = scmp.ne.s32.totalorder %s857_s1, %s444_s30 }
  0x13   : > { %p451_p5 = scmp.lt.u32.totalorder %s444_s30, %s857_s1 }
  0x14   : > { %p446_p13 = pneg %p675_p11 }
  0x16   : > { %p447_p0 = pnand %p446_p13, %p445_p12 }
  0x18   : > { %p448_p3 = pneg %p447_p0 }
  0x1a   : > { %p453_p7 = pnand %p451_p5, %p448_p3 }
  0x1c   : > { %456 = shalt.err (!%p453_p7)
}
  0x1d   : > { %s457_s8 = scalar_lea.vmem %s133_s22, 16  ;;  %s464_s9 = scalar_lea.vmem %s133_s22, 32 }
  0x1e   : > { %p458_p10 = scmp.ne.s32.totalorder %s133_s22, %s457_s8  ;;  %p465_p2 = scmp.lt.s32.totalorder %s133_s22, %s133_s22 }
  0x1f   : > { %p466_p6 = scmp.lt.s32.totalorder %s464_s9, %s457_s8 }
  0x20   : > { %p460_p9 = pnand %p458_p10, %p446_p13 }
  0x21   : > { %p467_p4 = por %p466_p6, %p465_p2 }
  0x22   : > { %p461_p1 = pneg %p460_p9 }
  0x24   : > { %p468_p8 = pnand %p467_p4, %p461_p1 }
  0x26   : > { %471 = shalt.err (!%p468_p8)
}
  0x27   : > { %388 = dma.hbm_to_vmem [thread:$0]  (!%p675_p11), %s857_s1, 16, %s133_s22, [#allocation6]  }
  0x28   : > { %s472_s23 = scalar_lea.hbm %s858_s2, 16 }
  0x29   : > { %p473_p9 = scmp.ne.s32.totalorder %s858_s2, %s472_s23  ;;  %p479_p4 = scmp.lt.u32.totalorder %s472_s23, %s858_s2 }
  0x2b   : > { %p475_p2 = pnand %p473_p9, %p446_p13 }
  0x2d   : > { %p476_p1 = pneg %p475_p2 }
  0x2f   : > { %p481_p6 = pnand %p479_p4, %p476_p1 }
  0x31   : > { %484 = shalt.err (!%p481_p6)
}
  0x32   : > { %s485_s22 = scalar_lea.vmem %s679_s24, 16  ;;  %s492_s5 = scalar_lea.vmem %s679_s24, 32 }
  0x33   : > { %p486_p8 = scmp.ne.s32.totalorder %s679_s24, %s485_s22  ;;  %p493_p3 = scmp.lt.s32.totalorder %s679_s24, %s679_s24 }
  0x34   : > { %p494_p5 = scmp.lt.s32.totalorder %s492_s5, %s485_s22 }
  0x35   : > { %p488_p12 = pnand %p486_p8, %p446_p13 }
  0x36   : > { %p495_p7 = por %p494_p5, %p493_p3 }
  0x37   : > { %p489_p0 = pneg %p488_p12 }
  0x39   : > { %p496_p10 = pnand %p495_p7, %p489_p0 }
  0x3b   : > { %499 = shalt.err (!%p496_p10)
}
  0x3c   : > { %391 = dma.hbm_to_vmem [thread:$0]  (!%p675_p11), %s858_s2, 16, %s679_s24, [#allocation6]  }
  0x3d   : > { %p25_p13 = scmp.eq.s32.totalorder %s24_s27, 0  ;;  %s27_s8 = sadd.s32 1, %s596_s14 }
  0x3e   : > { %p34_p9 = scmp.ne.s32.totalorder %s596_s14, %s592_s13  ;;  %p35_p2 = scmp.eq.s32.totalorder %s600_s15, 0 }
  0x3f   : > { %s742_s25 = scalar_select %p25_p13, %s596_s14, %s27_s8  }
  0x40   : > { %p36_p1 = por %p35_p2, %p34_p9  ;;  %p867_p4 = scmp.eq.s32.totalorder %s647_s16, 1 }
  0x41   : > { %p402_p8 = scmp.lt.s32.totalorder %s600_s15, 2  ;;  %s154_s10 = sand.u32 1, %s596_s14  }
  0x42   : > { %p746_p6 = por %p867_p4, %p34_p9  ;;  %s360_s11 = sshll.u32 %s154_s10, 2 }
  0x43   : > { %s361_s17 = sshll.u32 %s600_s15, 6  ;;  %s158_s27 = scalar_lea.vmem [#allocation2], %s360_s11 }
  0x44   : > { %s756_s24 = scalar_lea.hbm %s856_s0, %s361_s17  ;;  %s165_s28 = sshll.u32 %s158_s27, 4  ;;  %s758_s28 = int_to_ptr.vmem [resolvable:$true] %s165_s28 }
  0x45   : > { %p760_p11 = pnand %p402_p8, %p36_p1  ;;  %s155_s30 = scalar_lea.sflag [#allocation3], %s154_s10 }
  0x46   : > { %s500_s4 = scalar_lea.hbm %s756_s24, 64  ;;  %s505_s6 = scalar_lea.hbm %s856_s0, 128 }
  0x47   : > { %p501_p12 = scmp.ne.s32.totalorder %s756_s24, %s500_s4  ;;  %p502_p0 = pneg %p760_p11 }
  0x48   : > { %p506_p7 = scmp.lt.u32.totalorder %s756_s24, %s856_s0  ;;  %p507_p10 = scmp.lt.u32.totalorder %s505_s6, %s500_s4 }
  0x49   : > { %p503_p3 = pnand %p502_p0, %p501_p12  ;;  %p509_p9 = scmp.lt.u32.totalorder %s500_s4, %s756_s24 }
  0x4a   : > { %p508_p13 = por %p507_p10, %p506_p7 }
  0x4b   : > { %p504_p5 = pneg %p503_p3 }
  0x4c   : > { %p510_p2 = por %p509_p9, %p508_p13 }
  0x4e   : > { %p511_p1 = pnand %p510_p2, %p504_p5 }
  0x50   : > { %514 = shalt.err (!%p511_p1)
}
  0x51   : > { %s515_s10 = scalar_lea.vmem %s758_s28, 64  ;;  %s604_s11 = smov [#allocation2]  }
  0x52   : > { %p516_p4 = scmp.ne.s32.totalorder %s758_s28, %s515_s10  ;;  %s520_s17 = sshll.u32 %s604_s11, 4  ;;  %s521_s17 = int_to_ptr.vmem [resolvable:$false] %s520_s17 }
  0x53   : > { %s522_s21 = scalar_lea.vmem %s521_s17, 128  ;;  %p523_p3 = scmp.lt.s32.totalorder %s758_s28, %s521_s17 }
  0x54   : > { %p518_p8 = pnand %p516_p4, %p502_p0  ;;  %p524_p7 = scmp.lt.s32.totalorder %s522_s21, %s515_s10 }
  0x56   : > { %p519_p12 = pneg %p518_p8  ;;  %p525_p10 = por %p524_p7, %p523_p3 }
  0x58   : > { %p526_p13 = pnand %p525_p10, %p519_p12 }
  0x5a   : > { %529 = shalt.err (!%p526_p13)
}
  0x5b   : > { %395 = dma.hbm_to_vmem [thread:$0]  (!%p760_p11), %s756_s24, 64, %s758_s28, %s155_s30  }
  0x5c   : > { %p870_p5 = scmp.ne.s32.totalorder %s865_s20, 0 }
  0x5d   : > { %s792_s23 = sand.u32 (!%p870_p5), 1, %s592_s13   ;;  %p871_p0 = scmp.ne.s32.totalorder (!%p870_p5), %s863_s18, 0 }
  0x5e   : > { %174 = sbr.rel (%p870_p5) target bundleno = 448 (0x1c0), region = 32  ;;  %s363_s27 = sshll.u32 (!%p870_p5), %s792_s23, 2 }
  0x5f   : > { %s177_s4 = scalar_lea.sflag (!%p870_p5), [#allocation3], %s792_s23  ;;  %s180_s22 = scalar_lea.vmem (!%p870_p5), [#allocation2], %s363_s27 }
  0x65   : > { %575 = dma.done.wait (%p871_p0), %s177_s4, 64  }
  0x66   : > { %577 = vsyncadd (%p871_p0), %s177_s4, 4294967232  ;;  %p872_p9 = scmp.eq.s32.totalorder %s647_s16, 0 }
  0x68   : > { %579 = dma.done.wait (%p872_p9), [#allocation6], 32   ;;  %p873_p11 = pmov %p872_p9 }
  0x69   : > { %v211_v0 = vld [vmem:[%s180_s22] sm:$0xf]  ;;  %vm215_vm0 = vcmask 261120   ;;  %s366_s18 = sshll.u32 %s792_s23, 3  ;;  %v367_v16 = vld [vmem:[#allocation5] ss:$0 sm:$0xff] }
  0x6a   : > { %581 = vsyncadd (%p873_p11), [#allocation6], 4294967264  ;;  %v212_v1 = vunpack.c.l.bf16 %v211_v0  ;;  %v368_v19 = vld [vmem:[#allocation7] ss:$0 sm:$0xff]  ;;  %s370_s20 = sshll.u32 %s647_s16, 7  ;;  %s210_s24 = scalar_lea.vmem [#allocation8], %s366_s18 }
  0x6b   : > { %s266_s28 = sshll.u32 %s210_s24, 4  ;;  %s811_s5 = scalar_lea.hbm %s859_s3, %s370_s20  ;;  %s813_s28 = int_to_ptr.vmem [resolvable:$true] %s266_s28 }
  0x6c   : > { %v216_v2 = vsel %vm215_vm0, %v212_v1, 0.0  ;;  %s253_s6 = scalar_lea.sflag [#allocation4], %s792_s23  ;;  %s530_s7 = scalar_lea.vmem %s813_s28, 128 }
  0x6d   : > { %217 = vadd.xlane.f32.xlu0 %v216_v2  ;;  %p531_p2 = scmp.ne.s32.totalorder %s813_s28, %s530_s7  ;;  %s605_s16 = smov [#allocation8]  }
  0x6e   : > { %s534_s8 = sshll.u32 %s605_s16, 4  ;;  %s535_s8 = int_to_ptr.vmem [resolvable:$false] %s534_s8 }
  0x6f   : > { %p532_p1 = pnand %p531_p2, %p746_p6  ;;  %s536_s10 = scalar_lea.vmem %s535_s8, 256 }
  0x70   : > { %p537_p8 = scmp.lt.s32.totalorder %s813_s28, %s535_s8  ;;  %p538_p12 = scmp.lt.s32.totalorder %s536_s10, %s530_s7 }
  0x71   : > { %p533_p4 = pneg %p532_p1 }
  0x72   : > { %p539_p3 = por %p538_p12, %p537_p8 }
  0x74   : > { %p540_p7 = pnand %p539_p3, %p533_p4 }
  0xfa   : > { %v218_v3 = vpop.xlane.xlu0 %217 }
  0xfb   : > { %v220_v4 = vmul.f32 0.03125, %v218_v3 }
  0xfd   : > { %v221_v5 = vsub.f32 %v212_v1, %v220_v4 }
  0xff   : > { %v222_v6 = vmul.f32 %v221_v5, %v221_v5  ;;  %v242_v17 = vmul.f32 %v367_v16, %v221_v5 }
 0x101   : > { %v223_v7 = vsel %vm215_vm0, %v222_v6, 0.0 }
 0x102   : > { %224 = vadd.xlane.f32.xlu0 %v223_v7 }
 0x18f   : > { %v225_v8 = vpop.xlane.xlu0 %224 }
 0x190   : > { %v226_v9 = vmul.f32 0.032258064, %v225_v8 }
 0x192   : > { %440 = vrsqrt.f32 %v226_v9  ;;  %vm229_vm1 = vcmp.eq.f32.partialorder %v226_v9, inf  ;;  %v232_v12 = vand.u32 2147483648, %v226_v9  ;;  %vm231_vm2 = vcmp.eq.f32.partialorder %v226_v9, 0.0 }
 0x19c   : > { %v441_v10 = vpop.eup %440 }
 0x19d   : > { %v228_v11 = vmul.f32 %v441_v10, %v226_v9 }
 0x19f   : > { %v230_v13 = vsel %vm229_vm1, %v226_v9, %v228_v11 }
 0x1a0   : > { %v233_v14 = vsel %vm231_vm2, %v232_v12, %v230_v13 }
 0x1a1   : > { %v234_v15 = vadd.f32 1e-06, %v233_v14 }
 0x1a3   : > { %442 = vrcp.f32 %v234_v15 }
 0x1ad   : > { %v443_v18 = vpop.eup %442 }
 0x1ae   : > { %v243_v20 = vmul.f32 %v443_v18, %v242_v17 }
 0x1b0   : > { %v250_v21 = vadd.f32 %v368_v19, %v243_v20 }
 0x1b2   : > { %251 = vst.msk [vmem:[%s210_s24] sm:$0xff] %vm215_vm0, %v250_v21 }
 0x1b3   : > { %543 = shalt.err (!%p540_p7)
}
 0x1b4   : > { %s544_s11 = scalar_lea.hbm %s811_s5, 128  ;;  %s548_s23 = scalar_lea.hbm %s859_s3, 256 }
 0x1b5   : > { %p545_p10 = scmp.ne.s32.totalorder %s811_s5, %s544_s11  ;;  %p549_p0 = scmp.lt.u32.totalorder %s811_s5, %s859_s3 }
 0x1b6   : > { %p550_p9 = scmp.lt.u32.totalorder %s548_s23, %s544_s11  ;;  %p552_p2 = scmp.lt.u32.totalorder %s544_s11, %s811_s5 }
 0x1b7   : > { %p546_p13 = pnand %p545_p10, %p746_p6 }
 0x1b8   : > { %p551_p11 = por %p550_p9, %p549_p0 }
 0x1b9   : > { %p547_p5 = pneg %p546_p13 }
 0x1ba   : > { %p553_p1 = por %p552_p2, %p551_p11 }
 0x1bc   : > { %p554_p4 = pnand %p553_p1, %p547_p5 }
 0x1be   : > { %557 = shalt.err (!%p554_p4)
}
 0x1bf   : > { %383 = dma.vmem_to_hbm [thread:$0]  (%p746_p6), %s813_s28, 128, %s811_s5, %s253_s6  }
 0x1c0 PF: > { %s278_s22 = sand.u32 1, %s588_s12   ;;  %p874_p8 = scmp.ne.s32.totalorder %s864_s19, 0 }
 0x1c1   : > { %p875_p12 = scmp.ge.s32.totalorder %s600_s15, 2  ;;  %s279_s18 = scalar_lea.sflag [#allocation4], %s278_s22 }
 0x1c3   : > { %p397_p3 = pnand %p875_p12, %p874_p8 }
 0x1c5   : > { %583 = dma.done.wait (!%p397_p3), %s279_s18, 128  }
 0x1c6   : > { %585 = vsyncadd (!%p397_p3), %s279_s18, 4294967168  ;;  %p17_p7 = scmp.ge.s32.totalorder %s682_s26, 4   ;;  %s876_s12 = smov %s592_s13 }
 0x1c7   : > { %s877_s13 = smov %s596_s14  ;;  %s878_s14 = smov %s742_s25 }
 0x1c8   : > { %s879_s15 = smov %s682_s26  ;;  %19 = sbr.rel (!%p17_p7) target bundleno = 6 (0x6), region = 85 }
 0x1cf   :  { %284 = vsyncpa [#allocation3], 1 }
 0x1d0   :  { %286 = vsyncpa [#allocation3 + $0x1], 1 }
 0x1d1   :  { %287 = vsyncpa [#allocation6], 1 }
 0x1d2   :  { %288 = vsyncpa [#allocation4], 1 }
 0x1d3   :  { %290 = vsyncpa [#allocation4 + $0x1], 1 }

</bundles_post_ra>
